<compile_context>
chip_gen: v7x
topology: tpu7x:2x2x1
jax: 0.10.0
libtpu: 0.0.40
codegen_flags: <defaults>
</compile_context>

<pallas_src>
import functools

import numpy as np

import jax
import jax.numpy as jnp
from jax import lax
from jax.experimental import pallas as pl
from jax.experimental.pallas import tpu as pltpu


# ----------------------------- in-kernel helpers ---------------------------

def _conv_rows(x2d, w_ref, b_ref, k, oh):
    """Valid conv, stride 1, on a (H, W*C) tile via k row-shifted matmuls.

    w_ref[kh] is a host-pre-expanded banded matrix of shape (W*C, OW*O).
    Returns (oh, OW*O) f32 (bias included).
    """
    acc = None
    for kh in range(k):
        lhs = x2d[kh:kh + oh, :].astype(jnp.bfloat16)
        t = jnp.dot(lhs, w_ref[kh], preferred_element_type=jnp.float32)
        acc = t if acc is None else acc + t
    return acc + b_ref[...]


def _pool2x2_relu(y, rs0_ref, rs1_ref, cs0_ref, cs1_ref):
    """relu(2x2 max-pool) via exact one-hot row/column selection matmuls."""
    r = jnp.maximum(
        jnp.dot(rs0_ref[...], y, preferred_element_type=jnp.float32),
        jnp.dot(rs1_ref[...], y, preferred_element_type=jnp.float32))
    p = jnp.maximum(
        jnp.dot(r, cs0_ref[...], preferred_element_type=jnp.float32),
        jnp.dot(r, cs1_ref[...], preferred_element_type=jnp.float32))
    return jnp.maximum(p, 0.0)


# ------------------------- fused conv-tower kernel --------------------------

def _tower_kernel(x_ref,
                  w1_ref, b1_ref, rs0a_ref, rs1a_ref, cs0a_ref, cs1a_ref,
                  w2_ref, b2_ref, rs0b_ref, rs1b_ref, cs0b_ref, cs1b_ref,
                  fw1_ref, fb1_ref, fw2_ref, fb2_ref,
                  o_ref, *, k1, oh1, k2, oh2, nrows, log_sm):
    x = x_ref[0]                                             # (28, 28) f32

    # conv stage 1 + bias -> pool -> relu
    y1 = _conv_rows(x, w1_ref, b1_ref, k1, oh1)
    p1 = _pool2x2_relu(y1, rs0a_ref, rs1a_ref, cs0a_ref, cs1a_ref)

    # conv stage 2 + bias -> pool -> relu
    # TODO(synk): Dropout2d / F.dropout are identity at inference (training
    # mode dropout is not implemented).
    y2 = _conv_rows(p1, w2_ref, b2_ref, k2, oh2)
    p2 = _pool2x2_relu(y2, rs0b_ref, rs1b_ref, cs0b_ref, cs1b_ref)

    # first FC with the PyTorch (C,H,W) flatten order absorbed into fw1[h]
    h = fb1_ref[...]                                         # (1, M) f32
    for r in range(nrows):
        h = h + jnp.dot(p2[r:r + 1, :].astype(jnp.bfloat16), fw1_ref[r],
                        preferred_element_type=jnp.float32)
    h = jnp.maximum(h, 0.0)

    # second FC (output lane-padded); optional fused log_softmax epilogue.
    z = jnp.dot(h.astype(jnp.bfloat16), fw2_ref[...],
                preferred_element_type=jnp.float32) + fb2_ref[...]
    if log_sm:
        m = jnp.max(z, axis=-1, keepdims=True)
        s = z - m
        z = s - jnp.log(jnp.sum(jnp.exp(s), axis=-1, keepdims=True))
    o_ref[0] = z


_STN_CFG = dict(k1=7, oh1=22, k2=5, oh2=7, nrows=3, log_sm=False)
_CLS_CFG = dict(k1=5, oh1=24, k2=5, oh2=8, nrows=4, log_sm=True)

_STN_KEYS = ["l1_we", "l1_be", "l1_rs0", "l1_rs1", "l1_cs0", "l1_cs1",
             "l2_we", "l2_be", "l2_rs0", "l2_rs1", "l2_cs0", "l2_cs1",
             "fl1_w", "fl1_b", "fl2_w", "fl2_b"]
_CLS_KEYS = ["c1_we", "c1_be", "c1_rs0", "c1_rs1", "c1_cs0", "c1_cs1",
             "c2_we", "c2_be", "c2_rs0", "c2_rs1", "c2_cs0", "c2_cs1",
             "fc1_w", "fc1_b", "fc2_w", "fc2_b"]


def _run_tower(x28, consts, out_lanes, cfg):
    n = x28.shape[0]
    kern = functools.partial(_tower_kernel, **cfg)
    in_specs = [pl.BlockSpec((1, 28, 28), lambda b: (b, 0, 0))]
    for c in consts:
        in_specs.append(pl.BlockSpec(c.shape, lambda b, z=(0,) * c.ndim: z))
    return pl.pallas_call(
        kern,
        out_shape=jax.ShapeDtypeStruct((n, 1, out_lanes), jnp.float32),
        grid=(n,),
        in_specs=in_specs,
        out_specs=pl.BlockSpec((1, 1, out_lanes), lambda b: (b, 0, 0)),
        compiler_params=pltpu.CompilerParams(
            dimension_semantics=("parallel",)),
    )(x28, *consts)


# ----------------- fused affine_grid + grid_sample kernel -------------------

_TILE = 128
_NT = 7          # 7 * 128 = 896 >= 28*28 output positions (padded)


def _grid_sample_kernel(x_ref, theta_ref, o_ref):
    t = pl.program_id(1)
    th = theta_ref[0]                                        # (1, 8) f32
    t00 = th[:, 0:1]; t01 = th[:, 1:2]; t02 = th[:, 2:3]
    t10 = th[:, 3:4]; t11 = th[:, 4:5]; t12 = th[:, 5:6]

    img = x_ref[0]                                           # (28, 28) f32

    # output flat index for this 128-lane tile
    jf = (lax.broadcasted_iota(jnp.int32, (1, _TILE), 1).astype(jnp.float32)
          + (t * _TILE).astype(jnp.float32))
    ohf = jnp.floor(jf * (1.0 / 28.0) + 1e-4)
    owf = jf - ohf * 28.0

    # F.affine_grid / F.grid_sample (align_corners=False, zeros padding)
    xs = (owf + 0.5) * (2.0 / 28.0) - 1.0
    ys = (ohf + 0.5) * (2.0 / 28.0) - 1.0
    gx = t00 * xs + t01 * ys + t02
    gy = t10 * xs + t11 * ys + t12
    ix = (gx + 1.0) * 14.0 - 0.5
    iy = (gy + 1.0) * 14.0 - 0.5
    ix0 = jnp.floor(ix)
    iy0 = jnp.floor(iy)
    wx1 = ix - ix0
    wy1 = iy - iy0

    ridx = lax.broadcasted_iota(jnp.int32, (28, _TILE), 0).astype(jnp.float32)
    acc = jnp.zeros((28, _TILE), jnp.float32)
    for dy, wy in ((0.0, 1.0 - wy1), (1.0, wy1)):
        for dx, wx in ((0.0, 1.0 - wx1), (1.0, wx1)):
            cy = iy0 + dy
            cx = ix0 + dx
            valid = ((cx >= 0.0) & (cx <= 27.0) &
                     (cy >= 0.0) & (cy <= 27.0))
            w = wy * wx * valid.astype(jnp.float32)          # (1, T)
            rowsel = (ridx == jnp.clip(cy, 0.0, 27.0)).astype(jnp.float32)
            colsel = (ridx == jnp.clip(cx, 0.0, 27.0)).astype(jnp.float32) * w
            # img @ colsel picks column cx (weighted); rowsel picks row cy.
            acc = acc + rowsel * jnp.dot(img, colsel,
                                         preferred_element_type=jnp.float32)
    o_ref[0] = jnp.dot(jnp.ones((1, 28), jnp.float32), acc,
                       preferred_element_type=jnp.float32)


def _grid_sample(x28, theta):
    n = x28.shape[0]
    return pl.pallas_call(
        _grid_sample_kernel,
        out_shape=jax.ShapeDtypeStruct((n, 1, _NT * _TILE), jnp.float32),
        grid=(n, _NT),
        in_specs=[pl.BlockSpec((1, 28, 28), lambda b, t: (b, 0, 0)),
                  pl.BlockSpec((1, 1, 8), lambda b, t: (b, 0, 0))],
        out_specs=pl.BlockSpec((1, 1, _TILE), lambda b, t: (b, 0, t)),
        compiler_params=pltpu.CompilerParams(
            dimension_semantics=("parallel", "parallel")),
    )(x28, theta)


# ------------------------- host-side weight prep ----------------------------

def _expand_conv(w, w_in):
    """(O, C, k, k) -> (k, W*C, OW*O) banded row-conv matrices (c/o minor)."""
    o_n, c_n, k, _ = w.shape
    ow_n = w_in - k + 1
    we = np.zeros((k, w_in * c_n, ow_n * o_n), np.float32)
    for kh in range(k):
        for ow in range(ow_n):
            for kw in range(k):
                we[kh, (ow + kw) * c_n:(ow + kw + 1) * c_n,
                   ow * o_n:(ow + 1) * o_n] = w[:, :, kh, kw].T
    return we


def _expand_bias(b, ow_n):
    return np.tile(np.asarray(b, np.float32), ow_n)[None, :]


def _pool_row_sel(oh, hp):
    rs0 = np.zeros((hp, oh), np.float32)
    rs1 = np.zeros((hp, oh), np.float32)
    for p in range(hp):
        rs0[p, 2 * p] = 1.0
        rs1[p, 2 * p + 1] = 1.0
    return rs0, rs1


def _pool_col_sel(ow_n, wp, o_n):
    cs0 = np.zeros((ow_n * o_n, wp * o_n), np.float32)
    cs1 = np.zeros((ow_n * o_n, wp * o_n), np.float32)
    for pw in range(wp):
        for c in range(o_n):
            cs0[(2 * pw) * o_n + c, pw * o_n + c] = 1.0
            cs1[(2 * pw + 1) * o_n + c, pw * o_n + c] = 1.0
    return cs0, cs1


def _absorb_flatten_fc(fc_w, hp, wp, c_n):
    """Absorb PyTorch (C,H,W) flatten order into per-row FC weights."""
    m = fc_w.shape[0]
    we = np.zeros((hp, wp * c_n, m), np.float32)
    for h in range(hp):
        for w_ in range(wp):
            for c in range(c_n):
                we[h, w_ * c_n + c, :] = fc_w[:, c * hp * wp + h * wp + w_]
    return we


def init_params(key):
    """PyTorch-default init of the raw SpatialTransformer parameters."""
    def u(k, shape, fan_in):
        bound = 1.0 / jnp.sqrt(jnp.float32(fan_in))
        return jax.random.uniform(k, shape, jnp.float32, -bound, bound)

    ks = jax.random.split(key, 14)
    return {
        "conv1_w": u(ks[0], (10, 1, 5, 5), 25),
        "conv1_b": u(ks[1], (10,), 25),
        "conv2_w": u(ks[2], (20, 10, 5, 5), 250),
        "conv2_b": u(ks[3], (20,), 250),
        "fc1_w": u(ks[4], (50, 320), 320),
        "fc1_b": u(ks[5], (50,), 320),
        "fc2_w": u(ks[6], (10, 50), 50),
        "fc2_b": u(ks[7], (10,), 50),
        "loc_conv1_w": u(ks[8], (8, 1, 7, 7), 49),
        "loc_conv1_b": u(ks[9], (8,), 49),
        "loc_conv2_w": u(ks[10], (10, 8, 5, 5), 200),
        "loc_conv2_b": u(ks[11], (10,), 200),
        "fc_loc1_w": u(ks[12], (32, 90), 90),
        "fc_loc1_b": u(ks[13], (32,), 90),
        # fc_loc[2]: weight zeroed, bias = identity affine (as in __init__)
        "fc_loc2_w": jnp.zeros((6, 32), jnp.float32),
        "fc_loc2_b": jnp.array([1, 0, 0, 0, 1, 0], jnp.float32),
    }


def prepare_params(raw):
    r = {k: np.asarray(v, np.float32) for k, v in raw.items()}
    p = {}

    def put(prefix, we, be, rs, cs):
        p[prefix + "_we"] = jnp.asarray(we, jnp.bfloat16)
        p[prefix + "_be"] = jnp.asarray(be, jnp.float32)
        p[prefix + "_rs0"] = jnp.asarray(rs[0], jnp.float32)
        p[prefix + "_rs1"] = jnp.asarray(rs[1], jnp.float32)
        p[prefix + "_cs0"] = jnp.asarray(cs[0], jnp.float32)
        p[prefix + "_cs1"] = jnp.asarray(cs[1], jnp.float32)

    # localization tower: 28 -> conv7 (22) -> pool (11) -> conv5 (7) -> pool (3)
    put("l1", _expand_conv(r["loc_conv1_w"], 28),
        _expand_bias(r["loc_conv1_b"], 22),
        _pool_row_sel(22, 11), _pool_col_sel(22, 11, 8))
    put("l2", _expand_conv(r["loc_conv2_w"], 11),
        _expand_bias(r["loc_conv2_b"], 7),
        _pool_row_sel(7, 3), _pool_col_sel(7, 3, 10))
    p["fl1_w"] = jnp.asarray(_absorb_flatten_fc(r["fc_loc1_w"], 3, 3, 10),
                             jnp.bfloat16)
    p["fl1_b"] = jnp.asarray(r["fc_loc1_b"][None, :], jnp.float32)
    fl2 = np.zeros((32, 8), np.float32)
    fl2[:, :6] = r["fc_loc2_w"].T
    fl2b = np.zeros((1, 8), np.float32)
    fl2b[0, :6] = r["fc_loc2_b"]
    p["fl2_w"] = jnp.asarray(fl2, jnp.bfloat16)
    p["fl2_b"] = jnp.asarray(fl2b, jnp.float32)

    # classifier tower: 28 -> conv5 (24) -> pool (12) -> conv5 (8) -> pool (4)
    put("c1", _expand_conv(r["conv1_w"], 28),
        _expand_bias(r["conv1_b"], 24),
        _pool_row_sel(24, 12), _pool_col_sel(24, 12, 10))
    put("c2", _expand_conv(r["conv2_w"], 12),
        _expand_bias(r["conv2_b"], 8),
        _pool_row_sel(8, 4), _pool_col_sel(8, 4, 20))
    p["fc1_w"] = jnp.asarray(_absorb_flatten_fc(r["fc1_w"], 4, 4, 20),
                             jnp.bfloat16)
    p["fc1_b"] = jnp.asarray(r["fc1_b"][None, :], jnp.float32)
    fc2 = np.zeros((50, 128), np.float32)
    fc2[:, :10] = r["fc2_w"].T
    fc2b = np.full((1, 128), -1e30, np.float32)     # mask pad lanes in softmax
    fc2b[0, :10] = r["fc2_b"]
    p["fc2_w"] = jnp.asarray(fc2, jnp.bfloat16)
    p["fc2_b"] = jnp.asarray(fc2b, jnp.float32)
    return p


# --------------------------------- forward ----------------------------------

def forward(params, x):
    n = x.shape[0]
    x28 = x.reshape(n, 28, 28)

    # stn: localization + fc_loc -> theta (one fused kernel)
    theta = _run_tower(x28, [params[k] for k in _STN_KEYS], 8, _STN_CFG)

    # affine_grid + grid_sample (one fused kernel, MXU one-hot sampling)
    xw = _grid_sample(x28, theta)
    xw = xw[:, 0, :784].reshape(n, 28, 28)

    # classifier tower + fc head + log_softmax (one fused kernel)
    out = _run_tower(xw, [params[k] for k in _CLS_KEYS], 128, _CLS_CFG)
    return out[:, 0, :10]


if __name__ == "__main__":
    key = jax.random.PRNGKey(0)
    pkey, xkey = jax.random.split(key)
    params = prepare_params(init_params(pkey))
    # The module hard-codes 320 = 20*4*4 and 90 = 10*3*3 -> 28x28 input.
    x = jax.random.normal(xkey, (2, 1, 28, 28), jnp.float32)

    out = jax.block_until_ready(jax.jit(forward)(params, x))

    assert out.shape == (2, 10)
    assert bool(jnp.all(jnp.isfinite(out)))
    assert bool(jnp.allclose(jnp.sum(jnp.exp(out), axis=1), 1.0, atol=1e-3))
    print("KERNEL_OK")
</pallas_src>

<mosaic_0001>
module attributes {stable_mosaic.version = 11 : i64} {
  func.func @_grid_sample_kernel(%arg0: i32, %arg1: i32, %arg2: memref<1x28x28xf32, #tpu.memory_space<vmem>>, %arg3: memref<1x1x8xf32, #tpu.memory_space<vmem>>, %arg4: memref<1x1x128xf32, #tpu.memory_space<vmem>>) attributes {dimension_semantics = [#tpu.dimension_semantics<parallel>, #tpu.dimension_semantics<parallel>], iteration_bounds = array<i64: 2, 7>, scalar_prefetch = 0 : i64, scratch_operands = 0 : i64, tpu.core_type = #tpu.core_type<tc>, window_params = [{transform_indices = @transform_0, window_bounds = array<i64: 1, 28, 28>}, {transform_indices = @transform_1, window_bounds = array<i64: 1, 1, 8>}, {transform_indices = @transform_2, window_bounds = array<i64: 1, 1, 128>}]} {
    %c0 = arith.constant 0 : index
    %c0_0 = arith.constant 0 : index
    %c0_1 = arith.constant 0 : index
    %0 = vector.load %arg3[%c0, %c0_0, %c0_1] : memref<1x1x8xf32, #tpu.memory_space<vmem>>, vector<1x1x8xf32>
    %1 = vector.shape_cast %0 : vector<1x1x8xf32> to vector<1x8xf32>
    %2 = vector.extract_strided_slice %1 {offsets = [0, 0], sizes = [1, 1], strides = [1, 1]} : vector<1x8xf32> to vector<1x1xf32>
    %3 = vector.extract_strided_slice %1 {offsets = [0, 1], sizes = [1, 1], strides = [1, 1]} : vector<1x8xf32> to vector<1x1xf32>
    %4 = vector.extract_strided_slice %1 {offsets = [0, 2], sizes = [1, 1], strides = [1, 1]} : vector<1x8xf32> to vector<1x1xf32>
    %5 = vector.extract_strided_slice %1 {offsets = [0, 3], sizes = [1, 1], strides = [1, 1]} : vector<1x8xf32> to vector<1x1xf32>
    %6 = vector.extract_strided_slice %1 {offsets = [0, 4], sizes = [1, 1], strides = [1, 1]} : vector<1x8xf32> to vector<1x1xf32>
    %7 = vector.extract_strided_slice %1 {offsets = [0, 5], sizes = [1, 1], strides = [1, 1]} : vector<1x8xf32> to vector<1x1xf32>
    %c0_2 = arith.constant 0 : index
    %c0_3 = arith.constant 0 : index
    %c0_4 = arith.constant 0 : index
    %8 = vector.load %arg2[%c0_2, %c0_3, %c0_4] : memref<1x28x28xf32, #tpu.memory_space<vmem>>, vector<1x28x28xf32>
    %9 = vector.shape_cast %8 : vector<1x28x28xf32> to vector<28x28xf32>
    %10 = tpu.iota {dimensions = array<i32: 1>} : vector<1x128xi32>
    %11 = arith.sitofp %10 : vector<1x128xi32> to vector<1x128xf32>
    %c128_i32 = arith.constant 128 : i32
    %12 = arith.muli %arg1, %c128_i32 : i32
    %13 = arith.sitofp %12 : i32 to f32
    %14 = vector.broadcast %13 : f32 to vector<1x128xf32>
    %15 = arith.addf %11, %14 : vector<1x128xf32>
    %cst = arith.constant 0.0357142873 : f32
    %16 = vector.broadcast %cst : f32 to vector<1x128xf32>
    %17 = arith.mulf %15, %16 : vector<1x128xf32>
    %cst_5 = arith.constant 9.99999974E-5 : f32
    %18 = vector.broadcast %cst_5 : f32 to vector<1x128xf32>
    %19 = arith.addf %17, %18 : vector<1x128xf32>
    %20 = math.floor %19 : vector<1x128xf32>
    %cst_6 = arith.constant 2.800000e+01 : f32
    %21 = vector.broadcast %cst_6 : f32 to vector<1x128xf32>
    %22 = arith.mulf %20, %21 : vector<1x128xf32>
    %23 = arith.subf %15, %22 : vector<1x128xf32>
    %cst_7 = arith.constant 5.000000e-01 : f32
    %24 = vector.broadcast %cst_7 : f32 to vector<1x128xf32>
    %25 = arith.addf %23, %24 : vector<1x128xf32>
    %cst_8 = arith.constant 0.0714285746 : f32
    %26 = vector.broadcast %cst_8 : f32 to vector<1x128xf32>
    %27 = arith.mulf %25, %26 : vector<1x128xf32>
    %cst_9 = arith.constant 1.000000e+00 : f32
    %28 = vector.broadcast %cst_9 : f32 to vector<1x128xf32>
    %29 = arith.subf %27, %28 : vector<1x128xf32>
    %cst_10 = arith.constant 5.000000e-01 : f32
    %30 = vector.broadcast %cst_10 : f32 to vector<1x128xf32>
    %31 = arith.addf %20, %30 : vector<1x128xf32>
    %cst_11 = arith.constant 0.0714285746 : f32
    %32 = vector.broadcast %cst_11 : f32 to vector<1x128xf32>
    %33 = arith.mulf %31, %32 : vector<1x128xf32>
    %cst_12 = arith.constant 1.000000e+00 : f32
    %34 = vector.broadcast %cst_12 : f32 to vector<1x128xf32>
    %35 = arith.subf %33, %34 : vector<1x128xf32>
    %36 = vector.broadcast %2 : vector<1x1xf32> to vector<1x128xf32>
    %37 = arith.mulf %36, %29 : vector<1x128xf32>
    %38 = vector.broadcast %3 : vector<1x1xf32> to vector<1x128xf32>
    %39 = arith.mulf %38, %35 : vector<1x128xf32>
    %40 = arith.addf %37, %39 : vector<1x128xf32>
    %41 = vector.broadcast %4 : vector<1x1xf32> to vector<1x128xf32>
    %42 = arith.addf %40, %41 : vector<1x128xf32>
    %43 = vector.broadcast %5 : vector<1x1xf32> to vector<1x128xf32>
    %44 = arith.mulf %43, %29 : vector<1x128xf32>
    %45 = vector.broadcast %6 : vector<1x1xf32> to vector<1x128xf32>
    %46 = arith.mulf %45, %35 : vector<1x128xf32>
    %47 = arith.addf %44, %46 : vector<1x128xf32>
    %48 = vector.broadcast %7 : vector<1x1xf32> to vector<1x128xf32>
    %49 = arith.addf %47, %48 : vector<1x128xf32>
    %cst_13 = arith.constant 1.000000e+00 : f32
    %50 = vector.broadcast %cst_13 : f32 to vector<1x128xf32>
    %51 = arith.addf %42, %50 : vector<1x128xf32>
    %cst_14 = arith.constant 1.400000e+01 : f32
    %52 = vector.broadcast %cst_14 : f32 to vector<1x128xf32>
    %53 = arith.mulf %51, %52 : vector<1x128xf32>
    %cst_15 = arith.constant 5.000000e-01 : f32
    %54 = vector.broadcast %cst_15 : f32 to vector<1x128xf32>
    %55 = arith.subf %53, %54 : vector<1x128xf32>
    %cst_16 = arith.constant 1.000000e+00 : f32
    %56 = vector.broadcast %cst_16 : f32 to vector<1x128xf32>
    %57 = arith.addf %49, %56 : vector<1x128xf32>
    %cst_17 = arith.constant 1.400000e+01 : f32
    %58 = vector.broadcast %cst_17 : f32 to vector<1x128xf32>
    %59 = arith.mulf %57, %58 : vector<1x128xf32>
    %cst_18 = arith.constant 5.000000e-01 : f32
    %60 = vector.broadcast %cst_18 : f32 to vector<1x128xf32>
    %61 = arith.subf %59, %60 : vector<1x128xf32>
    %62 = math.floor %55 : vector<1x128xf32>
    %63 = math.floor %61 : vector<1x128xf32>
    %64 = arith.subf %55, %62 : vector<1x128xf32>
    %65 = arith.subf %61, %63 : vector<1x128xf32>
    %66 = tpu.iota {dimensions = array<i32: 0>} : vector<28x128xi32>
    %67 = arith.sitofp %66 : vector<28x128xi32> to vector<28x128xf32>
    %cst_19 = arith.constant 0.000000e+00 : f32
    %68 = vector.broadcast %cst_19 : f32 to vector<28x128xf32>
    %cst_20 = arith.constant 1.000000e+00 : f32
    %69 = vector.broadcast %cst_20 : f32 to vector<1x128xf32>
    %70 = arith.subf %69, %65 : vector<1x128xf32>
    %cst_21 = arith.constant 1.000000e+00 : f32
    %71 = vector.broadcast %cst_21 : f32 to vector<1x128xf32>
    %72 = arith.subf %71, %64 : vector<1x128xf32>
    %cst_22 = arith.constant 0.000000e+00 : f32
    %73 = vector.broadcast %cst_22 : f32 to vector<1x128xf32>
    %74 = arith.addf %63, %73 : vector<1x128xf32>
    %cst_23 = arith.constant 0.000000e+00 : f32
    %75 = vector.broadcast %cst_23 : f32 to vector<1x128xf32>
    %76 = arith.addf %62, %75 : vector<1x128xf32>
    %cst_24 = arith.constant 0.000000e+00 : f32
    %77 = vector.broadcast %cst_24 : f32 to vector<1x128xf32>
    %78 = arith.cmpf oge, %76, %77 : vector<1x128xf32>
    %cst_25 = arith.constant 2.700000e+01 : f32
    %79 = vector.broadcast %cst_25 : f32 to vector<1x128xf32>
    %80 = arith.cmpf ole, %76, %79 : vector<1x128xf32>
    %81 = arith.andi %78, %80 : vector<1x128xi1>
    %cst_26 = arith.constant 0.000000e+00 : f32
    %82 = vector.broadcast %cst_26 : f32 to vector<1x128xf32>
    %83 = arith.cmpf oge, %74, %82 : vector<1x128xf32>
    %84 = arith.andi %81, %83 : vector<1x128xi1>
    %cst_27 = arith.constant 2.700000e+01 : f32
    %85 = vector.broadcast %cst_27 : f32 to vector<1x128xf32>
    %86 = arith.cmpf ole, %74, %85 : vector<1x128xf32>
    %87 = arith.andi %84, %86 : vector<1x128xi1>
    %88 = arith.mulf %70, %72 : vector<1x128xf32>
    %89 = arith.extui %87 : vector<1x128xi1> to vector<1x128xi32>
    %90 = arith.sitofp %89 : vector<1x128xi32> to vector<1x128xf32>
    %91 = arith.mulf %88, %90 : vector<1x128xf32>
    %cst_28 = arith.constant 0.000000e+00 : f32
    %cst_29 = arith.constant 2.700000e+01 : f32
    %92 = vector.broadcast %cst_28 : f32 to vector<1x128xf32>
    %93 = arith.maximumf %92, %74 : vector<1x128xf32>
    %94 = vector.broadcast %cst_29 : f32 to vector<1x128xf32>
    %95 = arith.minimumf %94, %93 : vector<1x128xf32>
    %96 = vector.broadcast %95 : vector<1x128xf32> to vector<28x128xf32>
    %97 = arith.cmpf oeq, %67, %96 : vector<28x128xf32>
    %98 = arith.extui %97 : vector<28x128xi1> to vector<28x128xi32>
    %99 = arith.sitofp %98 : vector<28x128xi32> to vector<28x128xf32>
    %cst_30 = arith.constant 0.000000e+00 : f32
    %cst_31 = arith.constant 2.700000e+01 : f32
    %100 = vector.broadcast %cst_30 : f32 to vector<1x128xf32>
    %101 = arith.maximumf %100, %76 : vector<1x128xf32>
    %102 = vector.broadcast %cst_31 : f32 to vector<1x128xf32>
    %103 = arith.minimumf %102, %101 : vector<1x128xf32>
    %104 = vector.broadcast %103 : vector<1x128xf32> to vector<28x128xf32>
    %105 = arith.cmpf oeq, %67, %104 : vector<28x128xf32>
    %106 = arith.extui %105 : vector<28x128xi1> to vector<28x128xi32>
    %107 = arith.sitofp %106 : vector<28x128xi32> to vector<28x128xf32>
    %108 = vector.broadcast %91 : vector<1x128xf32> to vector<28x128xf32>
    %109 = arith.mulf %107, %108 : vector<28x128xf32>
    %cst_32 = arith.constant dense<0.000000e+00> : vector<28x128xf32>
    %110 = tpu.matmul %9, %109, %cst_32 {dimension_numbers = #tpu.dot_dimension_numbers<[1], [0], [0], [1], [0, 0, 1, 1], [], []>} : vector<28x28xf32>, vector<28x128xf32>, vector<28x128xf32> -> vector<28x128xf32>
    %111 = arith.mulf %99, %110 : vector<28x128xf32>
    %112 = arith.addf %68, %111 : vector<28x128xf32>
    %cst_33 = arith.constant 0.000000e+00 : f32
    %113 = vector.broadcast %cst_33 : f32 to vector<1x128xf32>
    %114 = arith.addf %63, %113 : vector<1x128xf32>
    %cst_34 = arith.constant 1.000000e+00 : f32
    %115 = vector.broadcast %cst_34 : f32 to vector<1x128xf32>
    %116 = arith.addf %62, %115 : vector<1x128xf32>
    %cst_35 = arith.constant 0.000000e+00 : f32
    %117 = vector.broadcast %cst_35 : f32 to vector<1x128xf32>
    %118 = arith.cmpf oge, %116, %117 : vector<1x128xf32>
    %cst_36 = arith.constant 2.700000e+01 : f32
    %119 = vector.broadcast %cst_36 : f32 to vector<1x128xf32>
    %120 = arith.cmpf ole, %116, %119 : vector<1x128xf32>
    %121 = arith.andi %118, %120 : vector<1x128xi1>
    %cst_37 = arith.constant 0.000000e+00 : f32
    %122 = vector.broadcast %cst_37 : f32 to vector<1x128xf32>
    %123 = arith.cmpf oge, %114, %122 : vector<1x128xf32>
    %124 = arith.andi %121, %123 : vector<1x128xi1>
    %cst_38 = arith.constant 2.700000e+01 : f32
    %125 = vector.broadcast %cst_38 : f32 to vector<1x128xf32>
    %126 = arith.cmpf ole, %114, %125 : vector<1x128xf32>
    %127 = arith.andi %124, %126 : vector<1x128xi1>
    %128 = arith.mulf %70, %64 : vector<1x128xf32>
    %129 = arith.extui %127 : vector<1x128xi1> to vector<1x128xi32>
    %130 = arith.sitofp %129 : vector<1x128xi32> to vector<1x128xf32>
    %131 = arith.mulf %128, %130 : vector<1x128xf32>
    %cst_39 = arith.constant 0.000000e+00 : f32
    %cst_40 = arith.constant 2.700000e+01 : f32
    %132 = vector.broadcast %cst_39 : f32 to vector<1x128xf32>
    %133 = arith.maximumf %132, %114 : vector<1x128xf32>
    %134 = vector.broadcast %cst_40 : f32 to vector<1x128xf32>
    %135 = arith.minimumf %134, %133 : vector<1x128xf32>
    %136 = vector.broadcast %135 : vector<1x128xf32> to vector<28x128xf32>
    %137 = arith.cmpf oeq, %67, %136 : vector<28x128xf32>
    %138 = arith.extui %137 : vector<28x128xi1> to vector<28x128xi32>
    %139 = arith.sitofp %138 : vector<28x128xi32> to vector<28x128xf32>
    %cst_41 = arith.constant 0.000000e+00 : f32
    %cst_42 = arith.constant 2.700000e+01 : f32
    %140 = vector.broadcast %cst_41 : f32 to vector<1x128xf32>
    %141 = arith.maximumf %140, %116 : vector<1x128xf32>
    %142 = vector.broadcast %cst_42 : f32 to vector<1x128xf32>
    %143 = arith.minimumf %142, %141 : vector<1x128xf32>
    %144 = vector.broadcast %143 : vector<1x128xf32> to vector<28x128xf32>
    %145 = arith.cmpf oeq, %67, %144 : vector<28x128xf32>
    %146 = arith.extui %145 : vector<28x128xi1> to vector<28x128xi32>
    %147 = arith.sitofp %146 : vector<28x128xi32> to vector<28x128xf32>
    %148 = vector.broadcast %131 : vector<1x128xf32> to vector<28x128xf32>
    %149 = arith.mulf %147, %148 : vector<28x128xf32>
    %cst_43 = arith.constant dense<0.000000e+00> : vector<28x128xf32>
    %150 = tpu.matmul %9, %149, %cst_43 {dimension_numbers = #tpu.dot_dimension_numbers<[1], [0], [0], [1], [0, 0, 1, 1], [], []>} : vector<28x28xf32>, vector<28x128xf32>, vector<28x128xf32> -> vector<28x128xf32>
    %151 = arith.mulf %139, %150 : vector<28x128xf32>
    %152 = arith.addf %112, %151 : vector<28x128xf32>
    %cst_44 = arith.constant 1.000000e+00 : f32
    %153 = vector.broadcast %cst_44 : f32 to vector<1x128xf32>
    %154 = arith.subf %153, %64 : vector<1x128xf32>
    %cst_45 = arith.constant 1.000000e+00 : f32
    %155 = vector.broadcast %cst_45 : f32 to vector<1x128xf32>
    %156 = arith.addf %63, %155 : vector<1x128xf32>
    %cst_46 = arith.constant 0.000000e+00 : f32
    %157 = vector.broadcast %cst_46 : f32 to vector<1x128xf32>
    %158 = arith.addf %62, %157 : vector<1x128xf32>
    %cst_47 = arith.constant 0.000000e+00 : f32
    %159 = vector.broadcast %cst_47 : f32 to vector<1x128xf32>
    %160 = arith.cmpf oge, %158, %159 : vector<1x128xf32>
    %cst_48 = arith.constant 2.700000e+01 : f32
    %161 = vector.broadcast %cst_48 : f32 to vector<1x128xf32>
    %162 = arith.cmpf ole, %158, %161 : vector<1x128xf32>
    %163 = arith.andi %160, %162 : vector<1x128xi1>
    %cst_49 = arith.constant 0.000000e+00 : f32
    %164 = vector.broadcast %cst_49 : f32 to vector<1x128xf32>
    %165 = arith.cmpf oge, %156, %164 : vector<1x128xf32>
    %166 = arith.andi %163, %165 : vector<1x128xi1>
    %cst_50 = arith.constant 2.700000e+01 : f32
    %167 = vector.broadcast %cst_50 : f32 to vector<1x128xf32>
    %168 = arith.cmpf ole, %156, %167 : vector<1x128xf32>
    %169 = arith.andi %166, %168 : vector<1x128xi1>
    %170 = arith.mulf %65, %154 : vector<1x128xf32>
    %171 = arith.extui %169 : vector<1x128xi1> to vector<1x128xi32>
    %172 = arith.sitofp %171 : vector<1x128xi32> to vector<1x128xf32>
    %173 = arith.mulf %170, %172 : vector<1x128xf32>
    %cst_51 = arith.constant 0.000000e+00 : f32
    %cst_52 = arith.constant 2.700000e+01 : f32
    %174 = vector.broadcast %cst_51 : f32 to vector<1x128xf32>
    %175 = arith.maximumf %174, %156 : vector<1x128xf32>
    %176 = vector.broadcast %cst_52 : f32 to vector<1x128xf32>
    %177 = arith.minimumf %176, %175 : vector<1x128xf32>
    %178 = vector.broadcast %177 : vector<1x128xf32> to vector<28x128xf32>
    %179 = arith.cmpf oeq, %67, %178 : vector<28x128xf32>
    %180 = arith.extui %179 : vector<28x128xi1> to vector<28x128xi32>
    %181 = arith.sitofp %180 : vector<28x128xi32> to vector<28x128xf32>
    %cst_53 = arith.constant 0.000000e+00 : f32
    %cst_54 = arith.constant 2.700000e+01 : f32
    %182 = vector.broadcast %cst_53 : f32 to vector<1x128xf32>
    %183 = arith.maximumf %182, %158 : vector<1x128xf32>
    %184 = vector.broadcast %cst_54 : f32 to vector<1x128xf32>
    %185 = arith.minimumf %184, %183 : vector<1x128xf32>
    %186 = vector.broadcast %185 : vector<1x128xf32> to vector<28x128xf32>
    %187 = arith.cmpf oeq, %67, %186 : vector<28x128xf32>
    %188 = arith.extui %187 : vector<28x128xi1> to vector<28x128xi32>
    %189 = arith.sitofp %188 : vector<28x128xi32> to vector<28x128xf32>
    %190 = vector.broadcast %173 : vector<1x128xf32> to vector<28x128xf32>
    %191 = arith.mulf %189, %190 : vector<28x128xf32>
    %cst_55 = arith.constant dense<0.000000e+00> : vector<28x128xf32>
    %192 = tpu.matmul %9, %191, %cst_55 {dimension_numbers = #tpu.dot_dimension_numbers<[1], [0], [0], [1], [0, 0, 1, 1], [], []>} : vector<28x28xf32>, vector<28x128xf32>, vector<28x128xf32> -> vector<28x128xf32>
    %193 = arith.mulf %181, %192 : vector<28x128xf32>
    %194 = arith.addf %152, %193 : vector<28x128xf32>
    %cst_56 = arith.constant 1.000000e+00 : f32
    %195 = vector.broadcast %cst_56 : f32 to vector<1x128xf32>
    %196 = arith.addf %63, %195 : vector<1x128xf32>
    %cst_57 = arith.constant 1.000000e+00 : f32
    %197 = vector.broadcast %cst_57 : f32 to vector<1x128xf32>
    %198 = arith.addf %62, %197 : vector<1x128xf32>
    %cst_58 = arith.constant 0.000000e+00 : f32
    %199 = vector.broadcast %cst_58 : f32 to vector<1x128xf32>
    %200 = arith.cmpf oge, %198, %199 : vector<1x128xf32>
    %cst_59 = arith.constant 2.700000e+01 : f32
    %201 = vector.broadcast %cst_59 : f32 to vector<1x128xf32>
    %202 = arith.cmpf ole, %198, %201 : vector<1x128xf32>
    %203 = arith.andi %200, %202 : vector<1x128xi1>
    %cst_60 = arith.constant 0.000000e+00 : f32
    %204 = vector.broadcast %cst_60 : f32 to vector<1x128xf32>
    %205 = arith.cmpf oge, %196, %204 : vector<1x128xf32>
    %206 = arith.andi %203, %205 : vector<1x128xi1>
    %cst_61 = arith.constant 2.700000e+01 : f32
    %207 = vector.broadcast %cst_61 : f32 to vector<1x128xf32>
    %208 = arith.cmpf ole, %196, %207 : vector<1x128xf32>
    %209 = arith.andi %206, %208 : vector<1x128xi1>
    %210 = arith.mulf %65, %64 : vector<1x128xf32>
    %211 = arith.extui %209 : vector<1x128xi1> to vector<1x128xi32>
    %212 = arith.sitofp %211 : vector<1x128xi32> to vector<1x128xf32>
    %213 = arith.mulf %210, %212 : vector<1x128xf32>
    %cst_62 = arith.constant 0.000000e+00 : f32
    %cst_63 = arith.constant 2.700000e+01 : f32
    %214 = vector.broadcast %cst_62 : f32 to vector<1x128xf32>
    %215 = arith.maximumf %214, %196 : vector<1x128xf32>
    %216 = vector.broadcast %cst_63 : f32 to vector<1x128xf32>
    %217 = arith.minimumf %216, %215 : vector<1x128xf32>
    %218 = vector.broadcast %217 : vector<1x128xf32> to vector<28x128xf32>
    %219 = arith.cmpf oeq, %67, %218 : vector<28x128xf32>
    %220 = arith.extui %219 : vector<28x128xi1> to vector<28x128xi32>
    %221 = arith.sitofp %220 : vector<28x128xi32> to vector<28x128xf32>
    %cst_64 = arith.constant 0.000000e+00 : f32
    %cst_65 = arith.constant 2.700000e+01 : f32
    %222 = vector.broadcast %cst_64 : f32 to vector<1x128xf32>
    %223 = arith.maximumf %222, %198 : vector<1x128xf32>
    %224 = vector.broadcast %cst_65 : f32 to vector<1x128xf32>
    %225 = arith.minimumf %224, %223 : vector<1x128xf32>
    %226 = vector.broadcast %225 : vector<1x128xf32> to vector<28x128xf32>
    %227 = arith.cmpf oeq, %67, %226 : vector<28x128xf32>
    %228 = arith.extui %227 : vector<28x128xi1> to vector<28x128xi32>
    %229 = arith.sitofp %228 : vector<28x128xi32> to vector<28x128xf32>
    %230 = vector.broadcast %213 : vector<1x128xf32> to vector<28x128xf32>
    %231 = arith.mulf %229, %230 : vector<28x128xf32>
    %cst_66 = arith.constant dense<0.000000e+00> : vector<28x128xf32>
    %232 = tpu.matmul %9, %231, %cst_66 {dimension_numbers = #tpu.dot_dimension_numbers<[1], [0], [0], [1], [0, 0, 1, 1], [], []>} : vector<28x28xf32>, vector<28x128xf32>, vector<28x128xf32> -> vector<28x128xf32>
    %233 = arith.mulf %221, %232 : vector<28x128xf32>
    %234 = arith.addf %194, %233 : vector<28x128xf32>
    %cst_67 = arith.constant 1.000000e+00 : f32
    %235 = vector.broadcast %cst_67 : f32 to vector<1x28xf32>
    %cst_68 = arith.constant dense<0.000000e+00> : vector<1x128xf32>
    %236 = tpu.matmul %235, %234, %cst_68 {dimension_numbers = #tpu.dot_dimension_numbers<[1], [0], [0], [1], [0, 0, 1, 1], [], []>} : vector<1x28xf32>, vector<28x128xf32>, vector<1x128xf32> -> vector<1x128xf32>
    %c0_69 = arith.constant 0 : index
    %c0_70 = arith.constant 0 : index
    %c0_71 = arith.constant 0 : index
    %237 = vector.load %arg4[%c0_69, %c0_70, %c0_71] : memref<1x1x128xf32, #tpu.memory_space<vmem>>, vector<1x1x128xf32>
    %238 = vector.shape_cast %237 : vector<1x1x128xf32> to vector<1x128xf32>
    %239 = vector.shape_cast %236 : vector<1x128xf32> to vector<1x1x128xf32>
    tpu.vector_store %arg4[%c0_69, %c0_70, %c0_71], %239 {strides = array<i32>} : memref<1x1x128xf32, #tpu.memory_space<vmem>>, vector<1x1x128xf32>,
    return
  }
  func.func @transform_0(%arg0: i32, %arg1: i32) -> (i32, i32, i32) {
    %c0_i32 = arith.constant 0 : i32
    %c0_i32_0 = arith.constant 0 : i32
    %c0_i32_1 = arith.constant 0 : i32
    return %arg0, %c0_i32, %c0_i32_0 : i32, i32, i32
  }
  func.func @transform_1(%arg0: i32, %arg1: i32) -> (i32, i32, i32) {
    %c0_i32 = arith.constant 0 : i32
    %c0_i32_0 = arith.constant 0 : i32
    %c0_i32_1 = arith.constant 0 : i32
    return %arg0, %c0_i32, %c0_i32_0 : i32, i32, i32
  }
  func.func @transform_2(%arg0: i32, %arg1: i32) -> (i32, i32, i32) {
    %c0_i32 = arith.constant 0 : i32
    %c0_i32_0 = arith.constant 0 : i32
    return %arg0, %c0_i32, %arg1 : i32, i32, i32
  }
}

module attributes {stable_mosaic.version = 11 : i64} {
  func.func @_tower_kernel(%arg0: i32, %arg1: memref<1x28x28xf32, #tpu.memory_space<vmem>>, %arg2: memref<7x28x176xbf16, #tpu.memory_space<vmem>>, %arg3: memref<1x176xf32, #tpu.memory_space<vmem>>, %arg4: memref<11x22xf32, #tpu.memory_space<vmem>>, %arg5: memref<11x22xf32, #tpu.memory_space<vmem>>, %arg6: memref<176x88xf32, #tpu.memory_space<vmem>>, %arg7: memref<176x88xf32, #tpu.memory_space<vmem>>, %arg8: memref<5x88x70xbf16, #tpu.memory_space<vmem>>, %arg9: memref<1x70xf32, #tpu.memory_space<vmem>>, %arg10: memref<3x7xf32, #tpu.memory_space<vmem>>, %arg11: memref<3x7xf32, #tpu.memory_space<vmem>>, %arg12: memref<70x30xf32, #tpu.memory_space<vmem>>, %arg13: memref<70x30xf32, #tpu.memory_space<vmem>>, %arg14: memref<3x30x32xbf16, #tpu.memory_space<vmem>>, %arg15: memref<1x32xf32, #tpu.memory_space<vmem>>, %arg16: memref<32x8xbf16, #tpu.memory_space<vmem>>, %arg17: memref<1x8xf32, #tpu.memory_space<vmem>>, %arg18: memref<1x1x8xf32, #tpu.memory_space<vmem>>) attributes {dimension_semantics = [#tpu.dimension_semantics<parallel>], iteration_bounds = array<i64: 2>, scalar_prefetch = 0 : i64, scratch_operands = 0 : i64, tpu.core_type = #tpu.core_type<tc>, window_params = [{transform_indices = @transform_0, window_bounds = array<i64: 1, 28, 28>}, {pipeline_mode = #tpu.pipeline_mode<synchronous>, transform_indices = @transform_1, window_bounds = array<i64: 7, 28, 176>}, {pipeline_mode = #tpu.pipeline_mode<synchronous>, transform_indices = @transform_2, window_bounds = array<i64: 1, 176>}, {pipeline_mode = #tpu.pipeline_mode<synchronous>, transform_indices = @transform_3, window_bounds = array<i64: 11, 22>}, {pipeline_mode = #tpu.pipeline_mode<synchronous>, transform_indices = @transform_4, window_bounds = array<i64: 11, 22>}, {pipeline_mode = #tpu.pipeline_mode<synchronous>, transform_indices = @transform_5, window_bounds = array<i64: 176, 88>}, {pipeline_mode = #tpu.pipeline_mode<synchronous>, transform_indices = @transform_6, window_bounds = array<i64: 176, 88>}, {pipeline_mode = #tpu.pipeline_mode<synchronous>, transform_indices = @transform_7, window_bounds = array<i64: 5, 88, 70>}, {pipeline_mode = #tpu.pipeline_mode<synchronous>, transform_indices = @transform_8, window_bounds = array<i64: 1, 70>}, {pipeline_mode = #tpu.pipeline_mode<synchronous>, transform_indices = @transform_9, window_bounds = array<i64: 3, 7>}, {pipeline_mode = #tpu.pipeline_mode<synchronous>, transform_indices = @transform_10, window_bounds = array<i64: 3, 7>}, {pipeline_mode = #tpu.pipeline_mode<synchronous>, transform_indices = @transform_11, window_bounds = array<i64: 70, 30>}, {pipeline_mode = #tpu.pipeline_mode<synchronous>, transform_indices = @transform_12, window_bounds = array<i64: 70, 30>}, {pipeline_mode = #tpu.pipeline_mode<synchronous>, transform_indices = @transform_13, window_bounds = array<i64: 3, 30, 32>}, {pipeline_mode = #tpu.pipeline_mode<synchronous>, transform_indices = @transform_14, window_bounds = array<i64: 1, 32>}, {pipeline_mode = #tpu.pipeline_mode<synchronous>, transform_indices = @transform_15, window_bounds = array<i64: 32, 8>}, {pipeline_mode = #tpu.pipeline_mode<synchronous>, transform_indices = @transform_16, window_bounds = array<i64: 1, 8>}, {transform_indices = @transform_17, window_bounds = array<i64: 1, 1, 8>}]} {
    %c0 = arith.constant 0 : index
    %c0_0 = arith.constant 0 : index
    %c0_1 = arith.constant 0 : index
    %0 = vector.load %arg1[%c0, %c0_0, %c0_1] : memref<1x28x28xf32, #tpu.memory_space<vmem>>, vector<1x28x28xf32>
    %1 = vector.shape_cast %0 : vector<1x28x28xf32> to vector<28x28xf32>
    %2 = vector.extract_strided_slice %1 {offsets = [0, 0], sizes = [22, 28], strides = [1, 1]} : vector<28x28xf32> to vector<22x28xf32>
    %3 = arith.truncf %2 : vector<22x28xf32> to vector<22x28xbf16>
    %c0_2 = arith.constant 0 : index
    %c0_3 = arith.constant 0 : index
    %c0_4 = arith.constant 0 : index
    %4 = vector.load %arg2[%c0_2, %c0_3, %c0_4] : memref<7x28x176xbf16, #tpu.memory_space<vmem>>, vector<1x28x176xbf16>
    %5 = vector.shape_cast %4 : vector<1x28x176xbf16> to vector<28x176xbf16>
    %cst = arith.constant dense<0.000000e+00> : vector<22x176xf32>
    %6 = tpu.matmul %3, %5, %cst {dimension_numbers = #tpu.dot_dimension_numbers<[1], [0], [0], [1], [0, 0, 1, 1], [], []>} : vector<22x28xbf16>, vector<28x176xbf16>, vector<22x176xf32> -> vector<22x176xf32>
    %7 = vector.extract_strided_slice %1 {offsets = [1, 0], sizes = [22, 28], strides = [1, 1]} : vector<28x28xf32> to vector<22x28xf32>
    %8 = arith.truncf %7 : vector<22x28xf32> to vector<22x28xbf16>
    %c1 = arith.constant 1 : index
    %c0_5 = arith.constant 0 : index
    %c0_6 = arith.constant 0 : index
    %9 = vector.load %arg2[%c1, %c0_5, %c0_6] : memref<7x28x176xbf16, #tpu.memory_space<vmem>>, vector<1x28x176xbf16>
    %10 = vector.shape_cast %9 : vector<1x28x176xbf16> to vector<28x176xbf16>
    %cst_7 = arith.constant dense<0.000000e+00> : vector<22x176xf32>
    %11 = tpu.matmul %8, %10, %cst_7 {dimension_numbers = #tpu.dot_dimension_numbers<[1], [0], [0], [1], [0, 0, 1, 1], [], []>} : vector<22x28xbf16>, vector<28x176xbf16>, vector<22x176xf32> -> vector<22x176xf32>
    %12 = arith.addf %6, %11 : vector<22x176xf32>
    %13 = vector.extract_strided_slice %1 {offsets = [2, 0], sizes = [22, 28], strides = [1, 1]} : vector<28x28xf32> to vector<22x28xf32>
    %14 = arith.truncf %13 : vector<22x28xf32> to vector<22x28xbf16>
    %c2 = arith.constant 2 : index
    %c0_8 = arith.constant 0 : index
    %c0_9 = arith.constant 0 : index
    %15 = vector.load %arg2[%c2, %c0_8, %c0_9] : memref<7x28x176xbf16, #tpu.memory_space<vmem>>, vector<1x28x176xbf16>
    %16 = vector.shape_cast %15 : vector<1x28x176xbf16> to vector<28x176xbf16>
    %cst_10 = arith.constant dense<0.000000e+00> : vector<22x176xf32>
    %17 = tpu.matmul %14, %16, %cst_10 {dimension_numbers = #tpu.dot_dimension_numbers<[1], [0], [0], [1], [0, 0, 1, 1], [], []>} : vector<22x28xbf16>, vector<28x176xbf16>, vector<22x176xf32> -> vector<22x176xf32>
    %18 = arith.addf %12, %17 : vector<22x176xf32>
    %19 = vector.extract_strided_slice %1 {offsets = [3, 0], sizes = [22, 28], strides = [1, 1]} : vector<28x28xf32> to vector<22x28xf32>
    %20 = arith.truncf %19 : vector<22x28xf32> to vector<22x28xbf16>
    %c3 = arith.constant 3 : index
    %c0_11 = arith.constant 0 : index
    %c0_12 = arith.constant 0 : index
    %21 = vector.load %arg2[%c3, %c0_11, %c0_12] : memref<7x28x176xbf16, #tpu.memory_space<vmem>>, vector<1x28x176xbf16>
    %22 = vector.shape_cast %21 : vector<1x28x176xbf16> to vector<28x176xbf16>
    %cst_13 = arith.constant dense<0.000000e+00> : vector<22x176xf32>
    %23 = tpu.matmul %20, %22, %cst_13 {dimension_numbers = #tpu.dot_dimension_numbers<[1], [0], [0], [1], [0, 0, 1, 1], [], []>} : vector<22x28xbf16>, vector<28x176xbf16>, vector<22x176xf32> -> vector<22x176xf32>
    %24 = arith.addf %18, %23 : vector<22x176xf32>
    %25 = vector.extract_strided_slice %1 {offsets = [4, 0], sizes = [22, 28], strides = [1, 1]} : vector<28x28xf32> to vector<22x28xf32>
    %26 = arith.truncf %25 : vector<22x28xf32> to vector<22x28xbf16>
    %c4 = arith.constant 4 : index
    %c0_14 = arith.constant 0 : index
    %c0_15 = arith.constant 0 : index
    %27 = vector.load %arg2[%c4, %c0_14, %c0_15] : memref<7x28x176xbf16, #tpu.memory_space<vmem>>, vector<1x28x176xbf16>
    %28 = vector.shape_cast %27 : vector<1x28x176xbf16> to vector<28x176xbf16>
    %cst_16 = arith.constant dense<0.000000e+00> : vector<22x176xf32>
    %29 = tpu.matmul %26, %28, %cst_16 {dimension_numbers = #tpu.dot_dimension_numbers<[1], [0], [0], [1], [0, 0, 1, 1], [], []>} : vector<22x28xbf16>, vector<28x176xbf16>, vector<22x176xf32> -> vector<22x176xf32>
    %30 = arith.addf %24, %29 : vector<22x176xf32>
    %31 = vector.extract_strided_slice %1 {offsets = [5, 0], sizes = [22, 28], strides = [1, 1]} : vector<28x28xf32> to vector<22x28xf32>
    %32 = arith.truncf %31 : vector<22x28xf32> to vector<22x28xbf16>
    %c5 = arith.constant 5 : index
    %c0_17 = arith.constant 0 : index
    %c0_18 = arith.constant 0 : index
    %33 = vector.load %arg2[%c5, %c0_17, %c0_18] : memref<7x28x176xbf16, #tpu.memory_space<vmem>>, vector<1x28x176xbf16>
    %34 = vector.shape_cast %33 : vector<1x28x176xbf16> to vector<28x176xbf16>
    %cst_19 = arith.constant dense<0.000000e+00> : vector<22x176xf32>
    %35 = tpu.matmul %32, %34, %cst_19 {dimension_numbers = #tpu.dot_dimension_numbers<[1], [0], [0], [1], [0, 0, 1, 1], [], []>} : vector<22x28xbf16>, vector<28x176xbf16>, vector<22x176xf32> -> vector<22x176xf32>
    %36 = arith.addf %30, %35 : vector<22x176xf32>
    %37 = vector.extract_strided_slice %1 {offsets = [6, 0], sizes = [22, 28], strides = [1, 1]} : vector<28x28xf32> to vector<22x28xf32>
    %38 = arith.truncf %37 : vector<22x28xf32> to vector<22x28xbf16>
    %c6 = arith.constant 6 : index
    %c0_20 = arith.constant 0 : index
    %c0_21 = arith.constant 0 : index
    %39 = vector.load %arg2[%c6, %c0_20, %c0_21] : memref<7x28x176xbf16, #tpu.memory_space<vmem>>, vector<1x28x176xbf16>
    %40 = vector.shape_cast %39 : vector<1x28x176xbf16> to vector<28x176xbf16>
    %cst_22 = arith.constant dense<0.000000e+00> : vector<22x176xf32>
    %41 = tpu.matmul %38, %40, %cst_22 {dimension_numbers = #tpu.dot_dimension_numbers<[1], [0], [0], [1], [0, 0, 1, 1], [], []>} : vector<22x28xbf16>, vector<28x176xbf16>, vector<22x176xf32> -> vector<22x176xf32>
    %42 = arith.addf %36, %41 : vector<22x176xf32>
    %c0_23 = arith.constant 0 : index
    %c0_24 = arith.constant 0 : index
    %43 = vector.load %arg3[%c0_23, %c0_24] : memref<1x176xf32, #tpu.memory_space<vmem>>, vector<1x176xf32>
    %44 = vector.broadcast %43 : vector<1x176xf32> to vector<22x176xf32>
    %45 = arith.addf %42, %44 : vector<22x176xf32>
    %c0_25 = arith.constant 0 : index
    %c0_26 = arith.constant 0 : index
    %46 = vector.load %arg4[%c0_25, %c0_26] : memref<11x22xf32, #tpu.memory_space<vmem>>, vector<11x22xf32>
    %cst_27 = arith.constant dense<0.000000e+00> : vector<11x176xf32>
    %47 = tpu.matmul %46, %45, %cst_27 {dimension_numbers = #tpu.dot_dimension_numbers<[1], [0], [0], [1], [0, 0, 1, 1], [], []>} : vector<11x22xf32>, vector<22x176xf32>, vector<11x176xf32> -> vector<11x176xf32>
    %c0_28 = arith.constant 0 : index
    %c0_29 = arith.constant 0 : index
    %48 = vector.load %arg5[%c0_28, %c0_29] : memref<11x22xf32, #tpu.memory_space<vmem>>, vector<11x22xf32>
    %cst_30 = arith.constant dense<0.000000e+00> : vector<11x176xf32>
    %49 = tpu.matmul %48, %45, %cst_30 {dimension_numbers = #tpu.dot_dimension_numbers<[1], [0], [0], [1], [0, 0, 1, 1], [], []>} : vector<11x22xf32>, vector<22x176xf32>, vector<11x176xf32> -> vector<11x176xf32>
    %50 = arith.maximumf %47, %49 : vector<11x176xf32>
    %c0_31 = arith.constant 0 : index
    %c0_32 = arith.constant 0 : index
    %51 = vector.load %arg6[%c0_31, %c0_32] : memref<176x88xf32, #tpu.memory_space<vmem>>, vector<176x88xf32>
    %cst_33 = arith.constant dense<0.000000e+00> : vector<11x88xf32>
    %52 = tpu.matmul %50, %51, %cst_33 {dimension_numbers = #tpu.dot_dimension_numbers<[1], [0], [0], [1], [0, 0, 1, 1], [], []>} : vector<11x176xf32>, vector<176x88xf32>, vector<11x88xf32> -> vector<11x88xf32>
    %c0_34 = arith.constant 0 : index
    %c0_35 = arith.constant 0 : index
    %53 = vector.load %arg7[%c0_34, %c0_35] : memref<176x88xf32, #tpu.memory_space<vmem>>, vector<176x88xf32>
    %cst_36 = arith.constant dense<0.000000e+00> : vector<11x88xf32>
    %54 = tpu.matmul %50, %53, %cst_36 {dimension_numbers = #tpu.dot_dimension_numbers<[1], [0], [0], [1], [0, 0, 1, 1], [], []>} : vector<11x176xf32>, vector<176x88xf32>, vector<11x88xf32> -> vector<11x88xf32>
    %55 = arith.maximumf %52, %54 : vector<11x88xf32>
    %cst_37 = arith.constant 0.000000e+00 : f32
    %56 = vector.broadcast %cst_37 : f32 to vector<11x88xf32>
    %57 = arith.maximumf %55, %56 : vector<11x88xf32>
    %58 = vector.extract_strided_slice %57 {offsets = [0, 0], sizes = [7, 88], strides = [1, 1]} : vector<11x88xf32> to vector<7x88xf32>
    %59 = arith.truncf %58 : vector<7x88xf32> to vector<7x88xbf16>
    %c0_38 = arith.constant 0 : index
    %c0_39 = arith.constant 0 : index
    %c0_40 = arith.constant 0 : index
    %60 = vector.load %arg8[%c0_38, %c0_39, %c0_40] : memref<5x88x70xbf16, #tpu.memory_space<vmem>>, vector<1x88x70xbf16>
    %61 = vector.shape_cast %60 : vector<1x88x70xbf16> to vector<88x70xbf16>
    %cst_41 = arith.constant dense<0.000000e+00> : vector<7x70xf32>
    %62 = tpu.matmul %59, %61, %cst_41 {dimension_numbers = #tpu.dot_dimension_numbers<[1], [0], [0], [1], [0, 0, 1, 1], [], []>} : vector<7x88xbf16>, vector<88x70xbf16>, vector<7x70xf32> -> vector<7x70xf32>
    %63 = vector.extract_strided_slice %57 {offsets = [1, 0], sizes = [7, 88], strides = [1, 1]} : vector<11x88xf32> to vector<7x88xf32>
    %64 = arith.truncf %63 : vector<7x88xf32> to vector<7x88xbf16>
    %c1_42 = arith.constant 1 : index
    %c0_43 = arith.constant 0 : index
    %c0_44 = arith.constant 0 : index
    %65 = vector.load %arg8[%c1_42, %c0_43, %c0_44] : memref<5x88x70xbf16, #tpu.memory_space<vmem>>, vector<1x88x70xbf16>
    %66 = vector.shape_cast %65 : vector<1x88x70xbf16> to vector<88x70xbf16>
    %cst_45 = arith.constant dense<0.000000e+00> : vector<7x70xf32>
    %67 = tpu.matmul %64, %66, %cst_45 {dimension_numbers = #tpu.dot_dimension_numbers<[1], [0], [0], [1], [0, 0, 1, 1], [], []>} : vector<7x88xbf16>, vector<88x70xbf16>, vector<7x70xf32> -> vector<7x70xf32>
    %68 = arith.addf %62, %67 : vector<7x70xf32>
    %69 = vector.extract_strided_slice %57 {offsets = [2, 0], sizes = [7, 88], strides = [1, 1]} : vector<11x88xf32> to vector<7x88xf32>
    %70 = arith.truncf %69 : vector<7x88xf32> to vector<7x88xbf16>
    %c2_46 = arith.constant 2 : index
    %c0_47 = arith.constant 0 : index
    %c0_48 = arith.constant 0 : index
    %71 = vector.load %arg8[%c2_46, %c0_47, %c0_48] : memref<5x88x70xbf16, #tpu.memory_space<vmem>>, vector<1x88x70xbf16>
    %72 = vector.shape_cast %71 : vector<1x88x70xbf16> to vector<88x70xbf16>
    %cst_49 = arith.constant dense<0.000000e+00> : vector<7x70xf32>
    %73 = tpu.matmul %70, %72, %cst_49 {dimension_numbers = #tpu.dot_dimension_numbers<[1], [0], [0], [1], [0, 0, 1, 1], [], []>} : vector<7x88xbf16>, vector<88x70xbf16>, vector<7x70xf32> -> vector<7x70xf32>
    %74 = arith.addf %68, %73 : vector<7x70xf32>
    %75 = vector.extract_strided_slice %57 {offsets = [3, 0], sizes = [7, 88], strides = [1, 1]} : vector<11x88xf32> to vector<7x88xf32>
    %76 = arith.truncf %75 : vector<7x88xf32> to vector<7x88xbf16>
    %c3_50 = arith.constant 3 : index
    %c0_51 = arith.constant 0 : index
    %c0_52 = arith.constant 0 : index
    %77 = vector.load %arg8[%c3_50, %c0_51, %c0_52] : memref<5x88x70xbf16, #tpu.memory_space<vmem>>, vector<1x88x70xbf16>
    %78 = vector.shape_cast %77 : vector<1x88x70xbf16> to vector<88x70xbf16>
    %cst_53 = arith.constant dense<0.000000e+00> : vector<7x70xf32>
    %79 = tpu.matmul %76, %78, %cst_53 {dimension_numbers = #tpu.dot_dimension_numbers<[1], [0], [0], [1], [0, 0, 1, 1], [], []>} : vector<7x88xbf16>, vector<88x70xbf16>, vector<7x70xf32> -> vector<7x70xf32>
    %80 = arith.addf %74, %79 : vector<7x70xf32>
    %81 = vector.extract_strided_slice %57 {offsets = [4, 0], sizes = [7, 88], strides = [1, 1]} : vector<11x88xf32> to vector<7x88xf32>
    %82 = arith.truncf %81 : vector<7x88xf32> to vector<7x88xbf16>
    %c4_54 = arith.constant 4 : index
    %c0_55 = arith.constant 0 : index
    %c0_56 = arith.constant 0 : index
    %83 = vector.load %arg8[%c4_54, %c0_55, %c0_56] : memref<5x88x70xbf16, #tpu.memory_space<vmem>>, vector<1x88x70xbf16>
    %84 = vector.shape_cast %83 : vector<1x88x70xbf16> to vector<88x70xbf16>
    %cst_57 = arith.constant dense<0.000000e+00> : vector<7x70xf32>
    %85 = tpu.matmul %82, %84, %cst_57 {dimension_numbers = #tpu.dot_dimension_numbers<[1], [0], [0], [1], [0, 0, 1, 1], [], []>} : vector<7x88xbf16>, vector<88x70xbf16>, vector<7x70xf32> -> vector<7x70xf32>
    %86 = arith.addf %80, %85 : vector<7x70xf32>
    %c0_58 = arith.constant 0 : index
    %c0_59 = arith.constant 0 : index
    %87 = vector.load %arg9[%c0_58, %c0_59] : memref<1x70xf32, #tpu.memory_space<vmem>>, vector<1x70xf32>
    %88 = vector.broadcast %87 : vector<1x70xf32> to vector<7x70xf32>
    %89 = arith.addf %86, %88 : vector<7x70xf32>
    %c0_60 = arith.constant 0 : index
    %c0_61 = arith.constant 0 : index
    %90 = vector.load %arg10[%c0_60, %c0_61] : memref<3x7xf32, #tpu.memory_space<vmem>>, vector<3x7xf32>
    %cst_62 = arith.constant dense<0.000000e+00> : vector<3x70xf32>
    %91 = tpu.matmul %90, %89, %cst_62 {dimension_numbers = #tpu.dot_dimension_numbers<[1], [0], [0], [1], [0, 0, 1, 1], [], []>} : vector<3x7xf32>, vector<7x70xf32>, vector<3x70xf32> -> vector<3x70xf32>
    %c0_63 = arith.constant 0 : index
    %c0_64 = arith.constant 0 : index
    %92 = vector.load %arg11[%c0_63, %c0_64] : memref<3x7xf32, #tpu.memory_space<vmem>>, vector<3x7xf32>
    %cst_65 = arith.constant dense<0.000000e+00> : vector<3x70xf32>
    %93 = tpu.matmul %92, %89, %cst_65 {dimension_numbers = #tpu.dot_dimension_numbers<[1], [0], [0], [1], [0, 0, 1, 1], [], []>} : vector<3x7xf32>, vector<7x70xf32>, vector<3x70xf32> -> vector<3x70xf32>
    %94 = arith.maximumf %91, %93 : vector<3x70xf32>
    %c0_66 = arith.constant 0 : index
    %c0_67 = arith.constant 0 : index
    %95 = vector.load %arg12[%c0_66, %c0_67] : memref<70x30xf32, #tpu.memory_space<vmem>>, vector<70x30xf32>
    %cst_68 = arith.constant dense<0.000000e+00> : vector<3x30xf32>
    %96 = tpu.matmul %94, %95, %cst_68 {dimension_numbers = #tpu.dot_dimension_numbers<[1], [0], [0], [1], [0, 0, 1, 1], [], []>} : vector<3x70xf32>, vector<70x30xf32>, vector<3x30xf32> -> vector<3x30xf32>
    %c0_69 = arith.constant 0 : index
    %c0_70 = arith.constant 0 : index
    %97 = vector.load %arg13[%c0_69, %c0_70] : memref<70x30xf32, #tpu.memory_space<vmem>>, vector<70x30xf32>
    %cst_71 = arith.constant dense<0.000000e+00> : vector<3x30xf32>
    %98 = tpu.matmul %94, %97, %cst_71 {dimension_numbers = #tpu.dot_dimension_numbers<[1], [0], [0], [1], [0, 0, 1, 1], [], []>} : vector<3x70xf32>, vector<70x30xf32>, vector<3x30xf32> -> vector<3x30xf32>
    %99 = arith.maximumf %96, %98 : vector<3x30xf32>
    %cst_72 = arith.constant 0.000000e+00 : f32
    %100 = vector.broadcast %cst_72 : f32 to vector<3x30xf32>
    %101 = arith.maximumf %99, %100 : vector<3x30xf32>
    %c0_73 = arith.constant 0 : index
    %c0_74 = arith.constant 0 : index
    %102 = vector.load %arg15[%c0_73, %c0_74] : memref<1x32xf32, #tpu.memory_space<vmem>>, vector<1x32xf32>
    %103 = vector.extract_strided_slice %101 {offsets = [0, 0], sizes = [1, 30], strides = [1, 1]} : vector<3x30xf32> to vector<1x30xf32>
    %104 = arith.truncf %103 : vector<1x30xf32> to vector<1x30xbf16>
    %c0_75 = arith.constant 0 : index
    %c0_76 = arith.constant 0 : index
    %c0_77 = arith.constant 0 : index
    %105 = vector.load %arg14[%c0_75, %c0_76, %c0_77] : memref<3x30x32xbf16, #tpu.memory_space<vmem>>, vector<1x30x32xbf16>
    %106 = vector.shape_cast %105 : vector<1x30x32xbf16> to vector<30x32xbf16>
    %cst_78 = arith.constant dense<0.000000e+00> : vector<1x32xf32>
    %107 = tpu.matmul %104, %106, %cst_78 {dimension_numbers = #tpu.dot_dimension_numbers<[1], [0], [0], [1], [0, 0, 1, 1], [], []>} : vector<1x30xbf16>, vector<30x32xbf16>, vector<1x32xf32> -> vector<1x32xf32>
    %108 = arith.addf %102, %107 : vector<1x32xf32>
    %109 = vector.extract_strided_slice %101 {offsets = [1, 0], sizes = [1, 30], strides = [1, 1]} : vector<3x30xf32> to vector<1x30xf32>
    %110 = arith.truncf %109 : vector<1x30xf32> to vector<1x30xbf16>
    %c1_79 = arith.constant 1 : index
    %c0_80 = arith.constant 0 : index
    %c0_81 = arith.constant 0 : index
    %111 = vector.load %arg14[%c1_79, %c0_80, %c0_81] : memref<3x30x32xbf16, #tpu.memory_space<vmem>>, vector<1x30x32xbf16>
    %112 = vector.shape_cast %111 : vector<1x30x32xbf16> to vector<30x32xbf16>
    %cst_82 = arith.constant dense<0.000000e+00> : vector<1x32xf32>
    %113 = tpu.matmul %110, %112, %cst_82 {dimension_numbers = #tpu.dot_dimension_numbers<[1], [0], [0], [1], [0, 0, 1, 1], [], []>} : vector<1x30xbf16>, vector<30x32xbf16>, vector<1x32xf32> -> vector<1x32xf32>
    %114 = arith.addf %108, %113 : vector<1x32xf32>
    %115 = vector.extract_strided_slice %101 {offsets = [2, 0], sizes = [1, 30], strides = [1, 1]} : vector<3x30xf32> to vector<1x30xf32>
    %116 = arith.truncf %115 : vector<1x30xf32> to vector<1x30xbf16>
    %c2_83 = arith.constant 2 : index
    %c0_84 = arith.constant 0 : index
    %c0_85 = arith.constant 0 : index
    %117 = vector.load %arg14[%c2_83, %c0_84, %c0_85] : memref<3x30x32xbf16, #tpu.memory_space<vmem>>, vector<1x30x32xbf16>
    %118 = vector.shape_cast %117 : vector<1x30x32xbf16> to vector<30x32xbf16>
    %cst_86 = arith.constant dense<0.000000e+00> : vector<1x32xf32>
    %119 = tpu.matmul %116, %118, %cst_86 {dimension_numbers = #tpu.dot_dimension_numbers<[1], [0], [0], [1], [0, 0, 1, 1], [], []>} : vector<1x30xbf16>, vector<30x32xbf16>, vector<1x32xf32> -> vector<1x32xf32>
    %120 = arith.addf %114, %119 : vector<1x32xf32>
    %cst_87 = arith.constant 0.000000e+00 : f32
    %121 = vector.broadcast %cst_87 : f32 to vector<1x32xf32>
    %122 = arith.maximumf %120, %121 : vector<1x32xf32>
    %123 = arith.truncf %122 : vector<1x32xf32> to vector<1x32xbf16>
    %c0_88 = arith.constant 0 : index
    %c0_89 = arith.constant 0 : index
    %124 = vector.load %arg16[%c0_88, %c0_89] : memref<32x8xbf16, #tpu.memory_space<vmem>>, vector<32x8xbf16>
    %cst_90 = arith.constant dense<0.000000e+00> : vector<1x8xf32>
    %125 = tpu.matmul %123, %124, %cst_90 {dimension_numbers = #tpu.dot_dimension_numbers<[1], [0], [0], [1], [0, 0, 1, 1], [], []>} : vector<1x32xbf16>, vector<32x8xbf16>, vector<1x8xf32> -> vector<1x8xf32>
    %c0_91 = arith.constant 0 : index
    %c0_92 = arith.constant 0 : index
    %126 = vector.load %arg17[%c0_91, %c0_92] : memref<1x8xf32, #tpu.memory_space<vmem>>, vector<1x8xf32>
    %127 = arith.addf %125, %126 : vector<1x8xf32>
    %c0_93 = arith.constant 0 : index
    %c0_94 = arith.constant 0 : index
    %c0_95 = arith.constant 0 : index
    %128 = vector.load %arg18[%c0_93, %c0_94, %c0_95] : memref<1x1x8xf32, #tpu.memory_space<vmem>>, vector<1x1x8xf32>
    %129 = vector.shape_cast %128 : vector<1x1x8xf32> to vector<1x8xf32>
    %130 = vector.shape_cast %127 : vector<1x8xf32> to vector<1x1x8xf32>
    tpu.vector_store %arg18[%c0_93, %c0_94, %c0_95], %130 {strides = array<i32>} : memref<1x1x8xf32, #tpu.memory_space<vmem>>, vector<1x1x8xf32>,
    return
  }
  func.func @transform_0(%arg0: i32) -> (i32, i32, i32) {
    %c0_i32 = arith.constant 0 : i32
    %c0_i32_0 = arith.constant 0 : i32
    %c0_i32_1 = arith.constant 0 : i32
    return %arg0, %c0_i32, %c0_i32_0 : i32, i32, i32
  }
  func.func @transform_1(%arg0: i32) -> (i32, i32, i32) {
    %c0_i32 = arith.constant 0 : i32
    %c0_i32_0 = arith.constant 0 : i32
    %c0_i32_1 = arith.constant 0 : i32
    %c0_i32_2 = arith.constant 0 : i32
    return %c0_i32, %c0_i32_0, %c0_i32_1 : i32, i32, i32
  }
  func.func @transform_2(%arg0: i32) -> (i32, i32) {
    %c0_i32 = arith.constant 0 : i32
    %c0_i32_0 = arith.constant 0 : i32
    %c0_i32_1 = arith.constant 0 : i32
    return %c0_i32, %c0_i32_0 : i32, i32
  }
  func.func @transform_3(%arg0: i32) -> (i32, i32) {
    %c0_i32 = arith.constant 0 : i32
    %c0_i32_0 = arith.constant 0 : i32
    %c0_i32_1 = arith.constant 0 : i32
    return %c0_i32, %c0_i32_0 : i32, i32
  }
  func.func @transform_4(%arg0: i32) -> (i32, i32) {
    %c0_i32 = arith.constant 0 : i32
    %c0_i32_0 = arith.constant 0 : i32
    %c0_i32_1 = arith.constant 0 : i32
    return %c0_i32, %c0_i32_0 : i32, i32
  }
  func.func @transform_5(%arg0: i32) -> (i32, i32) {
    %c0_i32 = arith.constant 0 : i32
    %c0_i32_0 = arith.constant 0 : i32
    %c0_i32_1 = arith.constant 0 : i32
    return %c0_i32, %c0_i32_0 : i32, i32
  }
  func.func @transform_6(%arg0: i32) -> (i32, i32) {
    %c0_i32 = arith.constant 0 : i32
    %c0_i32_0 = arith.constant 0 : i32
    %c0_i32_1 = arith.constant 0 : i32
    return %c0_i32, %c0_i32_0 : i32, i32
  }
  func.func @transform_7(%arg0: i32) -> (i32, i32, i32) {
    %c0_i32 = arith.constant 0 : i32
    %c0_i32_0 = arith.constant 0 : i32
    %c0_i32_1 = arith.constant 0 : i32
    %c0_i32_2 = arith.constant 0 : i32
    return %c0_i32, %c0_i32_0, %c0_i32_1 : i32, i32, i32
  }
  func.func @transform_8(%arg0: i32) -> (i32, i32) {
    %c0_i32 = arith.constant 0 : i32
    %c0_i32_0 = arith.constant 0 : i32
    %c0_i32_1 = arith.constant 0 : i32
    return %c0_i32, %c0_i32_0 : i32, i32
  }
  func.func @transform_9(%arg0: i32) -> (i32, i32) {
    %c0_i32 = arith.constant 0 : i32
    %c0_i32_0 = arith.constant 0 : i32
    %c0_i32_1 = arith.constant 0 : i32
    return %c0_i32, %c0_i32_0 : i32, i32
  }
  func.func @transform_10(%arg0: i32) -> (i32, i32) {
    %c0_i32 = arith.constant 0 : i32
    %c0_i32_0 = arith.constant 0 : i32
    %c0_i32_1 = arith.constant 0 : i32
    return %c0_i32, %c0_i32_0 : i32, i32
  }
  func.func @transform_11(%arg0: i32) -> (i32, i32) {
    %c0_i32 = arith.constant 0 : i32
    %c0_i32_0 = arith.constant 0 : i32
    %c0_i32_1 = arith.constant 0 : i32
    return %c0_i32, %c0_i32_0 : i32, i32
  }
  func.func @transform_12(%arg0: i32) -> (i32, i32) {
    %c0_i32 = arith.constant 0 : i32
    %c0_i32_0 = arith.constant 0 : i32
    %c0_i32_1 = arith.constant 0 : i32
    return %c0_i32, %c0_i32_0 : i32, i32
  }
  func.func @transform_13(%arg0: i32) -> (i32, i32, i32) {
    %c0_i32 = arith.constant 0 : i32
    %c0_i32_0 = arith.constant 0 : i32
    %c0_i32_1 = arith.constant 0 : i32
    %c0_i32_2 = arith.constant 0 : i32
    return %c0_i32, %c0_i32_0, %c0_i32_1 : i32, i32, i32
  }
  func.func @transform_14(%arg0: i32) -> (i32, i32) {
    %c0_i32 = arith.constant 0 : i32
    %c0_i32_0 = arith.constant 0 : i32
    %c0_i32_1 = arith.constant 0 : i32
    return %c0_i32, %c0_i32_0 : i32, i32
  }
  func.func @transform_15(%arg0: i32) -> (i32, i32) {
    %c0_i32 = arith.constant 0 : i32
    %c0_i32_0 = arith.constant 0 : i32
    %c0_i32_1 = arith.constant 0 : i32
    return %c0_i32, %c0_i32_0 : i32, i32
  }
  func.func @transform_16(%arg0: i32) -> (i32, i32) {
    %c0_i32 = arith.constant 0 : i32
    %c0_i32_0 = arith.constant 0 : i32
    %c0_i32_1 = arith.constant 0 : i32
    return %c0_i32, %c0_i32_0 : i32, i32
  }
  func.func @transform_17(%arg0: i32) -> (i32, i32, i32) {
    %c0_i32 = arith.constant 0 : i32
    %c0_i32_0 = arith.constant 0 : i32
    %c0_i32_1 = arith.constant 0 : i32
    return %arg0, %c0_i32, %c0_i32_0 : i32, i32, i32
  }
}

module attributes {stable_mosaic.version = 11 : i64} {
  func.func @_tower_kernel(%arg0: i32, %arg1: memref<1x28x28xf32, #tpu.memory_space<vmem>>, %arg2: memref<5x28x240xbf16, #tpu.memory_space<vmem>>, %arg3: memref<1x240xf32, #tpu.memory_space<vmem>>, %arg4: memref<12x24xf32, #tpu.memory_space<vmem>>, %arg5: memref<12x24xf32, #tpu.memory_space<vmem>>, %arg6: memref<240x120xf32, #tpu.memory_space<vmem>>, %arg7: memref<240x120xf32, #tpu.memory_space<vmem>>, %arg8: memref<5x120x160xbf16, #tpu.memory_space<vmem>>, %arg9: memref<1x160xf32, #tpu.memory_space<vmem>>, %arg10: memref<4x8xf32, #tpu.memory_space<vmem>>, %arg11: memref<4x8xf32, #tpu.memory_space<vmem>>, %arg12: memref<160x80xf32, #tpu.memory_space<vmem>>, %arg13: memref<160x80xf32, #tpu.memory_space<vmem>>, %arg14: memref<4x80x50xbf16, #tpu.memory_space<vmem>>, %arg15: memref<1x50xf32, #tpu.memory_space<vmem>>, %arg16: memref<50x128xbf16, #tpu.memory_space<vmem>>, %arg17: memref<1x128xf32, #tpu.memory_space<vmem>>, %arg18: memref<1x1x128xf32, #tpu.memory_space<vmem>>) attributes {dimension_semantics = [#tpu.dimension_semantics<parallel>], iteration_bounds = array<i64: 2>, scalar_prefetch = 0 : i64, scratch_operands = 0 : i64, tpu.core_type = #tpu.core_type<tc>, window_params = [{transform_indices = @transform_0, window_bounds = array<i64: 1, 28, 28>}, {pipeline_mode = #tpu.pipeline_mode<synchronous>, transform_indices = @transform_1, window_bounds = array<i64: 5, 28, 240>}, {pipeline_mode = #tpu.pipeline_mode<synchronous>, transform_indices = @transform_2, window_bounds = array<i64: 1, 240>}, {pipeline_mode = #tpu.pipeline_mode<synchronous>, transform_indices = @transform_3, window_bounds = array<i64: 12, 24>}, {pipeline_mode = #tpu.pipeline_mode<synchronous>, transform_indices = @transform_4, window_bounds = array<i64: 12, 24>}, {pipeline_mode = #tpu.pipeline_mode<synchronous>, transform_indices = @transform_5, window_bounds = array<i64: 240, 120>}, {pipeline_mode = #tpu.pipeline_mode<synchronous>, transform_indices = @transform_6, window_bounds = array<i64: 240, 120>}, {pipeline_mode = #tpu.pipeline_mode<synchronous>, transform_indices = @transform_7, window_bounds = array<i64: 5, 120, 160>}, {pipeline_mode = #tpu.pipeline_mode<synchronous>, transform_indices = @transform_8, window_bounds = array<i64: 1, 160>}, {pipeline_mode = #tpu.pipeline_mode<synchronous>, transform_indices = @transform_9, window_bounds = array<i64: 4, 8>}, {pipeline_mode = #tpu.pipeline_mode<synchronous>, transform_indices = @transform_10, window_bounds = array<i64: 4, 8>}, {pipeline_mode = #tpu.pipeline_mode<synchronous>, transform_indices = @transform_11, window_bounds = array<i64: 160, 80>}, {pipeline_mode = #tpu.pipeline_mode<synchronous>, transform_indices = @transform_12, window_bounds = array<i64: 160, 80>}, {pipeline_mode = #tpu.pipeline_mode<synchronous>, transform_indices = @transform_13, window_bounds = array<i64: 4, 80, 50>}, {pipeline_mode = #tpu.pipeline_mode<synchronous>, transform_indices = @transform_14, window_bounds = array<i64: 1, 50>}, {pipeline_mode = #tpu.pipeline_mode<synchronous>, transform_indices = @transform_15, window_bounds = array<i64: 50, 128>}, {pipeline_mode = #tpu.pipeline_mode<synchronous>, transform_indices = @transform_16, window_bounds = array<i64: 1, 128>}, {transform_indices = @transform_17, window_bounds = array<i64: 1, 1, 128>}]} {
    %c0 = arith.constant 0 : index
    %c0_0 = arith.constant 0 : index
    %c0_1 = arith.constant 0 : index
    %0 = vector.load %arg1[%c0, %c0_0, %c0_1] : memref<1x28x28xf32, #tpu.memory_space<vmem>>, vector<1x28x28xf32>
    %1 = vector.shape_cast %0 : vector<1x28x28xf32> to vector<28x28xf32>
    %2 = vector.extract_strided_slice %1 {offsets = [0, 0], sizes = [24, 28], strides = [1, 1]} : vector<28x28xf32> to vector<24x28xf32>
    %3 = arith.truncf %2 : vector<24x28xf32> to vector<24x28xbf16>
    %c0_2 = arith.constant 0 : index
    %c0_3 = arith.constant 0 : index
    %c0_4 = arith.constant 0 : index
    %4 = vector.load %arg2[%c0_2, %c0_3, %c0_4] : memref<5x28x240xbf16, #tpu.memory_space<vmem>>, vector<1x28x240xbf16>
    %5 = vector.shape_cast %4 : vector<1x28x240xbf16> to vector<28x240xbf16>
    %cst = arith.constant dense<0.000000e+00> : vector<24x240xf32>
    %6 = tpu.matmul %3, %5, %cst {dimension_numbers = #tpu.dot_dimension_numbers<[1], [0], [0], [1], [0, 0, 1, 1], [], []>} : vector<24x28xbf16>, vector<28x240xbf16>, vector<24x240xf32> -> vector<24x240xf32>
    %7 = vector.extract_strided_slice %1 {offsets = [1, 0], sizes = [24, 28], strides = [1, 1]} : vector<28x28xf32> to vector<24x28xf32>
    %8 = arith.truncf %7 : vector<24x28xf32> to vector<24x28xbf16>
    %c1 = arith.constant 1 : index
    %c0_5 = arith.constant 0 : index
    %c0_6 = arith.constant 0 : index
    %9 = vector.load %arg2[%c1, %c0_5, %c0_6] : memref<5x28x240xbf16, #tpu.memory_space<vmem>>, vector<1x28x240xbf16>
    %10 = vector.shape_cast %9 : vector<1x28x240xbf16> to vector<28x240xbf16>
    %cst_7 = arith.constant dense<0.000000e+00> : vector<24x240xf32>
    %11 = tpu.matmul %8, %10, %cst_7 {dimension_numbers = #tpu.dot_dimension_numbers<[1], [0], [0], [1], [0, 0, 1, 1], [], []>} : vector<24x28xbf16>, vector<28x240xbf16>, vector<24x240xf32> -> vector<24x240xf32>
    %12 = arith.addf %6, %11 : vector<24x240xf32>
    %13 = vector.extract_strided_slice %1 {offsets = [2, 0], sizes = [24, 28], strides = [1, 1]} : vector<28x28xf32> to vector<24x28xf32>
    %14 = arith.truncf %13 : vector<24x28xf32> to vector<24x28xbf16>
    %c2 = arith.constant 2 : index
    %c0_8 = arith.constant 0 : index
    %c0_9 = arith.constant 0 : index
    %15 = vector.load %arg2[%c2, %c0_8, %c0_9] : memref<5x28x240xbf16, #tpu.memory_space<vmem>>, vector<1x28x240xbf16>
    %16 = vector.shape_cast %15 : vector<1x28x240xbf16> to vector<28x240xbf16>
    %cst_10 = arith.constant dense<0.000000e+00> : vector<24x240xf32>
    %17 = tpu.matmul %14, %16, %cst_10 {dimension_numbers = #tpu.dot_dimension_numbers<[1], [0], [0], [1], [0, 0, 1, 1], [], []>} : vector<24x28xbf16>, vector<28x240xbf16>, vector<24x240xf32> -> vector<24x240xf32>
    %18 = arith.addf %12, %17 : vector<24x240xf32>
    %19 = vector.extract_strided_slice %1 {offsets = [3, 0], sizes = [24, 28], strides = [1, 1]} : vector<28x28xf32> to vector<24x28xf32>
    %20 = arith.truncf %19 : vector<24x28xf32> to vector<24x28xbf16>
    %c3 = arith.constant 3 : index
    %c0_11 = arith.constant 0 : index
    %c0_12 = arith.constant 0 : index
    %21 = vector.load %arg2[%c3, %c0_11, %c0_12] : memref<5x28x240xbf16, #tpu.memory_space<vmem>>, vector<1x28x240xbf16>
    %22 = vector.shape_cast %21 : vector<1x28x240xbf16> to vector<28x240xbf16>
    %cst_13 = arith.constant dense<0.000000e+00> : vector<24x240xf32>
    %23 = tpu.matmul %20, %22, %cst_13 {dimension_numbers = #tpu.dot_dimension_numbers<[1], [0], [0], [1], [0, 0, 1, 1], [], []>} : vector<24x28xbf16>, vector<28x240xbf16>, vector<24x240xf32> -> vector<24x240xf32>
    %24 = arith.addf %18, %23 : vector<24x240xf32>
    %25 = vector.extract_strided_slice %1 {offsets = [4, 0], sizes = [24, 28], strides = [1, 1]} : vector<28x28xf32> to vector<24x28xf32>
    %26 = arith.truncf %25 : vector<24x28xf32> to vector<24x28xbf16>
    %c4 = arith.constant 4 : index
    %c0_14 = arith.constant 0 : index
    %c0_15 = arith.constant 0 : index
    %27 = vector.load %arg2[%c4, %c0_14, %c0_15] : memref<5x28x240xbf16, #tpu.memory_space<vmem>>, vector<1x28x240xbf16>
    %28 = vector.shape_cast %27 : vector<1x28x240xbf16> to vector<28x240xbf16>
    %cst_16 = arith.constant dense<0.000000e+00> : vector<24x240xf32>
    %29 = tpu.matmul %26, %28, %cst_16 {dimension_numbers = #tpu.dot_dimension_numbers<[1], [0], [0], [1], [0, 0, 1, 1], [], []>} : vector<24x28xbf16>, vector<28x240xbf16>, vector<24x240xf32> -> vector<24x240xf32>
    %30 = arith.addf %24, %29 : vector<24x240xf32>
    %c0_17 = arith.constant 0 : index
    %c0_18 = arith.constant 0 : index
    %31 = vector.load %arg3[%c0_17, %c0_18] : memref<1x240xf32, #tpu.memory_space<vmem>>, vector<1x240xf32>
    %32 = vector.broadcast %31 : vector<1x240xf32> to vector<24x240xf32>
    %33 = arith.addf %30, %32 : vector<24x240xf32>
    %c0_19 = arith.constant 0 : index
    %c0_20 = arith.constant 0 : index
    %34 = vector.load %arg4[%c0_19, %c0_20] : memref<12x24xf32, #tpu.memory_space<vmem>>, vector<12x24xf32>
    %cst_21 = arith.constant dense<0.000000e+00> : vector<12x240xf32>
    %35 = tpu.matmul %34, %33, %cst_21 {dimension_numbers = #tpu.dot_dimension_numbers<[1], [0], [0], [1], [0, 0, 1, 1], [], []>} : vector<12x24xf32>, vector<24x240xf32>, vector<12x240xf32> -> vector<12x240xf32>
    %c0_22 = arith.constant 0 : index
    %c0_23 = arith.constant 0 : index
    %36 = vector.load %arg5[%c0_22, %c0_23] : memref<12x24xf32, #tpu.memory_space<vmem>>, vector<12x24xf32>
    %cst_24 = arith.constant dense<0.000000e+00> : vector<12x240xf32>
    %37 = tpu.matmul %36, %33, %cst_24 {dimension_numbers = #tpu.dot_dimension_numbers<[1], [0], [0], [1], [0, 0, 1, 1], [], []>} : vector<12x24xf32>, vector<24x240xf32>, vector<12x240xf32> -> vector<12x240xf32>
    %38 = arith.maximumf %35, %37 : vector<12x240xf32>
    %c0_25 = arith.constant 0 : index
    %c0_26 = arith.constant 0 : index
    %39 = vector.load %arg6[%c0_25, %c0_26] : memref<240x120xf32, #tpu.memory_space<vmem>>, vector<240x120xf32>
    %cst_27 = arith.constant dense<0.000000e+00> : vector<12x120xf32>
    %40 = tpu.matmul %38, %39, %cst_27 {dimension_numbers = #tpu.dot_dimension_numbers<[1], [0], [0], [1], [0, 0, 1, 1], [], []>} : vector<12x240xf32>, vector<240x120xf32>, vector<12x120xf32> -> vector<12x120xf32>
    %c0_28 = arith.constant 0 : index
    %c0_29 = arith.constant 0 : index
    %41 = vector.load %arg7[%c0_28, %c0_29] : memref<240x120xf32, #tpu.memory_space<vmem>>, vector<240x120xf32>
    %cst_30 = arith.constant dense<0.000000e+00> : vector<12x120xf32>
    %42 = tpu.matmul %38, %41, %cst_30 {dimension_numbers = #tpu.dot_dimension_numbers<[1], [0], [0], [1], [0, 0, 1, 1], [], []>} : vector<12x240xf32>, vector<240x120xf32>, vector<12x120xf32> -> vector<12x120xf32>
    %43 = arith.maximumf %40, %42 : vector<12x120xf32>
    %cst_31 = arith.constant 0.000000e+00 : f32
    %44 = vector.broadcast %cst_31 : f32 to vector<12x120xf32>
    %45 = arith.maximumf %43, %44 : vector<12x120xf32>
    %46 = vector.extract_strided_slice %45 {offsets = [0, 0], sizes = [8, 120], strides = [1, 1]} : vector<12x120xf32> to vector<8x120xf32>
    %47 = arith.truncf %46 : vector<8x120xf32> to vector<8x120xbf16>
    %c0_32 = arith.constant 0 : index
    %c0_33 = arith.constant 0 : index
    %c0_34 = arith.constant 0 : index
    %48 = vector.load %arg8[%c0_32, %c0_33, %c0_34] : memref<5x120x160xbf16, #tpu.memory_space<vmem>>, vector<1x120x160xbf16>
    %49 = vector.shape_cast %48 : vector<1x120x160xbf16> to vector<120x160xbf16>
    %cst_35 = arith.constant dense<0.000000e+00> : vector<8x160xf32>
    %50 = tpu.matmul %47, %49, %cst_35 {dimension_numbers = #tpu.dot_dimension_numbers<[1], [0], [0], [1], [0, 0, 1, 1], [], []>} : vector<8x120xbf16>, vector<120x160xbf16>, vector<8x160xf32> -> vector<8x160xf32>
    %51 = vector.extract_strided_slice %45 {offsets = [1, 0], sizes = [8, 120], strides = [1, 1]} : vector<12x120xf32> to vector<8x120xf32>
    %52 = arith.truncf %51 : vector<8x120xf32> to vector<8x120xbf16>
    %c1_36 = arith.constant 1 : index
    %c0_37 = arith.constant 0 : index
    %c0_38 = arith.constant 0 : index
    %53 = vector.load %arg8[%c1_36, %c0_37, %c0_38] : memref<5x120x160xbf16, #tpu.memory_space<vmem>>, vector<1x120x160xbf16>
    %54 = vector.shape_cast %53 : vector<1x120x160xbf16> to vector<120x160xbf16>
    %cst_39 = arith.constant dense<0.000000e+00> : vector<8x160xf32>
    %55 = tpu.matmul %52, %54, %cst_39 {dimension_numbers = #tpu.dot_dimension_numbers<[1], [0], [0], [1], [0, 0, 1, 1], [], []>} : vector<8x120xbf16>, vector<120x160xbf16>, vector<8x160xf32> -> vector<8x160xf32>
    %56 = arith.addf %50, %55 : vector<8x160xf32>
    %57 = vector.extract_strided_slice %45 {offsets = [2, 0], sizes = [8, 120], strides = [1, 1]} : vector<12x120xf32> to vector<8x120xf32>
    %58 = arith.truncf %57 : vector<8x120xf32> to vector<8x120xbf16>
    %c2_40 = arith.constant 2 : index
    %c0_41 = arith.constant 0 : index
    %c0_42 = arith.constant 0 : index
    %59 = vector.load %arg8[%c2_40, %c0_41, %c0_42] : memref<5x120x160xbf16, #tpu.memory_space<vmem>>, vector<1x120x160xbf16>
    %60 = vector.shape_cast %59 : vector<1x120x160xbf16> to vector<120x160xbf16>
    %cst_43 = arith.constant dense<0.000000e+00> : vector<8x160xf32>
    %61 = tpu.matmul %58, %60, %cst_43 {dimension_numbers = #tpu.dot_dimension_numbers<[1], [0], [0], [1], [0, 0, 1, 1], [], []>} : vector<8x120xbf16>, vector<120x160xbf16>, vector<8x160xf32> -> vector<8x160xf32>
    %62 = arith.addf %56, %61 : vector<8x160xf32>
    %63 = vector.extract_strided_slice %45 {offsets = [3, 0], sizes = [8, 120], strides = [1, 1]} : vector<12x120xf32> to vector<8x120xf32>
    %64 = arith.truncf %63 : vector<8x120xf32> to vector<8x120xbf16>
    %c3_44 = arith.constant 3 : index
    %c0_45 = arith.constant 0 : index
    %c0_46 = arith.constant 0 : index
    %65 = vector.load %arg8[%c3_44, %c0_45, %c0_46] : memref<5x120x160xbf16, #tpu.memory_space<vmem>>, vector<1x120x160xbf16>
    %66 = vector.shape_cast %65 : vector<1x120x160xbf16> to vector<120x160xbf16>
    %cst_47 = arith.constant dense<0.000000e+00> : vector<8x160xf32>
    %67 = tpu.matmul %64, %66, %cst_47 {dimension_numbers = #tpu.dot_dimension_numbers<[1], [0], [0], [1], [0, 0, 1, 1], [], []>} : vector<8x120xbf16>, vector<120x160xbf16>, vector<8x160xf32> -> vector<8x160xf32>
    %68 = arith.addf %62, %67 : vector<8x160xf32>
    %69 = vector.extract_strided_slice %45 {offsets = [4, 0], sizes = [8, 120], strides = [1, 1]} : vector<12x120xf32> to vector<8x120xf32>
    %70 = arith.truncf %69 : vector<8x120xf32> to vector<8x120xbf16>
    %c4_48 = arith.constant 4 : index
    %c0_49 = arith.constant 0 : index
    %c0_50 = arith.constant 0 : index
    %71 = vector.load %arg8[%c4_48, %c0_49, %c0_50] : memref<5x120x160xbf16, #tpu.memory_space<vmem>>, vector<1x120x160xbf16>
    %72 = vector.shape_cast %71 : vector<1x120x160xbf16> to vector<120x160xbf16>
    %cst_51 = arith.constant dense<0.000000e+00> : vector<8x160xf32>
    %73 = tpu.matmul %70, %72, %cst_51 {dimension_numbers = #tpu.dot_dimension_numbers<[1], [0], [0], [1], [0, 0, 1, 1], [], []>} : vector<8x120xbf16>, vector<120x160xbf16>, vector<8x160xf32> -> vector<8x160xf32>
    %74 = arith.addf %68, %73 : vector<8x160xf32>
    %c0_52 = arith.constant 0 : index
    %c0_53 = arith.constant 0 : index
    %75 = vector.load %arg9[%c0_52, %c0_53] : memref<1x160xf32, #tpu.memory_space<vmem>>, vector<1x160xf32>
    %76 = vector.broadcast %75 : vector<1x160xf32> to vector<8x160xf32>
    %77 = arith.addf %74, %76 : vector<8x160xf32>
    %c0_54 = arith.constant 0 : index
    %c0_55 = arith.constant 0 : index
    %78 = vector.load %arg10[%c0_54, %c0_55] : memref<4x8xf32, #tpu.memory_space<vmem>>, vector<4x8xf32>
    %cst_56 = arith.constant dense<0.000000e+00> : vector<4x160xf32>
    %79 = tpu.matmul %78, %77, %cst_56 {dimension_numbers = #tpu.dot_dimension_numbers<[1], [0], [0], [1], [0, 0, 1, 1], [], []>} : vector<4x8xf32>, vector<8x160xf32>, vector<4x160xf32> -> vector<4x160xf32>
    %c0_57 = arith.constant 0 : index
    %c0_58 = arith.constant 0 : index
    %80 = vector.load %arg11[%c0_57, %c0_58] : memref<4x8xf32, #tpu.memory_space<vmem>>, vector<4x8xf32>
    %cst_59 = arith.constant dense<0.000000e+00> : vector<4x160xf32>
    %81 = tpu.matmul %80, %77, %cst_59 {dimension_numbers = #tpu.dot_dimension_numbers<[1], [0], [0], [1], [0, 0, 1, 1], [], []>} : vector<4x8xf32>, vector<8x160xf32>, vector<4x160xf32> -> vector<4x160xf32>
    %82 = arith.maximumf %79, %81 : vector<4x160xf32>
    %c0_60 = arith.constant 0 : index
    %c0_61 = arith.constant 0 : index
    %83 = vector.load %arg12[%c0_60, %c0_61] : memref<160x80xf32, #tpu.memory_space<vmem>>, vector<160x80xf32>
    %cst_62 = arith.constant dense<0.000000e+00> : vector<4x80xf32>
    %84 = tpu.matmul %82, %83, %cst_62 {dimension_numbers = #tpu.dot_dimension_numbers<[1], [0], [0], [1], [0, 0, 1, 1], [], []>} : vector<4x160xf32>, vector<160x80xf32>, vector<4x80xf32> -> vector<4x80xf32>
    %c0_63 = arith.constant 0 : index
    %c0_64 = arith.constant 0 : index
    %85 = vector.load %arg13[%c0_63, %c0_64] : memref<160x80xf32, #tpu.memory_space<vmem>>, vector<160x80xf32>
    %cst_65 = arith.constant dense<0.000000e+00> : vector<4x80xf32>
    %86 = tpu.matmul %82, %85, %cst_65 {dimension_numbers = #tpu.dot_dimension_numbers<[1], [0], [0], [1], [0, 0, 1, 1], [], []>} : vector<4x160xf32>, vector<160x80xf32>, vector<4x80xf32> -> vector<4x80xf32>
    %87 = arith.maximumf %84, %86 : vector<4x80xf32>
    %cst_66 = arith.constant 0.000000e+00 : f32
    %88 = vector.broadcast %cst_66 : f32 to vector<4x80xf32>
    %89 = arith.maximumf %87, %88 : vector<4x80xf32>
    %c0_67 = arith.constant 0 : index
    %c0_68 = arith.constant 0 : index
    %90 = vector.load %arg15[%c0_67, %c0_68] : memref<1x50xf32, #tpu.memory_space<vmem>>, vector<1x50xf32>
    %91 = vector.extract_strided_slice %89 {offsets = [0, 0], sizes = [1, 80], strides = [1, 1]} : vector<4x80xf32> to vector<1x80xf32>
    %92 = arith.truncf %91 : vector<1x80xf32> to vector<1x80xbf16>
    %c0_69 = arith.constant 0 : index
    %c0_70 = arith.constant 0 : index
    %c0_71 = arith.constant 0 : index
    %93 = vector.load %arg14[%c0_69, %c0_70, %c0_71] : memref<4x80x50xbf16, #tpu.memory_space<vmem>>, vector<1x80x50xbf16>
    %94 = vector.shape_cast %93 : vector<1x80x50xbf16> to vector<80x50xbf16>
    %cst_72 = arith.constant dense<0.000000e+00> : vector<1x50xf32>
    %95 = tpu.matmul %92, %94, %cst_72 {dimension_numbers = #tpu.dot_dimension_numbers<[1], [0], [0], [1], [0, 0, 1, 1], [], []>} : vector<1x80xbf16>, vector<80x50xbf16>, vector<1x50xf32> -> vector<1x50xf32>
    %96 = arith.addf %90, %95 : vector<1x50xf32>
    %97 = vector.extract_strided_slice %89 {offsets = [1, 0], sizes = [1, 80], strides = [1, 1]} : vector<4x80xf32> to vector<1x80xf32>
    %98 = arith.truncf %97 : vector<1x80xf32> to vector<1x80xbf16>
    %c1_73 = arith.constant 1 : index
    %c0_74 = arith.constant 0 : index
    %c0_75 = arith.constant 0 : index
    %99 = vector.load %arg14[%c1_73, %c0_74, %c0_75] : memref<4x80x50xbf16, #tpu.memory_space<vmem>>, vector<1x80x50xbf16>
    %100 = vector.shape_cast %99 : vector<1x80x50xbf16> to vector<80x50xbf16>
    %cst_76 = arith.constant dense<0.000000e+00> : vector<1x50xf32>
    %101 = tpu.matmul %98, %100, %cst_76 {dimension_numbers = #tpu.dot_dimension_numbers<[1], [0], [0], [1], [0, 0, 1, 1], [], []>} : vector<1x80xbf16>, vector<80x50xbf16>, vector<1x50xf32> -> vector<1x50xf32>
    %102 = arith.addf %96, %101 : vector<1x50xf32>
    %103 = vector.extract_strided_slice %89 {offsets = [2, 0], sizes = [1, 80], strides = [1, 1]} : vector<4x80xf32> to vector<1x80xf32>
    %104 = arith.truncf %103 : vector<1x80xf32> to vector<1x80xbf16>
    %c2_77 = arith.constant 2 : index
    %c0_78 = arith.constant 0 : index
    %c0_79 = arith.constant 0 : index
    %105 = vector.load %arg14[%c2_77, %c0_78, %c0_79] : memref<4x80x50xbf16, #tpu.memory_space<vmem>>, vector<1x80x50xbf16>
    %106 = vector.shape_cast %105 : vector<1x80x50xbf16> to vector<80x50xbf16>
    %cst_80 = arith.constant dense<0.000000e+00> : vector<1x50xf32>
    %107 = tpu.matmul %104, %106, %cst_80 {dimension_numbers = #tpu.dot_dimension_numbers<[1], [0], [0], [1], [0, 0, 1, 1], [], []>} : vector<1x80xbf16>, vector<80x50xbf16>, vector<1x50xf32> -> vector<1x50xf32>
    %108 = arith.addf %102, %107 : vector<1x50xf32>
    %109 = vector.extract_strided_slice %89 {offsets = [3, 0], sizes = [1, 80], strides = [1, 1]} : vector<4x80xf32> to vector<1x80xf32>
    %110 = arith.truncf %109 : vector<1x80xf32> to vector<1x80xbf16>
    %c3_81 = arith.constant 3 : index
    %c0_82 = arith.constant 0 : index
    %c0_83 = arith.constant 0 : index
    %111 = vector.load %arg14[%c3_81, %c0_82, %c0_83] : memref<4x80x50xbf16, #tpu.memory_space<vmem>>, vector<1x80x50xbf16>
    %112 = vector.shape_cast %111 : vector<1x80x50xbf16> to vector<80x50xbf16>
    %cst_84 = arith.constant dense<0.000000e+00> : vector<1x50xf32>
    %113 = tpu.matmul %110, %112, %cst_84 {dimension_numbers = #tpu.dot_dimension_numbers<[1], [0], [0], [1], [0, 0, 1, 1], [], []>} : vector<1x80xbf16>, vector<80x50xbf16>, vector<1x50xf32> -> vector<1x50xf32>
    %114 = arith.addf %108, %113 : vector<1x50xf32>
    %cst_85 = arith.constant 0.000000e+00 : f32
    %115 = vector.broadcast %cst_85 : f32 to vector<1x50xf32>
    %116 = arith.maximumf %114, %115 : vector<1x50xf32>
    %117 = arith.truncf %116 : vector<1x50xf32> to vector<1x50xbf16>
    %c0_86 = arith.constant 0 : index
    %c0_87 = arith.constant 0 : index
    %118 = vector.load %arg16[%c0_86, %c0_87] : memref<50x128xbf16, #tpu.memory_space<vmem>>, vector<50x128xbf16>
    %cst_88 = arith.constant dense<0.000000e+00> : vector<1x128xf32>
    %119 = tpu.matmul %117, %118, %cst_88 {dimension_numbers = #tpu.dot_dimension_numbers<[1], [0], [0], [1], [0, 0, 1, 1], [], []>} : vector<1x50xbf16>, vector<50x128xbf16>, vector<1x128xf32> -> vector<1x128xf32>
    %c0_89 = arith.constant 0 : index
    %c0_90 = arith.constant 0 : index
    %120 = vector.load %arg17[%c0_89, %c0_90] : memref<1x128xf32, #tpu.memory_space<vmem>>, vector<1x128xf32>
    %121 = arith.addf %119, %120 : vector<1x128xf32>
    %cst_91 = arith.constant dense<0xFF800000> : vector<1xf32>
    %122 = vector.multi_reduction <maximumf>, %121, %cst_91 [1] : vector<1x128xf32> to vector<1xf32>
    %123 = vector.shape_cast %122 : vector<1xf32> to vector<1x1xf32>
    %124 = vector.broadcast %123 : vector<1x1xf32> to vector<1x128xf32>
    %125 = arith.subf %121, %124 : vector<1x128xf32>
    %126 = math.exp %125 : vector<1x128xf32>
    %cst_92 = arith.constant dense<0.000000e+00> : vector<1xf32>
    %127 = vector.multi_reduction <add>, %126, %cst_92 [1] : vector<1x128xf32> to vector<1xf32>
    %128 = vector.shape_cast %127 : vector<1xf32> to vector<1x1xf32>
    %129 = math.log %128 : vector<1x1xf32>
    %130 = vector.broadcast %129 : vector<1x1xf32> to vector<1x128xf32>
    %131 = arith.subf %125, %130 : vector<1x128xf32>
    %c0_93 = arith.constant 0 : index
    %c0_94 = arith.constant 0 : index
    %c0_95 = arith.constant 0 : index
    %132 = vector.load %arg18[%c0_93, %c0_94, %c0_95] : memref<1x1x128xf32, #tpu.memory_space<vmem>>, vector<1x1x128xf32>
    %133 = vector.shape_cast %132 : vector<1x1x128xf32> to vector<1x128xf32>
    %134 = vector.shape_cast %131 : vector<1x128xf32> to vector<1x1x128xf32>
    tpu.vector_store %arg18[%c0_93, %c0_94, %c0_95], %134 {strides = array<i32>} : memref<1x1x128xf32, #tpu.memory_space<vmem>>, vector<1x1x128xf32>,
    return
  }
  func.func @transform_0(%arg0: i32) -> (i32, i32, i32) {
    %c0_i32 = arith.constant 0 : i32
    %c0_i32_0 = arith.constant 0 : i32
    %c0_i32_1 = arith.constant 0 : i32
    return %arg0, %c0_i32, %c0_i32_0 : i32, i32, i32
  }
  func.func @transform_1(%arg0: i32) -> (i32, i32, i32) {
    %c0_i32 = arith.constant 0 : i32
    %c0_i32_0 = arith.constant 0 : i32
    %c0_i32_1 = arith.constant 0 : i32
    %c0_i32_2 = arith.constant 0 : i32
    return %c0_i32, %c0_i32_0, %c0_i32_1 : i32, i32, i32
  }
  func.func @transform_2(%arg0: i32) -> (i32, i32) {
    %c0_i32 = arith.constant 0 : i32
    %c0_i32_0 = arith.constant 0 : i32
    %c0_i32_1 = arith.constant 0 : i32
    return %c0_i32, %c0_i32_0 : i32, i32
  }
  func.func @transform_3(%arg0: i32) -> (i32, i32) {
    %c0_i32 = arith.constant 0 : i32
    %c0_i32_0 = arith.constant 0 : i32
    %c0_i32_1 = arith.constant 0 : i32
    return %c0_i32, %c0_i32_0 : i32, i32
  }
  func.func @transform_4(%arg0: i32) -> (i32, i32) {
    %c0_i32 = arith.constant 0 : i32
    %c0_i32_0 = arith.constant 0 : i32
    %c0_i32_1 = arith.constant 0 : i32
    return %c0_i32, %c0_i32_0 : i32, i32
  }
  func.func @transform_5(%arg0: i32) -> (i32, i32) {
    %c0_i32 = arith.constant 0 : i32
    %c0_i32_0 = arith.constant 0 : i32
    %c0_i32_1 = arith.constant 0 : i32
    return %c0_i32, %c0_i32_0 : i32, i32
  }
  func.func @transform_6(%arg0: i32) -> (i32, i32) {
    %c0_i32 = arith.constant 0 : i32
    %c0_i32_0 = arith.constant 0 : i32
    %c0_i32_1 = arith.constant 0 : i32
    return %c0_i32, %c0_i32_0 : i32, i32
  }
  func.func @transform_7(%arg0: i32) -> (i32, i32, i32) {
    %c0_i32 = arith.constant 0 : i32
    %c0_i32_0 = arith.constant 0 : i32
    %c0_i32_1 = arith.constant 0 : i32
    %c0_i32_2 = arith.constant 0 : i32
    return %c0_i32, %c0_i32_0, %c0_i32_1 : i32, i32, i32
  }
  func.func @transform_8(%arg0: i32) -> (i32, i32) {
    %c0_i32 = arith.constant 0 : i32
    %c0_i32_0 = arith.constant 0 : i32
    %c0_i32_1 = arith.constant 0 : i32
    return %c0_i32, %c0_i32_0 : i32, i32
  }
  func.func @transform_9(%arg0: i32) -> (i32, i32) {
    %c0_i32 = arith.constant 0 : i32
    %c0_i32_0 = arith.constant 0 : i32
    %c0_i32_1 = arith.constant 0 : i32
    return %c0_i32, %c0_i32_0 : i32, i32
  }
  func.func @transform_10(%arg0: i32) -> (i32, i32) {
    %c0_i32 = arith.constant 0 : i32
    %c0_i32_0 = arith.constant 0 : i32
    %c0_i32_1 = arith.constant 0 : i32
    return %c0_i32, %c0_i32_0 : i32, i32
  }
  func.func @transform_11(%arg0: i32) -> (i32, i32) {
    %c0_i32 = arith.constant 0 : i32
    %c0_i32_0 = arith.constant 0 : i32
    %c0_i32_1 = arith.constant 0 : i32
    return %c0_i32, %c0_i32_0 : i32, i32
  }
  func.func @transform_12(%arg0: i32) -> (i32, i32) {
    %c0_i32 = arith.constant 0 : i32
    %c0_i32_0 = arith.constant 0 : i32
    %c0_i32_1 = arith.constant 0 : i32
    return %c0_i32, %c0_i32_0 : i32, i32
  }
  func.func @transform_13(%arg0: i32) -> (i32, i32, i32) {
    %c0_i32 = arith.constant 0 : i32
    %c0_i32_0 = arith.constant 0 : i32
    %c0_i32_1 = arith.constant 0 : i32
    %c0_i32_2 = arith.constant 0 : i32
    return %c0_i32, %c0_i32_0, %c0_i32_1 : i32, i32, i32
  }
  func.func @transform_14(%arg0: i32) -> (i32, i32) {
    %c0_i32 = arith.constant 0 : i32
    %c0_i32_0 = arith.constant 0 : i32
    %c0_i32_1 = arith.constant 0 : i32
    return %c0_i32, %c0_i32_0 : i32, i32
  }
  func.func @transform_15(%arg0: i32) -> (i32, i32) {
    %c0_i32 = arith.constant 0 : i32
    %c0_i32_0 = arith.constant 0 : i32
    %c0_i32_1 = arith.constant 0 : i32
    return %c0_i32, %c0_i32_0 : i32, i32
  }
  func.func @transform_16(%arg0: i32) -> (i32, i32) {
    %c0_i32 = arith.constant 0 : i32
    %c0_i32_0 = arith.constant 0 : i32
    %c0_i32_1 = arith.constant 0 : i32
    return %c0_i32, %c0_i32_0 : i32, i32
  }
  func.func @transform_17(%arg0: i32) -> (i32, i32, i32) {
    %c0_i32 = arith.constant 0 : i32
    %c0_i32_0 = arith.constant 0 : i32
    %c0_i32_1 = arith.constant 0 : i32
    return %arg0, %c0_i32, %c0_i32_0 : i32, i32, i32
  }
}

</mosaic_0001>

<bundles_post_ra>
// kernel: squeeze.2
= control target key start
LH: loop header
LB: loop body
LE: loop exit
PB: predicated region body
PF: predicated region fallthrough
CT: control target
= control target key end

     0   :  { %vm230_vm0 = vcmask 850944   ;;  %vm265_vm1 = vcmask 916480   ;;  %vm248_vm2 = vcmask 883712   ;;  %vm283_vm3 = vcmask 949248   ;;  %s439_s20 = smov 16   ;;  %s440_s21 = smov 20   ;;  %s744_s0 = inlined_call_operand.vmem [shape: f32[2,784], index: 0, kind: input, shape index: {}]   ;;  %s745_s1 = inlined_call_operand.vmem [shape: f32[2,28,28], index: 1, kind: output, shape index: {}]  }
   0x1   :  { %v339_v0 = vld [vmem:[%s744_s0 + $0xa] sm:$0x3]  ;;  %v340_v1 = vld [vmem:[%s744_s0 + $0x8] sm:$0x3]  ;;  %v343_v2 = vld [vmem:[%s744_s0 + $0x2] sm:$0x3] }
   0x2   :  { %13 = vst [vmem:[#allocation0 + $0x28] sm:$0x3] %v339_v0  ;;  %18 = vst [vmem:[#allocation0 + $0x20] sm:$0x3] %v340_v1  ;;  %v33_v3 = vld [vmem:[%s744_s0] sm:$0x3] }
   0x3   :  { %32 = vst [vmem:[#allocation0 + $0x8] sm:$0x3] %v343_v2  ;;  %34 = vst [vmem:[#allocation0] sm:$0x3] %v33_v3  ;;  %v341_v4 = vld [vmem:[%s744_s0 + $0x6] sm:$0x3] }
   0x4   :  { %v342_v5 = vld [vmem:[%s744_s0 + $0x4] sm:$0x3]  ;;  %23 = vst [vmem:[#allocation0 + $0x18] sm:$0x3] %v341_v4  ;;  %v338_v6 = vld [vmem:[%s744_s0 + $0xc] sm:$0x3] }
   0x5   :  { %28 = vst [vmem:[#allocation0 + $0x10] sm:$0x3] %v342_v5  ;;  %8 = vst [vmem:[#allocation0 + $0x30] sm:$0x3] %v338_v6  ;;  %s438_s0 = smov 24   ;;  %vm301_vm4 = vcmask 982016  }
   0x6   :  { %vm319_vm5 = vcmask 1014784   ;;  %s441_s22 = smov 12   ;;  %vm36_vm6 = vcmask 228352   ;;  %s442_s23 = smov 8   ;;  %vm234_vm7 = vcmask 195584   ;;  %vm239_vm8 = vcmask 228544  }
   0x7   :  { %s443_s28 = smov 4   ;;  %s444_s29 = smov 124   ;;  %vm269_vm9 = vcmask 130048   ;;  %vm274_vm10 = vcmask 228480   ;;  %vm252_vm11 = vcmask 162816   ;;  %vm257_vm12 = vcmask 228512  }
   0x8   :  { %s445_s30 = smov 120   ;;  %s446_s2 = smov 116   ;;  %vm287_vm13 = vcmask 97280   ;;  %vm292_vm14 = vcmask 228448   ;;  %vm305_vm15 = vcmask 64512  }
   0x9   :  { %v227_v7 = vld [vmem:[#allocation0 + $0x20] sm:$0x3]   ;;  %v229_v8 = vld [vmem:[#allocation0 + $0x28] sm:$0x3]   ;;  %s447_s3 = smov 108   ;;  %s448_s4 = smov 104  }
   0xa   :  { %v231_v9 = vsel %vm230_vm0, %v229_v8, %v227_v7  ;;  %v262_v10 = vld [vmem:[#allocation0] sm:$0x3]   ;;  %v264_v11 = vld [vmem:[#allocation0 + $0x8] sm:$0x3]   ;;  %s449_s5 = smov 100   ;;  %s450_s6 = smov 96  }
   0xb   :  { %v280_v12 = vld [vmem:[#allocation0 + $0x28] sm:$0x3]   ;;  %232 = vrot.lane.b32.xlu0 %v231_v9, %s438_s0  ;;  %v266_v13 = vsel %vm265_vm1, %v264_v11, %v262_v10  ;;  %v247_v15 = vld [vmem:[#allocation0 + $0x18] sm:$0x3]   ;;  %v300_v20 = vld [vmem:[#allocation0 + $0x20] sm:$0x3]  }
   0xc   :  { %v245_v14 = vld [vmem:[#allocation0 + $0x10] sm:$0x3]   ;;  %267 = vrot.lane.b32.xlu1 %v266_v13, %s439_s20  ;;  %v298_v19 = vld [vmem:[#allocation0 + $0x18] sm:$0x3]   ;;  %v316_v21 = vld [vmem:[#allocation0 + $0x8] sm:$0x3]  }
   0xd   :  { %v249_v16 = vsel %vm248_vm2, %v247_v15, %v245_v14  ;;  %v282_v17 = vld [vmem:[#allocation0 + $0x30] sm:$0x3]   ;;  %v302_v23 = vsel %vm301_vm4, %v300_v20, %v298_v19  ;;  %v35_v25 = vld [vmem:[#allocation0] sm:$0x3]   ;;  %v41_v26 = vld [vmem:[#allocation0 + $0x28] sm:$0x3]  }
   0xe   :  { %v284_v18 = vsel %vm283_vm3, %v282_v17, %v280_v12  ;;  %v318_v22 = vld [vmem:[#allocation0 + $0x10] sm:$0x3]   ;;  %37 = vst.msk [vmem:[%s745_s1] sm:$0x1] %vm36_vm6, %v35_v25   ;;  %344 = vst.msk [vmem:[%s745_s1 + $0x1f] sm:$0x2] %vm36_vm6, %v35_v25  }
   0xf   :  { %250 = vrot.lane.b32.xlu0 %v249_v16, %s440_s21  ;;  %v320_v24 = vsel %vm319_vm5, %v318_v22, %v316_v21  ;;  %v50_v27 = vld [vmem:[#allocation0 + $0x18] sm:$0x3]   ;;  %v59_v28 = vld [vmem:[#allocation0 + $0x8] sm:$0x3]   ;;  %v68_v29 = vld [vmem:[#allocation0 + $0x20] sm:$0x3]  }
  0x10   :  { %285 = vrot.lane.b32.xlu1 %v284_v18, %s441_s22  ;;  %v77_v30 = vld [vmem:[#allocation0 + $0x10] sm:$0x3]   ;;  %v85_v31 = vld [vmem:[#allocation0] sm:$0x3]   ;;  %v94_v32 = vld [vmem:[#allocation0 + $0x28] sm:$0x3]  }
  0x11   :  { %v103_v33 = vld [vmem:[#allocation0 + $0x18] sm:$0x3]   ;;  %v112_v34 = vld [vmem:[#allocation0 + $0x8] sm:$0x3]   ;;  %s451_s7 = smov 92   ;;  %s452_s8 = smov 88  }
  0x12   :  { %v121_v35 = vld [vmem:[#allocation0 + $0x20] sm:$0x3]   ;;  %v130_v36 = vld [vmem:[#allocation0 + $0x10] sm:$0x3]   ;;  %s453_s9 = smov 80   ;;  %s454_s10 = smov 76  }
  0x13   :  { %303 = vrot.lane.b32.xlu0 %v302_v23, %s442_s23  ;;  %v138_v37 = vld [vmem:[#allocation0] sm:$0x3]   ;;  %v147_v38 = vld [vmem:[#allocation0 + $0x28] sm:$0x3]   ;;  %s455_s11 = smov 72   ;;  %s456_s12 = smov 68  }
  0x14   :  { %321 = vrot.lane.b32.xlu1 %v320_v24, %s443_s28  ;;  %v156_v39 = vld [vmem:[#allocation0 + $0x18] sm:$0x3]   ;;  %v165_v40 = vld [vmem:[#allocation0 + $0x8] sm:$0x3]   ;;  %s457_s13 = smov 64   ;;  %s458_s14 = smov 60  }
  0x15   :  { %v174_v41 = vld [vmem:[#allocation0 + $0x20] sm:$0x3]   ;;  %v183_v42 = vld [vmem:[#allocation0 + $0x10] sm:$0x3]   ;;  %s459_s15 = smov 52   ;;  %s460_s16 = smov 48  }
  0x16   :  { %v191_v43 = vld [vmem:[#allocation0] sm:$0x3]   ;;  %v200_v44 = vld [vmem:[#allocation0 + $0x28] sm:$0x3]   ;;  %s461_s17 = smov 44   ;;  %s462_s18 = smov 40  }
  0x17   :  { %42 = vrot.lane.b32.xlu0 %v41_v26, %s444_s29  ;;  %v209_v45 = vld [vmem:[#allocation0 + $0x18] sm:$0x3]   ;;  %v218_v46 = vld [vmem:[#allocation0 + $0x8] sm:$0x3]   ;;  %s463_s19 = smov 36   ;;  %s464_s0 = smov 32  }
  0x18   :  { %51 = vrot.lane.b32.xlu1 %v50_v27, %s445_s30  ;;  %vm310_vm0 = vcmask 228416   ;;  %vm323_vm1 = vcmask 31744   ;;  %vm328_vm2 = vcmask 228384  }
  0x1b   :  { %60 = vrot.lane.b32.xlu0 %v59_v28, %s446_s2 }
  0x1c   :  { %69 = vrot.lane.b32.xlu1 %v68_v29, %s447_s3 }
  0x1f   :  { %78 = vrot.lane.b32.xlu0 %v77_v30, %s448_s4 }
  0x20   :  { %86 = vrot.lane.b32.xlu1 %v85_v31, %s449_s5 }
  0x23   :  { %95 = vrot.lane.b32.xlu0 %v94_v32, %s450_s6 }
  0x24   :  { %104 = vrot.lane.b32.xlu1 %v103_v33, %s451_s7 }
  0x27   :  { %113 = vrot.lane.b32.xlu0 %v112_v34, %s452_s8 }
  0x28   :  { %122 = vrot.lane.b32.xlu1 %v121_v35, %s453_s9 }
  0x2b   :  { %131 = vrot.lane.b32.xlu0 %v130_v36, %s454_s10 }
  0x2c   :  { %139 = vrot.lane.b32.xlu1 %v138_v37, %s455_s11 }
  0x2f   :  { %148 = vrot.lane.b32.xlu0 %v147_v38, %s456_s12 }
  0x30   :  { %157 = vrot.lane.b32.xlu1 %v156_v39, %s457_s13 }
  0x33   :  { %166 = vrot.lane.b32.xlu0 %v165_v40, %s458_s14 }
  0x34   :  { %175 = vrot.lane.b32.xlu1 %v174_v41, %s459_s15 }
  0x37   :  { %184 = vrot.lane.b32.xlu0 %v183_v42, %s460_s16 }
  0x38   :  { %192 = vrot.lane.b32.xlu1 %v191_v43, %s461_s17 }
  0x3b   :  { %201 = vrot.lane.b32.xlu0 %v200_v44, %s462_s18 }
  0x3c   :  { %210 = vrot.lane.b32.xlu1 %v209_v45, %s463_s19 }
  0x3f   :  { %219 = vrot.lane.b32.xlu0 %v218_v46, %s464_s0 }
  0x7d   :  { %v233_v47 = vpop.permute.xlu0 %232  }
  0x7e   :  { %387 = vst.msk [vmem:[%s745_s1 + $0x16] sm:$0x1] %vm234_vm7, %v233_v47   ;;  %388 = vst.msk [vmem:[%s745_s1 + $0x35] sm:$0x2] %vm234_vm7, %v233_v47   ;;  %v268_v48 = vpop.permute.xlu1 %267  }
  0x7f   :  { %389 = vst.msk [vmem:[%s745_s1 + $0x16] sm:$0x1] %vm239_vm8, %v233_v47   ;;  %390 = vst.msk [vmem:[%s745_s1 + $0x35] sm:$0x2] %vm239_vm8, %v233_v47  }
  0x80   :  { %395 = vst.msk [vmem:[%s745_s1 + $0x4] sm:$0x1] %vm269_vm9, %v268_v48   ;;  %396 = vst.msk [vmem:[%s745_s1 + $0x23] sm:$0x2] %vm269_vm9, %v268_v48  }
  0x81   :  { %397 = vst.msk [vmem:[%s745_s1 + $0x4] sm:$0x1] %vm274_vm10, %v268_v48   ;;  %398 = vst.msk [vmem:[%s745_s1 + $0x23] sm:$0x2] %vm274_vm10, %v268_v48   ;;  %v251_v49 = vpop.permute.xlu0 %250  }
  0x82   :  { %391 = vst.msk [vmem:[%s745_s1 + $0xd] sm:$0x1] %vm252_vm11, %v251_v49   ;;  %392 = vst.msk [vmem:[%s745_s1 + $0x2c] sm:$0x2] %vm252_vm11, %v251_v49   ;;  %v286_v50 = vpop.permute.xlu1 %285  }
  0x83   :  { %393 = vst.msk [vmem:[%s745_s1 + $0xd] sm:$0x1] %vm257_vm12, %v251_v49   ;;  %394 = vst.msk [vmem:[%s745_s1 + $0x2c] sm:$0x2] %vm257_vm12, %v251_v49  }
  0x84   :  { %399 = vst.msk [vmem:[%s745_s1 + $0x1b] sm:$0x1] %vm287_vm13, %v286_v50   ;;  %400 = vst.msk [vmem:[%s745_s1 + $0x3a] sm:$0x2] %vm287_vm13, %v286_v50  }
  0x85   :  { %401 = vst.msk [vmem:[%s745_s1 + $0x1b] sm:$0x1] %vm292_vm14, %v286_v50   ;;  %402 = vst.msk [vmem:[%s745_s1 + $0x3a] sm:$0x2] %vm292_vm14, %v286_v50   ;;  %v304_v51 = vpop.permute.xlu0 %303  }
  0x86   :  { %403 = vst.msk [vmem:[%s745_s1 + $0x12] sm:$0x1] %vm305_vm15, %v304_v51   ;;  %404 = vst.msk [vmem:[%s745_s1 + $0x31] sm:$0x2] %vm305_vm15, %v304_v51   ;;  %v322_v52 = vpop.permute.xlu1 %321  }
  0x87   :  { %405 = vst.msk [vmem:[%s745_s1 + $0x12] sm:$0x1] %vm310_vm0, %v304_v51   ;;  %406 = vst.msk [vmem:[%s745_s1 + $0x31] sm:$0x2] %vm310_vm0, %v304_v51  }
  0x88   :  { %407 = vst.msk [vmem:[%s745_s1 + $0x9] sm:$0x1] %vm323_vm1, %v322_v52   ;;  %408 = vst.msk [vmem:[%s745_s1 + $0x28] sm:$0x2] %vm323_vm1, %v322_v52  }
  0x89   :  { %409 = vst.msk [vmem:[%s745_s1 + $0x9] sm:$0x1] %vm328_vm2, %v322_v52   ;;  %410 = vst.msk [vmem:[%s745_s1 + $0x28] sm:$0x2] %vm328_vm2, %v322_v52   ;;  %v43_v53 = vpop.permute.xlu0 %42  }
  0x8a   :  { %345 = vst.msk [vmem:[%s745_s1 + $0x17] sm:$0x1] %vm36_vm6, %v43_v53   ;;  %346 = vst.msk [vmem:[%s745_s1 + $0x36] sm:$0x2] %vm36_vm6, %v43_v53   ;;  %v52_v54 = vpop.permute.xlu1 %51  }
  0x8b   :  { %347 = vst.msk [vmem:[%s745_s1 + $0xe] sm:$0x1] %vm36_vm6, %v52_v54   ;;  %348 = vst.msk [vmem:[%s745_s1 + $0x2d] sm:$0x2] %vm36_vm6, %v52_v54  }
  0x8d   :  { %v61_v55 = vpop.permute.xlu0 %60  }
  0x8e   :  { %349 = vst.msk [vmem:[%s745_s1 + $0x5] sm:$0x1] %vm36_vm6, %v61_v55   ;;  %350 = vst.msk [vmem:[%s745_s1 + $0x24] sm:$0x2] %vm36_vm6, %v61_v55   ;;  %v70_v56 = vpop.permute.xlu1 %69  }
  0x8f   :  { %351 = vst.msk [vmem:[%s745_s1 + $0x13] sm:$0x1] %vm36_vm6, %v70_v56   ;;  %352 = vst.msk [vmem:[%s745_s1 + $0x32] sm:$0x2] %vm36_vm6, %v70_v56  }
  0x91   :  { %v79_v57 = vpop.permute.xlu0 %78  }
  0x92   :  { %353 = vst.msk [vmem:[%s745_s1 + $0xa] sm:$0x1] %vm36_vm6, %v79_v57   ;;  %354 = vst.msk [vmem:[%s745_s1 + $0x29] sm:$0x2] %vm36_vm6, %v79_v57   ;;  %v87_v58 = vpop.permute.xlu1 %86  }
  0x93   :  { %355 = vst.msk [vmem:[%s745_s1 + $0x1] sm:$0x1] %vm36_vm6, %v87_v58   ;;  %356 = vst.msk [vmem:[%s745_s1 + $0x20] sm:$0x2] %vm36_vm6, %v87_v58  }
  0x95   :  { %v96_v59 = vpop.permute.xlu0 %95  }
  0x96   :  { %357 = vst.msk [vmem:[%s745_s1 + $0x18] sm:$0x1] %vm36_vm6, %v96_v59   ;;  %358 = vst.msk [vmem:[%s745_s1 + $0x37] sm:$0x2] %vm36_vm6, %v96_v59   ;;  %v105_v60 = vpop.permute.xlu1 %104  }
  0x97   :  { %359 = vst.msk [vmem:[%s745_s1 + $0xf] sm:$0x1] %vm36_vm6, %v105_v60   ;;  %360 = vst.msk [vmem:[%s745_s1 + $0x2e] sm:$0x2] %vm36_vm6, %v105_v60  }
  0x99   :  { %v114_v61 = vpop.permute.xlu0 %113  }
  0x9a   :  { %361 = vst.msk [vmem:[%s745_s1 + $0x6] sm:$0x1] %vm36_vm6, %v114_v61   ;;  %362 = vst.msk [vmem:[%s745_s1 + $0x25] sm:$0x2] %vm36_vm6, %v114_v61   ;;  %v123_v62 = vpop.permute.xlu1 %122  }
  0x9b   :  { %363 = vst.msk [vmem:[%s745_s1 + $0x14] sm:$0x1] %vm36_vm6, %v123_v62   ;;  %364 = vst.msk [vmem:[%s745_s1 + $0x33] sm:$0x2] %vm36_vm6, %v123_v62  }
  0x9d   :  { %v132_v63 = vpop.permute.xlu0 %131  }
  0x9e   :  { %365 = vst.msk [vmem:[%s745_s1 + $0xb] sm:$0x1] %vm36_vm6, %v132_v63   ;;  %366 = vst.msk [vmem:[%s745_s1 + $0x2a] sm:$0x2] %vm36_vm6, %v132_v63   ;;  %v140_v0 = vpop.permute.xlu1 %139  }
  0x9f   :  { %367 = vst.msk [vmem:[%s745_s1 + $0x2] sm:$0x1] %vm36_vm6, %v140_v0   ;;  %368 = vst.msk [vmem:[%s745_s1 + $0x21] sm:$0x2] %vm36_vm6, %v140_v0  }
  0xa1   :  { %v149_v1 = vpop.permute.xlu0 %148  }
  0xa2   :  { %369 = vst.msk [vmem:[%s745_s1 + $0x19] sm:$0x1] %vm36_vm6, %v149_v1   ;;  %370 = vst.msk [vmem:[%s745_s1 + $0x38] sm:$0x2] %vm36_vm6, %v149_v1   ;;  %v158_v2 = vpop.permute.xlu1 %157  }
  0xa3   :  { %371 = vst.msk [vmem:[%s745_s1 + $0x10] sm:$0x1] %vm36_vm6, %v158_v2   ;;  %372 = vst.msk [vmem:[%s745_s1 + $0x2f] sm:$0x2] %vm36_vm6, %v158_v2  }
  0xa5   :  { %v167_v3 = vpop.permute.xlu0 %166  }
  0xa6   :  { %373 = vst.msk [vmem:[%s745_s1 + $0x7] sm:$0x1] %vm36_vm6, %v167_v3   ;;  %374 = vst.msk [vmem:[%s745_s1 + $0x26] sm:$0x2] %vm36_vm6, %v167_v3   ;;  %v176_v4 = vpop.permute.xlu1 %175  }
  0xa7   :  { %375 = vst.msk [vmem:[%s745_s1 + $0x15] sm:$0x1] %vm36_vm6, %v176_v4   ;;  %376 = vst.msk [vmem:[%s745_s1 + $0x34] sm:$0x2] %vm36_vm6, %v176_v4  }
  0xa9   :  { %v185_v5 = vpop.permute.xlu0 %184  }
  0xaa   :  { %377 = vst.msk [vmem:[%s745_s1 + $0xc] sm:$0x1] %vm36_vm6, %v185_v5   ;;  %378 = vst.msk [vmem:[%s745_s1 + $0x2b] sm:$0x2] %vm36_vm6, %v185_v5   ;;  %v193_v6 = vpop.permute.xlu1 %192  }
  0xab   :  { %379 = vst.msk [vmem:[%s745_s1 + $0x3] sm:$0x1] %vm36_vm6, %v193_v6   ;;  %380 = vst.msk [vmem:[%s745_s1 + $0x22] sm:$0x2] %vm36_vm6, %v193_v6  }
  0xad   :  { %v202_v7 = vpop.permute.xlu0 %201  }
  0xae   :  { %381 = vst.msk [vmem:[%s745_s1 + $0x1a] sm:$0x1] %vm36_vm6, %v202_v7   ;;  %382 = vst.msk [vmem:[%s745_s1 + $0x39] sm:$0x2] %vm36_vm6, %v202_v7   ;;  %v211_v8 = vpop.permute.xlu1 %210  }
  0xaf   :  { %383 = vst.msk [vmem:[%s745_s1 + $0x11] sm:$0x1] %vm36_vm6, %v211_v8   ;;  %384 = vst.msk [vmem:[%s745_s1 + $0x30] sm:$0x2] %vm36_vm6, %v211_v8  }
  0xb1   :  { %v220_v9 = vpop.permute.xlu0 %219  }
  0xb2   :  { %385 = vst.msk [vmem:[%s745_s1 + $0x8] sm:$0x1] %vm36_vm6, %v220_v9   ;;  %386 = vst.msk [vmem:[%s745_s1 + $0x27] sm:$0x2] %vm36_vm6, %v220_v9  }

// kernel: forward.4
= control target key start
LH: loop header
LB: loop body
LE: loop exit
PB: predicated region body
PF: predicated region fallthrough
CT: control target
= control target key end

     0   :  { %s1277_s9 = smov 0   ;;  %s1279_s10 = smov 0   ;;  %s1524_s0 = inlined_call_operand.vmem [shape: f32[2,28,28], index: 0, kind: input, shape index: {}]   ;;  %s1525_s1 = inlined_call_operand.vmem [shape: f32[2,1,8], index: 1, kind: input, shape index: {}]   ;;  %s1526_s2 = inlined_call_operand.vmem [shape: f32[2,1,896], index: 2, kind: output, shape index: {}]  }
   0x1   :  { %s1281_s11 = smov 0   ;;  %s1283_s12 = smov 0  }
   0x2   :  { %s1285_s13 = smov 0  }
   0x3 LB: > { %s21_s14 = sadd.s32 1, %s1241_s11  ;;  %s24_s15 = sadd.s32 1, %s1245_s12  ;;  %s1249_s13 = sphi %s1285_s13, %s12_s13   ;;  %s1245_s12 = sphi %s1283_s12, %s1538_s12   ;;  %s1241_s11 = sphi %s1281_s11, %s1537_s11   ;;  %s1237_s10 = sphi %s1279_s10, %s1536_s10   ;;  %s1233_s9 = sphi %s1277_s9, %s1535_s9  }
   0x4   : > { %p22_p0 = scmp.ge.s32.totalorder %s21_s14, 7  ;;  %p949_p1 = scmp.ge.s32.totalorder %s1249_s13, 1 }
   0x5   : > { %p134_p2 = scmp.lt.s32.totalorder %s1249_s13, 15 }
   0x6   : > { %s1540_s14 = smov (%p22_p0, %s21_s14), 0  ;;  %s1542_s15 = smov (!%p22_p0, %s24_s15), %s1245_s12 }
   0x7   : > { %p135_p3 = pnand %p949_p1, %p134_p2  ;;  %p26_p4 = scmp.ge.s32.totalorder %s1542_s15, 2 }
   0x8   : > { %p161_p5 = scmp.lt.s32.totalorder (!%p135_p3), %s1237_s10, 1  ;;  %v1251_v0 = vmov (!%p135_p3), 3   ;;  %v1252_v1 = vmov (!%p135_p3), 0   ;;  %v1253_v3 = vmov (!%p135_p3), 4   ;;  %v1254_v4 = vmov (!%p135_p3), 1   ;;  %s952_s23 = sshll.u32 (!%p135_p3), %s1233_s9, 7 }
   0x9   : > { %s1544_s15 = smov (%p26_p4, %s1542_s15), 0  ;;  %138 = sbr.rel (%p135_p3) target bundleno = 642 (0x282), region = 28 }
   0xa   : > { %1207 = vset.pattern.permute.xlu1 (!%p135_p3), %v1251_v0  ;;  %1205 = vset.pattern.permute.xlu0 (!%p135_p3), %v1252_v1  ;;  %v1255_v5 = vmov (!%p135_p3), 2   ;;  %v1256_v6 = vmov (!%p135_p3), 5   ;;  %vm322_vm0 = vcmask (!%p135_p3), 228352   ;;  %v181_v8 = vlaneseq (!%p135_p3)  ;;  %s185_s24 = scvt.s32.f32 (!%p135_p3), %s952_s23  ;;  %p171_p6 = scmp.lt.s32.totalorder (!%p135_p3), %s1233_s9, 6 }
   0xb   : > { %vm335_vm14 = vcmask (!%p135_p3), 1043456  }
   0xc   : > { %v182_v9 = vand.u32 (!%p135_p3), 127, %v181_v8  ;;  %v186_v11 = vstv (!%p135_p3), %s185_s24  ;;  %v205_v19 = vshrl.u32 (!%p135_p3), %v181_v8, 7 }
   0xe   : > { %v183_v10 = vcvt.s32.f32 (!%p135_p3), %v182_v9  ;;  %v206_v22 = vsub.s32 (!%p135_p3), 0, %v205_v19  ;;  %v268_v54 = vadd.s32 (!%p135_p3), 8, %v205_v19  ;;  %v269_v55 = vadd.s32 (!%p135_p3), 16, %v205_v19 }
   0xf   : > { %v270_v56 = vadd.s32 (!%p135_p3), 24, %v205_v19  ;;  %v1339_v62 = vcvt.s32.f32 (!%p135_p3), %v205_v19 }
  0x10   : > { %s1546_s10 = smov (!%p161_p5, %s1237_s10), 1  ;;  %v187_v12 = vadd.f32 %v186_v11, %v183_v10  ;;  %v1362_v8 = vcvt.s32.f32 %v269_v55  ;;  %s1548_s9 = smov (!%p171_p6, %s1233_s9), 6 }
  0x11   : > { %s168_s18 = scalar_lea.vmem %s1525_s1, %s1546_s10  ;;  %s1001_s19 = sshll.u32 %s1546_s10, 5  ;;  %v1364_v9 = vcvt.s32.f32 %v270_v56 }
  0x12   : > { %v176_v2 = vld [vmem:[%s168_s18] sm:$0x1]  ;;  %s1319_s22 = scalar_lea.vmem %s1524_s0, %s1001_s19  ;;  %v188_v13 = vmul.f32 0.035714287, %v187_v12  ;;  %s1153_s25 = smul.u32 7, %s1546_s10 }
  0x13   : > { %229 = vperm.xlu1 %1207, %v176_v2   ;;  %201 = vperm.xlu0 %1205, %v176_v2   ;;  %v1322_v7 = vld [vmem:[%s1319_s22] sm:$0xff]  ;;  %v178_v56 = vld [vmem:[%s1319_s22 + $0x8] sm:$0xff] }
  0x14   : > { %1047 = vmatprep.mubr.msk.f32.mxu0 %vm322_vm0, %v1322_v7  ;;  %1061 = vmatprep.mubr.msk.f32.mxu1 %vm322_vm0, %v1322_v7  ;;  %v189_v14 = vadd.f32 0.0001, %v188_v13  ;;  %s174_s26 = sadd.s32 %s1153_s25, %s1548_s9 }
  0x15   : > { %s175_s29 = scalar_lea.vmem %s1526_s2, %s174_s26 }
  0x16   : > { %v190_v15 = vfloor.f32 %v189_v14 }
  0x17   : > { %1208 = vset.pattern.permute.xlu1 %v1253_v3  ;;  %1206 = vset.pattern.permute.xlu0 %v1254_v4  ;;  %v1356_v4 = vcvt.s32.f32 %v268_v54 }
  0x18   : > { %238 = vperm.xlu1 %1208, %v176_v2   ;;  %210 = vperm.xlu0 %1206, %v176_v2   ;;  %v191_v16 = vmul.f32 28.0, %v190_v15  ;;  %v196_v20 = vadd.f32 0.5, %v190_v15 }
  0x1a   : > { %v192_v17 = vsub.f32 %v187_v12, %v191_v16  ;;  %v197_v25 = vmul.f32 0.071428575, %v196_v20  ;;  %v1257_v12 = vmov 0.0  }
  0x1c   : > { %1209 = vset.pattern.permute.xlu1 %v1255_v5  ;;  %1210 = vset.pattern.permute.xlu0 %v1256_v6  ;;  %v193_v18 = vadd.f32 0.5, %v192_v17  ;;  %v954_v29 = vadd.f32 -1.0, %v197_v25 }
  0x1d   : > { %220 = vperm.xlu1 %1209, %v176_v2   ;;  %248 = vperm.xlu0 %1210, %v176_v2  }
  0x1e   : > { %v194_v21 = vmul.f32 0.071428575, %v193_v18 }
  0x20   : > { %v953_v26 = vadd.f32 -1.0, %v194_v21 }
  0x92   : > { %v230_v23 = vpop.permute.xlu1 %229  ;;  %v202_v24 = vpop.permute.xlu0 %201 }
  0x93   : > { %v235_v27 = vrot.slane %v230_v23, %v206_v22  ;;  %v207_v28 = vrot.slane %v202_v24, %v206_v22 }
  0x95   : > { %v236_v34 = vmul.f32 %v953_v26, %v235_v27  ;;  %v208_v35 = vmul.f32 %v953_v26, %v207_v28 }
  0x97   : > { %v239_v30 = vpop.permute.xlu1 %238  ;;  %v211_v31 = vpop.permute.xlu0 %210 }
  0x98   : > { %v244_v32 = vrot.slane %v239_v30, %v206_v22  ;;  %v216_v33 = vrot.slane %v211_v31, %v206_v22 }
  0x9a   : > { %v245_v36 = vmul.f32 %v954_v29, %v244_v32  ;;  %v217_v37 = vmul.f32 %v954_v29, %v216_v33 }
  0x9c   : > { %v221_v38 = vpop.permute.xlu1 %220  ;;  %v218_v39 = vadd.f32 %v217_v37, %v208_v35  ;;  %v246_v40 = vadd.f32 %v245_v36, %v236_v34  ;;  %v249_v41 = vpop.permute.xlu0 %248 }
  0x9d   : > { %v226_v42 = vrot.slane %v221_v38, %v206_v22  ;;  %v254_v43 = vrot.slane %v249_v41, %v206_v22 }
  0x9f   : > { %v227_v44 = vadd.f32 %v226_v42, %v218_v39  ;;  %v255_v45 = vadd.f32 %v254_v43, %v246_v40 }
  0xa1   : > { %v256_v46 = vadd.f32 1.0, %v227_v44  ;;  %v259_v47 = vadd.f32 1.0, %v255_v45 }
  0xa3   : > { %v257_v48 = vmul.f32 14.0, %v256_v46  ;;  %v260_v49 = vmul.f32 14.0, %v259_v47 }
  0xa5   : > { %v955_v50 = vadd.f32 -0.5, %v257_v48  ;;  %v956_v51 = vadd.f32 -0.5, %v260_v49 }
  0xa7   : > { %v262_v52 = vfloor.f32 %v955_v50  ;;  %v1329_v53 = vfloor.f32 %v956_v51 }
  0xa9   : > { %v264_v57 = vsub.f32 %v955_v50, %v262_v52  ;;  %v432_v58 = vadd.f32 1.0, %v262_v52  ;;  %vm279_vm1 = vcmp.ge.f32.partialorder %v262_v52, 0.0  ;;  %vm280_vm2 = vcmp.le.f32.partialorder %v262_v52, 27.0 }
  0xaa   : > { %vm1331_vm3 = vmand %vm279_vm1, %vm280_vm2  ;;  %v265_v60 = vsub.f32 %v956_v51, %v1329_v53  ;;  %v1337_v61 = vadd.f32 1.0, %v1329_v53  ;;  %vm282_vm4 = vcmp.ge.f32.partialorder %v1329_v53, 0.0  ;;  %v304_v1 = vmax.f32 %v262_v52, 0.0 }
  0xab   : > { %v276_v63 = vsub.f32 1.0, %v264_v57  ;;  %vm433_vm5 = vcmp.ge.f32.partialorder %v432_v58, 0.0  ;;  %vm434_vm6 = vcmp.le.f32.partialorder %v432_v58, 27.0  ;;  %vm1346_vm7 = vmand %vm1331_vm3, %vm282_vm4  ;;  %v442_v6 = vmax.f32 %v432_v58, 0.0  ;;  %v179_v58 = vld [vmem:[%s1319_s22 + $0x10] sm:$0xff] }
  0xac   : > { %vm1350_vm8 = vmand %vm433_vm5, %vm434_vm6  ;;  %v275_v3 = vsub.f32 1.0, %v265_v60  ;;  %vm557_vm9 = vcmp.ge.f32.partialorder %v1337_v61, 0.0  ;;  %vm559_vm10 = vcmp.le.f32.partialorder %v1337_v61, 27.0  ;;  %v305_v5 = vmin.f32 %v304_v1, 27.0 }
  0xad   : > { %vm558_vm11 = vmand %vm1331_vm3, %vm557_vm9  ;;  %v561_v10 = vmul.f32 %v276_v63, %v265_v60  ;;  %vm284_vm13 = vcmp.le.f32.partialorder %v1329_v53, 27.0  ;;  %v443_v14 = vmin.f32 %v442_v6, 27.0  ;;  %v681_v16 = vmul.f32 %v265_v60, %v264_v57 }
  0xae   : > { %vm560_vm12 = vmand %vm558_vm11, %vm559_vm10  ;;  %v286_v11 = vmul.f32 %v276_v63, %v275_v3  ;;  %vm306_vm1 = vcmp.eq.f32.partialorder %v1339_v62, %v305_v5  ;;  %v438_v15 = vmul.f32 %v275_v3, %v264_v57  ;;  %vm307_vm3 = vcmp.eq.f32.partialorder %v1356_v4, %v305_v5  ;;  %v180_v63 = vld [vmem:[%s1319_s22 + $0x18] sm:$0xf] }
  0xaf   : > { %v981_v13 = vsel %vm560_vm12, 1.0, %v1257_v12  ;;  %vm679_vm15 = vmand %vm1350_vm8, %vm557_vm9  ;;  %v290_v17 = vmax.f32 %v1329_v53, 0.0  ;;  %vm444_vm6 = vcmp.eq.f32.partialorder %v1339_v62, %v443_v14  ;;  %vm445_vm9 = vcmp.eq.f32.partialorder %v1356_v4, %v443_v14 }
  0xb0   : > { %vm680_vm2 = vmand %vm679_vm15, %vm559_vm10  ;;  %vm308_vm11 = vcmp.eq.f32.partialorder %v1362_v8, %v305_v5  ;;  %vm309_vm12 = vcmp.eq.f32.partialorder %v1364_v9, %v305_v5  ;;  %v564_v18 = vmul.f32 %v981_v13, %v561_v10  ;;  %v962_v20 = vsel %vm306_vm1, 1.0, %v1257_v12 }
  0xb1   : > { %vm285_vm5 = vmand %vm1346_vm7, %vm284_vm13  ;;  %v565_v21 = vmax.f32 %v1337_v61, 0.0  ;;  %v991_v22 = vsel %vm680_vm2, 1.0, %v1257_v12  ;;  %v963_v24 = vsel %vm307_vm3, 1.0, %v1257_v12  ;;  %v972_v25 = vsel %vm444_vm6, 1.0, %v1257_v12 }
  0xb2   : > { %v957_v19 = vsel %vm285_vm5, 1.0, %v1257_v12  ;;  %vm436_vm10 = vmand %vm1350_vm8, %vm282_vm4  ;;  %v973_v27 = vsel %vm445_vm9, 1.0, %v1257_v12  ;;  %v964_v28 = vsel %vm308_vm11, 1.0, %v1257_v12  ;;  %v965_v29 = vsel %vm309_vm12, 1.0, %v1257_v12 }
  0xb3   : > { %v289_v23 = vmul.f32 %v957_v19, %v286_v11  ;;  %vm437_vm7 = vmand %vm436_vm10, %vm284_vm13  ;;  %v684_v34 = vmul.f32 %v991_v22, %v681_v16  ;;  %vm446_vm4 = vcmp.eq.f32.partialorder %v1362_v8, %v443_v14  ;;  %vm447_vm8 = vcmp.eq.f32.partialorder %v1364_v9, %v443_v14 }
  0xb4   : > { %v971_v26 = vsel %vm437_vm7, 1.0, %v1257_v12  ;;  %v974_v39 = vsel %vm446_vm4, 1.0, %v1257_v12  ;;  %v579_v40 = vmul.f32 %v962_v20, %v564_v18  ;;  %vm1258_vm13 = vmmov 1  }
  0xb5   : > { %v318_v30 = vmul.f32 %v962_v20, %v289_v23  ;;  %v319_v31 = vmul.f32 %v963_v24, %v289_v23  ;;  %v441_v32 = vmul.f32 %v971_v26, %v438_v15  ;;  %v320_v33 = vmul.f32 %v964_v28, %v289_v23  ;;  %vm1407_vm15 = vmpackc.low %vm335_vm14, %vm1258_vm13 }
  0xb6   : > { %v321_v35 = vmul.f32 %v965_v29, %v289_v23  ;;  %v975_v42 = vsel %vm447_vm8, 1.0, %v1257_v12  ;;  %v580_v44 = vmul.f32 %v963_v24, %v564_v18  ;;  %v1412_v48 = vmin.f32 %v290_v17, 27.0 }
  0xb7   : > { %v1106_v36 = vpack.c.bf16 %v319_v31, %v318_v30  ;;  %v456_v37 = vmul.f32 %v972_v25, %v441_v32  ;;  %v457_v38 = vmul.f32 %v973_v27, %v441_v32  ;;  %v458_v43 = vmul.f32 %v974_v39, %v441_v32 }
  0xb8   : > { %v1110_v46 = vpack.c.bf16 %v321_v35, %v320_v33  ;;  %v459_v47 = vmul.f32 %v975_v42, %v441_v32  ;;  %v1414_v49 = vmin.f32 %v565_v21, 27.0  ;;  %v685_v50 = vmul.f32 %v972_v25, %v684_v34 }
  0xb9   : > { %1107 = vmatprep.subr.bf16.mxu0 %v1106_v36  ;;  %v1116_v45 = vpack.c.bf16 %v457_v38, %v456_v37  ;;  %v686_v51 = vmul.f32 %v973_v27, %v684_v34  ;;  %vm293_vm14 = vcmp.eq.f32.partialorder %v1356_v4, %v1412_v48  ;;  %vm292_vm1 = vcmp.eq.f32.partialorder %v1339_v62, %v1412_v48 }
  0xba   : > { %1109 = vmatpush3.bf16.msra.mxu0 %v1106_v36  ;;  %v1120_v52 = vpack.c.bf16 %v459_v47, %v458_v43  ;;  %vm295_vm2 = vcmp.eq.f32.partialorder %v1364_v9, %v1412_v48  ;;  %v1126_v53 = vpack.c.bf16 %v580_v44, %v579_v40  ;;  %v581_v54 = vmul.f32 %v964_v28, %v564_v18 }
  0xbb   : > { %1117 = vmatprep.subr.bf16.mxu1 %v1116_v45  ;;  %1112 = vmatprep.subr.msk.bf16.mxu0 %vm1407_vm15, %v1110_v46  ;;  %v582_v55 = vmul.f32 %v965_v29, %v564_v18  ;;  %vm294_vm3 = vcmp.eq.f32.partialorder %v1362_v8, %v1412_v48  ;;  %vm568_vm5 = vcmp.eq.f32.partialorder %v1356_v4, %v1414_v49  ;;  %v1259_v1 = vmov 0.0|0.0  }
  0xbc   : > { %1119 = vmatpush3.bf16.msra.mxu1 %v1116_v45  ;;  %vm567_vm6 = vcmp.eq.f32.partialorder %v1339_v62, %v1414_v49  ;;  %vm570_vm9 = vcmp.eq.f32.partialorder %v1364_v9, %v1414_v49  ;;  %v1136_v57 = vpack.c.bf16 %v686_v51, %v685_v50  ;;  %v687_v59 = vmul.f32 %v974_v39, %v684_v34 }
  0xbd   : > { %1122 = vmatprep.subr.msk.bf16.mxu1 %vm1407_vm15, %v1120_v52  ;;  %v688_v60 = vmul.f32 %v975_v42, %v684_v34  ;;  %vm569_vm11 = vcmp.eq.f32.partialorder %v1362_v8, %v1414_v49  ;;  %v1130_v61 = vpack.c.bf16 %v582_v55, %v581_v54  ;;  %vm1260_vm12 = vmmov 0  }
  0xbe   : > { %1115 = vmatpush3.bf16.msk.msra.mxu0 %vm1407_vm15, %v1110_v46  ;;  %v958_v5 = vsel %vm292_vm1, 1.0, %v1257_v12  ;;  %v961_v16 = vsel %vm295_vm2, 1.0, %v1257_v12  ;;  %v960_v20 = vsel %vm294_vm3, 1.0, %v1257_v12  ;;  %v983_v28 = vsel %vm568_vm5, 1.0, %v1257_v12 }
  0xbf   : > { %1127 = vmatprep.subr.bf16.mxu0 %v1126_v53  ;;  %v1140_v0 = vpack.c.bf16 %v688_v60, %v687_v59  ;;  %v982_v32 = vsel %vm567_vm6, 1.0, %v1257_v12  ;;  %v985_v4 = vsel %vm570_vm9, 1.0, %v1257_v12  ;;  %v984_v62 = vsel %vm569_vm11, 1.0, %v1257_v12 }
  0xc0   : > { %1125 = vmatpush3.bf16.msk.msra.mxu1 %vm1407_vm15, %v1120_v52  ;;  %v1261_v8 = vmov 1.0  }
  0xc1   : > { %1137 = vmatprep.subr.bf16.mxu1 %v1136_v57  ;;  %1048 = vmatmul.mubr.msk.f32.vlgmr.msra.gmra.mrb[0].mxu0 %vm322_vm0, %v178_v56 }
  0xc2   : > { %1129 = vmatpush3.bf16.msra.mxu0 %v1126_v53  ;;  %1050 = vmatprep.mubr.msk.f32.mxu0 %vm322_vm0, %v179_v58 }
  0xc3   : > { %1062 = vmatmul.mubr.msk.f32.vlgmr.msra.gmra.mrb[0].mxu1 %vm322_vm0, %v178_v56  ;;  %1132 = vmatprep.subr.msk.bf16.mxu0 %vm1407_vm15, %v1130_v61 }
  0xc4   : > { %1139 = vmatpush3.bf16.msra.mxu1 %v1136_v57  ;;  %1064 = vmatprep.mubr.msk.f32.mxu1 %vm322_vm0, %v179_v58 }
  0xc5   : > { %1142 = vmatprep.subr.msk.bf16.mxu1 %vm1407_vm15, %v1140_v0  ;;  %1051 = vmatmul.mubr.msk.f32.gmra.mrb[2].mxu0 %vm322_vm0, %v180_v63 }
  0xc6   : > { %1135 = vmatpush3.bf16.msk.msra.mxu0 %vm1407_vm15, %v1130_v61  ;;  %1075 = vmatprep.mubr.msk.f32.mxu0 %vm322_vm0, %v1322_v7 }
  0xc7   : > { %1065 = vmatmul.mubr.msk.f32.gmra.mrb[2].mxu1 %vm322_vm0, %v180_v63  ;;  %1146 = vmatprep.subr.bf16.mxu0 %v1259_v1 }
  0xc8   : > { %1145 = vmatpush3.bf16.msk.msra.mxu1 %vm1407_vm15, %v1140_v0  ;;  %1089 = vmatprep.mubr.msk.f32.mxu1 %vm322_vm0, %v1322_v7  ;;  %v959_v7 = vsel %vm293_vm14, 1.0, %v1257_v12 }
  0xc9   : > { %1076 = vmatmul.mubr.msk.f32.vlgmr.msra.gmra.mrb[4].mxu0 %vm322_vm0, %v178_v56 }
  0xca   : > { %1078 = vmatprep.mubr.msk.f32.mxu0 %vm322_vm0, %v179_v58 }
  0xcb   : > { %1090 = vmatmul.mubr.msk.f32.vlgmr.msra.gmra.mrb[4].mxu1 %vm322_vm0, %v178_v56 }
  0xcc   : > { %1092 = vmatprep.mubr.msk.f32.mxu1 %vm322_vm0, %v179_v58 }
  0xcd   : > { %1079 = vmatmul.mubr.msk.f32.gmra.mrb[6].mxu0 %vm322_vm0, %v180_v63 }
  0xce   : > { %1103 = vmatprep.mubr.msk.f32.mxu0 %vm1260_vm12, %v1257_v12 }
  0xcf   : > { %1093 = vmatmul.mubr.msk.f32.gmra.mrb[6].mxu1 %vm322_vm0, %v180_v63 }
 0x194   : > { %v1049_v2 = vpop.f32.mrb[0].mxu0 }
 0x195   : > { %v425_v3 = vmul.f32 %v1049_v2, %v959_v7  ;;  %v405_v6 = vpop.f32.mrb[1].mxu0 }
 0x196   : > { %v424_v10 = vmul.f32 %v958_v5, %v405_v6  ;;  %v1063_v11 = vpop.f32.mrb[0].mxu1 }
 0x197   : > { %v549_v13 = vmul.f32 %v1063_v11, %v959_v7  ;;  %v529_v14 = vpop.f32.mrb[1].mxu1 }
 0x198   : > { %v548_v15 = vmul.f32 %v958_v5, %v529_v14  ;;  %v1052_v17 = vpop.f32.mrb[2].mxu0 }
 0x199   : > { %v553_v18 = vadd.f32 %v549_v13, %v425_v3  ;;  %v427_v19 = vmul.f32 %v1052_v17, %v961_v16  ;;  %v415_v21 = vpop.f32.mrb[3].mxu0 }
 0x19a   : > { %v552_v22 = vadd.f32 %v548_v15, %v424_v10  ;;  %v426_v23 = vmul.f32 %v960_v20, %v415_v21  ;;  %v1066_v24 = vpop.f32.mrb[2].mxu1 }
 0x19b   : > { %v551_v25 = vmul.f32 %v1066_v24, %v961_v16  ;;  %v539_v26 = vpop.f32.mrb[3].mxu1 }
 0x19c   : > { %v550_v27 = vmul.f32 %v960_v20, %v539_v26  ;;  %v1077_v29 = vpop.f32.mrb[4].mxu0 }
 0x19d   : > { %v555_v30 = vadd.f32 %v551_v25, %v427_v19  ;;  %v672_v31 = vmul.f32 %v1077_v29, %v983_v28  ;;  %v652_v33 = vpop.f32.mrb[5].mxu0 }
 0x19e   : > { %v554_v34 = vadd.f32 %v550_v27, %v426_v23  ;;  %v671_v35 = vmul.f32 %v982_v32, %v652_v33  ;;  %v1091_v36 = vpop.f32.mrb[4].mxu1 }
 0x19f   : > { %v676_v37 = vadd.f32 %v672_v31, %v553_v18  ;;  %v778_v38 = vmul.f32 %v1091_v36, %v983_v28  ;;  %v758_v39 = vpop.f32.mrb[5].mxu1 }
 0x1a0   : > { %v675_v40 = vadd.f32 %v671_v35, %v552_v22  ;;  %v777_v42 = vmul.f32 %v982_v32, %v758_v39  ;;  %v1080_v43 = vpop.f32.mrb[6].mxu0 }
 0x1a1   : > { %v782_v44 = vadd.f32 %v778_v38, %v676_v37  ;;  %v674_v45 = vmul.f32 %v1080_v43, %v985_v4  ;;  %v662_v46 = vpop.f32.mrb[7].mxu0 }
 0x1a2   : > { %v781_v47 = vadd.f32 %v777_v42, %v675_v40  ;;  %v673_v48 = vmul.f32 %v984_v62, %v662_v46  ;;  %v1094_v50 = vpop.f32.mrb[6].mxu1 }
 0x1a3   : > { %v678_v51 = vadd.f32 %v674_v45, %v555_v30  ;;  %v780_v52 = vmul.f32 %v1094_v50, %v985_v4  ;;  %v768_v53 = vpop.f32.mrb[7].mxu1 }
 0x1a4   : > { %v1147_v9 = vpack.c.bf16 %v782_v44, %v781_v47  ;;  %v677_v54 = vadd.f32 %v673_v48, %v554_v34  ;;  %v779_v55 = vmul.f32 %v984_v62, %v768_v53 }
 0x1a5   : > { %v784_v56 = vadd.f32 %v780_v52, %v678_v51 }
 0x1a6   : > { %v783_v57 = vadd.f32 %v779_v55, %v677_v54  ;;  %1148 = vmatpush3.bf16.msra.mxu0 %v1147_v9 }
 0x1a7   : > { %1149 = vmatprep.subr.bf16.mxu0 %v1259_v1 }
 0x1a8   : > { %v1150_v58 = vpack.c.bf16 %v784_v56, %v783_v57 }
 0x1aa   : > { %1152 = vmatpush3.bf16.msk.msra.mxu0 %vm1407_vm15, %v1150_v58 }
 0x1ad   : > { %1104 = vmatmul.mubr.msk.f32.vlgmr.msra.gmra.mrb[8].mxu0 %vm322_vm0, %v1261_v8 }
 0x280   : > { %v857_v12 = vpop.f32.mrb[8].mxu0 }
 0x281   : > { %861 = vst [vmem:[%s175_s29] sm:$0x1] %v857_v12  ;;  %v1105_v49 = vpop.f32.mrb[9].mxu0 }
 0x282 PF: > { %s12_s13 = sadd.s32 1, %s1249_s13   ;;  %s1535_s9 = smov %s1241_s11 }
 0x283   : > { %p9_p7 = scmp.ge.s32.totalorder %s12_s13, 16   ;;  %s1536_s10 = smov %s1245_s12 }
 0x284   : > { %s1537_s11 = smov %s1540_s14  ;;  %s1538_s12 = smov %s1544_s15 }
 0x285   :  { %11 = sbr.rel (!%p9_p7) target bundleno = 3 (0x3), region = 61 }

// kernel: forward.3
= control target key start
LH: loop header
LB: loop body
LE: loop exit
PB: predicated region body
PF: predicated region fallthrough
CT: control target
= control target key end

     0   :  { %s3520_s24 = smov 0   ;;  %s4182_s0 = inlined_call_operand.vmem [shape: f32[2,28,28], index: 0, kind: input, shape index: {}]   ;;  %s4183_s1 = inlined_call_operand.vmem [shape: bf16[7,28,176], index: 1, kind: input, shape index: {}]   ;;  %s4184_s2 = inlined_call_operand.vmem [shape: f32[1,176], index: 2, kind: input, shape index: {}]   ;;  %s4185_s3 = inlined_call_operand.vmem [shape: f32[11,22], index: 3, kind: input, shape index: {}]   ;;  %s4186_s4 = inlined_call_operand.vmem [shape: f32[11,22], index: 4, kind: input, shape index: {}]   ;;  %s4187_s5 = inlined_call_operand.vmem [shape: f32[176,88], index: 5, kind: input, shape index: {}]   ;;  %s4188_s6 = inlined_call_operand.vmem [shape: f32[176,88], index: 6, kind: input, shape index: {}]   ;;  %s4189_s7 = inlined_call_operand.vmem [shape: bf16[5,88,70], index: 7, kind: input, shape index: {}]   ;;  %s4190_s8 = inlined_call_operand.vmem [shape: f32[1,70], index: 8, kind: input, shape index: {}]   ;;  %s4191_s9 = inlined_call_operand.vmem [shape: f32[3,7], index: 9, kind: input, shape index: {}]   ;;  %s4192_s10 = inlined_call_operand.vmem [shape: f32[3,7], index: 10, kind: input, shape index: {}]   ;;  %s4193_s11 = inlined_call_operand.vmem [shape: f32[70,30], index: 11, kind: input, shape index: {}]   ;;  %s4194_s12 = inlined_call_operand.vmem [shape: f32[70,30], index: 12, kind: input, shape index: {}]   ;;  %s4195_s13 = inlined_call_operand.vmem [shape: bf16[3,30,32], index: 13, kind: input, shape index: {}]   ;;  %s4196_s14 = inlined_call_operand.vmem [shape: f32[1,32], index: 14, kind: input, shape index: {}]   ;;  %s4197_s15 = inlined_call_operand.vmem [shape: bf16[32,8], index: 15, kind: input, shape index: {}]   ;;  %s4198_s16 = inlined_call_operand.vmem [shape: f32[1,8], index: 16, kind: input, shape index: {}]   ;;  %s4199_s17 = inlined_call_operand.vmem [shape: f32[2,1,8], index: 17, kind: output, shape index: {}]  }
   0x1   :  { %4201 = sst [smem:[#allocation2_spill]] %s4182_s0 }
   0x2   :  { %4202 = sst [smem:[#allocation3_spill]] %s4183_s1 }
   0x3 LB: > { %s2757_s25 = sadd.s32 4294967295, %s3424_s24   ;;  %p2761_p0 = scmp.ge.s32.totalorder %s3424_s24, 1  ;;  %s3424_s24 = sphi %s3520_s24, %s27_s24  }
   0x4   : > { %p487_p1 = scmp.lt.s32.totalorder %s3424_s24, 3 }
   0x6   : > { %p488_p2 = pnand %p2761_p0, %p487_p1 }
   0x7   : > { %s4203_s28 = sld [smem:[#allocation3_spill]] (!%p488_p2)  ;;  %vm602_vm0 = vcmask (!%p488_p2), 1045504   ;;  %v3426_v2 = vmov (!%p488_p2), 0   ;;  %p537_p3 = scmp.lt.s32.totalorder (!%p488_p2), %s2757_s25, 1  ;;  %vm561_vm1 = vsmask.f32 (!%p488_p2), 7424 }
   0x8   : > { %491 = sbr.rel (%p488_p2) target bundleno = 2001 (0x7d1), region = 88  ;;  %641 = vmatprep.mubr.bf16.mxu0 (!%p488_p2), %v3426_v2  ;;  %s4204_s27 = sld [smem:[#allocation2_spill]] (!%p488_p2)  ;;  %vm595_vm2 = vcmask (!%p488_p2), 228352   ;;  %vm746_vm3 = vcmask (!%p488_p2), 1046528   ;;  %vm843_vm4 = vsmask.f32 (!%p488_p2), 6400 }
   0x9   : > { %vm1045_vm5 = vsmask.f32 (!%p488_p2), 5376  ;;  %vm1145_vm6 = vcmask (!%p488_p2), 1044480   ;;  %vm1256_vm7 = vcmask (!%p488_p2), 179200   ;;  %vm1457_vm8 = vcmask (!%p488_p2), 392192  }
   0xa   : > { %vm1708_vm9 = vcmask (!%p488_p2), 1043456   ;;  %vm3429_vm10 = vmmov (!%p488_p2), 0   ;;  %vm1704_vm11 = vcmask (!%p488_p2), 719872   ;;  %vm2127_vm12 = vcmask (!%p488_p2), 56320  }
   0xb   : > { %vm2289_vm13 = vcmask (!%p488_p2), 572416   ;;  %vm2467_vm14 = vcmask (!%p488_p2), 244736   ;;  %vm2664_vm15 = vcmask (!%p488_p2), 261120  }
   0xd   : > { %v3338_v0 = vld [vmem:[%s4203_s28 + $0x24] ss:$8 sps:$4 sm:$0xff] (!%p488_p2)   ;;  %v3340_v1 = vld [vmem:[%s4203_s28 + $0x20] ss:$8 sps:$4 sm:$0xff] (!%p488_p2)  }
   0xe   : > { %609 = vmatprep.subr.bf16.mxu0 (!%p488_p2), %v3338_v0  ;;  %v3341_v3 = vld [vmem:[%s4203_s28 + $0x34] ss:$8 sps:$4 sm:$0x3f] (!%p488_p2)   ;;  %v3343_v4 = vld [vmem:[%s4203_s28 + $0x30] ss:$8 sps:$4 sm:$0x3f] (!%p488_p2)  }
   0xf   : > { %610 = vmatpush1.bf16.msra.mxu0 %v3340_v1  ;;  %s4206_s25 = smov (!%p537_p3, %s2757_s25), 1  ;;  %v604_v5 = vsel %vm602_vm0, %v3343_v4, 0  ;;  %v3346_v6 = vld [vmem:[%s4203_s28 + $0x4] ss:$8 sps:$4 sm:$0xff]   ;;  %v3344_v17 = vld [vmem:[%s4203_s28] ss:$8 sps:$4 sm:$0xff]  }
  0x10   : > { %2772 = vmatprep.subr.msk.bf16.mxu0 %vm602_vm0, %v3341_v3  ;;  %s2959_s22 = sshll.u32 %s4206_s25, 5  ;;  %v3347_v19 = vld [vmem:[%s4203_s28 + $0x14] ss:$8 sps:$4 sm:$0x3f]   ;;  %v3352_v24 = vld [vmem:[%s4203_s28 + $0x44] ss:$8 sps:$4 sm:$0xff]   ;;  %s544_s20 = scalar_lea.vmem %s4199_s17, %s4206_s25 }
  0x11   : > { %s3552_s29 = scalar_lea.vmem %s4204_s27, %s2959_s22  ;;  %v3349_v20 = vld [vmem:[%s4203_s28 + $0x10] ss:$8 sps:$4 sm:$0x3f]   ;;  %v3350_v33 = vld [vmem:[%s4203_s28 + $0x40] ss:$8 sps:$4 sm:$0xff]  }
  0x12   : > { %v546_v7 = vld [vmem:[%s3552_s29] sm:$0xff]  ;;  %v547_v8 = vld [vmem:[%s3552_s29 + $0x8] sm:$0xff]  ;;  %v548_v9 = vld [vmem:[%s3552_s29 + $0x10] sm:$0xff]  ;;  %v683_v23 = vsel %vm602_vm0, %v3349_v20, 0 }
  0x13   : > { %612 = vmatpush1.bf16.msra.mxu0 %v604_v5  ;;  %v3557_v10 = vpack.c.bf16 %v547_v8, %v546_v7  ;;  %v3559_v11 = vpack.c.bf16 %v548_v9, %v548_v9  ;;  %v3355_v28 = vld [vmem:[%s4203_s28 + $0x50] ss:$8 sps:$4 sm:$0x3f]   ;;  %v3353_v34 = vld [vmem:[%s4203_s28 + $0x54] ss:$8 sps:$4 sm:$0x3f]  }
  0x14   : > { %688 = vmatprep.subr.bf16.mxu0 %v3346_v6  ;;  %v775_v31 = vsel %vm602_vm0, %v3355_v28, 0  ;;  %v3358_v35 = vld [vmem:[%s4203_s28 + $0x64] ss:$8 sps:$4 sm:$0xff]   ;;  %v549_v36 = vld [vmem:[%s3552_s29 + $0x18] sm:$0xf] }
  0x15   : > { %v3562_v12 = vshrl.u32 %v3557_v10, 16  ;;  %v3565_v13 = vshll.u32 %v3557_v10, 16  ;;  %v570_v14 = vshll.u32 %v3559_v11, 16  ;;  %v574_v22 = vshrl.u32 %v3559_v11, 16  ;;  %v3356_v37 = vld [vmem:[%s4203_s28 + $0x60] ss:$8 sps:$4 sm:$0xff]  }
  0x16   : > { %v747_v30 = vrot.slane %v3557_v10, 1  ;;  %v748_v32 = vrot.slane %v3559_v11, 1  ;;  %v3359_v38 = vld [vmem:[%s4203_s28 + $0x74] ss:$8 sps:$4 sm:$0x3f]   ;;  %v3625_v40 = vpack.c.bf16 %v549_v36, %v548_v9  ;;  %v950_v58 = vrot.slane %v3557_v10, 2 }
  0x17   : > { %v567_v15 = vrot.slane %v3565_v13, 1  ;;  %v572_v16 = vrot.slane %v570_v14, 1  ;;  %v1046_v25 = vrot.slane %v3562_v12, 2  ;;  %v1047_v27 = vrot.slane %v3565_v13, 3  ;;  %v3364_v45 = vld [vmem:[%s4203_s28 + $0x84] ss:$8 sps:$4 sm:$0xff]  }
  0x18   : > { %v3361_v39 = vld [vmem:[%s4203_s28 + $0x70] ss:$8 sps:$4 sm:$0x3f]   ;;  %v749_v41 = vsel %vm746_vm3, %v747_v30, %v748_v32  ;;  %v848_v42 = vshrl.u32 %v3625_v40, 16  ;;  %v851_v43 = vshll.u32 %v3625_v40, 16  ;;  %v844_v46 = vrot.slane %v3562_v12, 1 }
  0x19   : > { %v568_v18 = vor.u32 %v567_v15, %v3562_v12  ;;  %v576_v26 = vor.u32 %v574_v22, %v572_v16  ;;  %v3592_v29 = vor.u32 %v1047_v27, %v1046_v25  ;;  %v881_v44 = vsel %vm602_vm0, %v3361_v39, 0  ;;  %v3362_v53 = vld [vmem:[%s4203_s28 + $0x80] ss:$8 sps:$4 sm:$0xff]   ;;  %v3365_v54 = vld [vmem:[%s4203_s28 + $0x94] ss:$8 sps:$4 sm:$0x3f]  }
  0x1a   : > { %v845_v47 = vrot.slane %v3565_v13, 2  ;;  %v850_v48 = vrot.slane %v848_v42, 1  ;;  %v853_v49 = vrot.slane %v851_v43, 2  ;;  %v3367_v55 = vld [vmem:[%s4203_s28 + $0x90] ss:$8 sps:$4 sm:$0x3f]  }
  0x1b   : > { %v573_v21 = vsel %vm561_vm1, %v568_v18, %v572_v16  ;;  %v978_v56 = vsel %vm602_vm0, %v3367_v55, 0  ;;  %v3370_v57 = vld [vmem:[%s4203_s28 + $0xa4] ss:$8 sps:$4 sm:$0xff]   ;;  %v951_v59 = vrot.slane %v3625_v40, 2  ;;  %v3368_v61 = vld [vmem:[%s4203_s28 + $0xa0] ss:$8 sps:$4 sm:$0xff]  }
  0x1c   : > { %2773 = vmatmul.mubr.msk.bf16.vlgmr.msra.gmra.mrb[0].mxu0 %vm595_vm2, %v573_v21  ;;  %v846_v50 = vor.u32 %v845_v47, %v844_v46  ;;  %v854_v51 = vor.u32 %v853_v49, %v850_v48  ;;  %v3371_v62 = vld [vmem:[%s4203_s28 + $0xb4] ss:$8 sps:$4 sm:$0x3f]   ;;  %v3373_v63 = vld [vmem:[%s4203_s28 + $0xb0] ss:$8 sps:$4 sm:$0x3f]  }
  0x1d   : > { %651 = vmatprep.mubr.bf16.mxu0 %v3426_v2  ;;  %689 = vmatpush1.bf16.msra.mxu0 %v3344_v17  ;;  %v952_v60 = vsel %vm602_vm0, %v950_v58, %v951_v59  ;;  %v1078_v0 = vsel %vm602_vm0, %v3373_v63, 0  ;;  %v3376_v1 = vld [vmem:[%s4203_s28 + $0xc4] ss:$8 sps:$4 sm:$0xff]   ;;  %v1049_v3 = vrot.slane %v848_v42, 2  ;;  %v1050_v4 = vrot.slane %v851_v43, 3 }
  0x1e   : > { %2779 = vmatprep.subr.msk.bf16.mxu0 %vm602_vm0, %v3347_v19  ;;  %v855_v52 = vsel %vm843_vm4, %v846_v50, %v854_v51  ;;  %v3374_v7 = vld [vmem:[%s4203_s28 + $0xc0] ss:$8 sps:$4 sm:$0xff]   ;;  %v3377_v8 = vld [vmem:[%s4203_s28 + $0xd4] ss:$8 sps:$4 sm:$0x3f]   ;;  %v1146_v12 = vrot.slane %v3557_v10, 3  ;;  %v1238_v42 = vlaneseq }
  0x1f   : > { %v1051_v5 = vor.u32 %v1050_v4, %v1049_v3  ;;  %v3379_v9 = vld [vmem:[%s4203_s28 + $0xd0] ss:$8 sps:$4 sm:$0x3f]   ;;  %v1147_v13 = vrot.slane %v3625_v40, 3  ;;  %v3427_v15 = vmov 0.0  }
  0x20   : > { %1333 = vmatprep.mubr.f32.mxu1 %v3427_v15  ;;  %v1239_v43 = vshrl.u32 %v1238_v42, 7  ;;  %v1453_v42 = vld [vmem:[%s4187_s5 + $0x90] sm:$0xff] }
  0x21   : > { %691 = vmatpush1.bf16.msra.mxu0 %v683_v23  ;;  %v1052_v6 = vsel %vm1045_vm5, %v3592_v29, %v1051_v5  ;;  %v1148_v14 = vsel %vm1145_vm6, %v1146_v12, %v1147_v13  ;;  %v1255_v12 = vld [vmem:[%s4185_s3 + $0x8] sm:$0x7] }
  0x22   : > { %780 = vmatprep.subr.bf16.mxu0 %v3352_v24  ;;  %v1240_v50 = vsub.s32 0, %v1239_v43 }
  0x24   : > { %2774 = vmatmul.mubr.msk.bf16.gmra.mrb[4].mxu0 %vm595_vm2, %v576_v26 }
  0x25   : > { %720 = vmatprep.mubr.bf16.mxu0 %v3426_v2 }
  0x2c   : > { %2780 = vmatmul.mubr.msk.bf16.vlgmr.msra.gmra.mrb[0].mxu0 %vm595_vm2, %v3557_v10 }
  0x2d   : > { %730 = vmatprep.mubr.bf16.mxu0 %v3426_v2  ;;  %781 = vmatpush1.bf16.msra.mxu0 %v3350_v33 }
  0x2e   : > { %2790 = vmatprep.subr.msk.bf16.mxu0 %vm602_vm0, %v3353_v34 }
  0x31   : > { %783 = vmatpush1.bf16.msra.mxu0 %v775_v31 }
  0x32   : > { %886 = vmatprep.subr.bf16.mxu0 %v3358_v35 }
  0x34   : > { %2781 = vmatmul.mubr.msk.bf16.gmra.mrb[8].mxu0 %vm595_vm2, %v3559_v11  ;;  %v1174_v11 = vsel %vm602_vm0, %v3379_v9, 0 }
  0x35   : > { %812 = vmatprep.mubr.bf16.mxu0 %v3426_v2 }
  0x3c   : > { %2791 = vmatmul.mubr.msk.bf16.vlgmr.msra.gmra.mrb[0].mxu0 %vm595_vm2, %v749_v41 }
  0x3d   : > { %822 = vmatprep.mubr.bf16.mxu0 %v3426_v2  ;;  %887 = vmatpush1.bf16.msra.mxu0 %v3356_v37 }
  0x3e   : > { %2801 = vmatprep.subr.msk.bf16.mxu0 %vm602_vm0, %v3359_v38 }
  0x41   : > { %889 = vmatpush1.bf16.msra.mxu0 %v881_v44 }
  0x42   : > { %983 = vmatprep.subr.bf16.mxu0 %v3364_v45 }
  0x44   : > { %2792 = vmatmul.mubr.msk.bf16.gmra.mrb[12].mxu0 %vm595_vm2, %v748_v32 }
  0x45   : > { %918 = vmatprep.mubr.bf16.mxu0 %v3426_v2 }
  0x4c   : > { %2802 = vmatmul.mubr.msk.bf16.vlgmr.msra.gmra.mrb[0].mxu0 %vm595_vm2, %v855_v52  ;;  %v1244_v52 = vsub.s32 1, %v1239_v43  ;;  %v1454_v43 = vld [vmem:[%s4187_s5 + $0x98] sm:$0xff] }
  0x4d   : > { %928 = vmatprep.mubr.bf16.mxu0 %v3426_v2  ;;  %984 = vmatpush1.bf16.msra.mxu0 %v3362_v53 }
  0x4e   : > { %2812 = vmatprep.subr.msk.bf16.mxu0 %vm602_vm0, %v3365_v54 }
  0x51   : > { %986 = vmatpush1.bf16.msra.mxu0 %v978_v56 }
  0x52   : > { %1083 = vmatprep.subr.bf16.mxu0 %v3370_v57 }
  0x54   : > { %2803 = vmatmul.mubr.msk.bf16.gmra.mrb[16].mxu0 %vm595_vm2, %v854_v51  ;;  %v1236_v51 = vld [vmem:[%s4184_s2] sm:$0x3] }
  0x55   : > { %1015 = vmatprep.mubr.bf16.mxu0 %v3426_v2  ;;  %v1241_v53 = vrot.slane %v1236_v51, %v1240_v50  ;;  %v1245_v55 = vrot.slane %v1236_v51, %v1244_v52  ;;  %v1539_v52 = vld [vmem:[%s4188_s6] sm:$0xff] }
  0x5c   : > { %2813 = vmatmul.mubr.msk.bf16.vlgmr.msra.gmra.mrb[0].mxu0 %vm595_vm2, %v952_v60 }
  0x5d   : > { %1025 = vmatprep.mubr.bf16.mxu0 %v3426_v2  ;;  %1084 = vmatpush1.bf16.msra.mxu0 %v3368_v61 }
  0x5e   : > { %2823 = vmatprep.subr.msk.bf16.mxu0 %vm602_vm0, %v3371_v62 }
  0x61   : > { %1086 = vmatpush1.bf16.msra.mxu0 %v1078_v0 }
  0x62   : > { %1179 = vmatprep.subr.bf16.mxu0 %v3376_v1 }
  0x64   : > { %2814 = vmatmul.mubr.msk.bf16.gmra.mrb[20].mxu0 %vm595_vm2, %v951_v59 }
  0x65   : > { %1115 = vmatprep.mubr.bf16.mxu0 %v3426_v2 }
  0x6c   : > { %2824 = vmatmul.mubr.msk.bf16.vlgmr.msra.gmra.mrb[0].mxu0 %vm595_vm2, %v1052_v6 }
  0x6d   : > { %1125 = vmatprep.mubr.bf16.mxu0 %v3426_v2  ;;  %1180 = vmatpush1.bf16.msra.mxu0 %v3374_v7 }
  0x6e   : > { %2834 = vmatprep.subr.msk.bf16.mxu0 %vm602_vm0, %v3377_v8 }
  0x71   : > { %1182 = vmatpush1.bf16.msra.mxu0 %v1174_v11  ;;  %v1254_v11 = vld [vmem:[%s4185_s3] sm:$0xff] }
  0x72   : > { %3047 = vmatprep.subr.bf16.mxu0 %v3427_v15 }
  0x74   : > { %2825 = vmatmul.mubr.msk.bf16.gmra.mrb[24].mxu0 %vm595_vm2, %v1051_v5 }
  0x75   : > { %1211 = vmatprep.mubr.bf16.mxu0 %v3426_v2 }
  0x7c   : > { %2835 = vmatmul.mubr.msk.bf16.vlgmr.msra.gmra.mrb[0].mxu0 %vm595_vm2, %v1148_v14  ;;  %v1436_v14 = vld [vmem:[%s4187_s5 + $0x8] sm:$0xff] }
  0x7d   : > { %1221 = vmatprep.mubr.bf16.mxu0 %v3426_v2 }
  0x84   : > { %2836 = vmatmul.mubr.msk.bf16.gmra.mrb[28].mxu0 %vm595_vm2, %v1147_v13  ;;  %v1435_v13 = vld [vmem:[%s4187_s5] sm:$0xff] }
  0x85   : > { %3059 = vmatprep.mubr.msk.bf16.mxu0 %vm3429_vm10, %v3427_v15 }
  0xf7   : > { %v653_v16 = vpop.f32.mrb[4].mxu0 }
  0xf8   : > { %v655_v17 = vpop.f32.mrb[5].mxu0 }
  0xf9   : > { %v657_v18 = vpop.f32.mrb[6].mxu0 }
  0xfa   : > { %v658_v19 = vpop.f32.mrb[7].mxu0  ;;  %v3428_v18 = vmov 0.0|0.0  }
  0xfb   : > { %v1437_v19 = vld [vmem:[%s4187_s5 + $0x10] sm:$0xff] }
 0x107   : > { %v732_v10 = vpop.f32.mrb[8].mxu0 }
 0x108   : > { %v733_v20 = vadd.f32 %v732_v10, %v653_v16  ;;  %v734_v21 = vpop.f32.mrb[9].mxu0  ;;  %v1346_v16 = vld [vmem:[%s4186_s4] sm:$0xff]  ;;  %v1438_v10 = vld [vmem:[%s4187_s5 + $0x18] sm:$0xff] }
 0x109   : > { %v735_v22 = vadd.f32 %v734_v21, %v655_v17  ;;  %v736_v23 = vpop.f32.mrb[10].mxu0  ;;  %v3204_v17 = vpack.c.bf16 %v1436_v14, %v1435_v13  ;;  %v3207_v21 = vpack.c.bf16 %v1438_v10, %v1437_v19  ;;  %v1549_v13 = vld [vmem:[%s4188_s6 + $0x50] sm:$0xff]  ;;  %v1550_v14 = vld [vmem:[%s4188_s6 + $0x58] sm:$0xff]  ;;  %v1552_v19 = vld [vmem:[%s4188_s6 + $0x68] sm:$0xff] }
 0x10a   : > { %v737_v24 = vpop.f32.mrb[11].mxu0  ;;  %v1440_v23 = vld [vmem:[%s4187_s5 + $0x28] sm:$0xff] }
 0x117   : > { %v824_v25 = vpop.f32.mrb[12].mxu0 }
 0x118   : > { %v835_v26 = vadd.f32 %v824_v25, %v733_v20  ;;  %v826_v2 = vpop.f32.mrb[13].mxu0  ;;  %v1347_v20 = vld [vmem:[%s4186_s4 + $0x8] sm:$0x7]  ;;  %v1441_v25 = vld [vmem:[%s4187_s5 + $0x30] sm:$0xff] }
 0x119   : > { %v836_v27 = vadd.f32 %v826_v2, %v735_v22  ;;  %v828_v28 = vpop.f32.mrb[14].mxu0  ;;  %v1439_v22 = vld [vmem:[%s4187_s5 + $0x20] sm:$0xff] }
 0x11a   : > { %v829_v29 = vpop.f32.mrb[15].mxu0  ;;  %v3210_v24 = vpack.c.bf16 %v1440_v23, %v1439_v22  ;;  %v1444_v28 = vld [vmem:[%s4187_s5 + $0x48] sm:$0xff]  ;;  %v1555_v23 = vld [vmem:[%s4188_s6 + $0x80] sm:$0xff] }
 0x127   : > { %v930_v30 = vpop.f32.mrb[16].mxu0 }
 0x128   : > { %v941_v31 = vadd.f32 %v930_v30, %v835_v26  ;;  %v932_v32 = vpop.f32.mrb[17].mxu0  ;;  %v1442_v26 = vld [vmem:[%s4187_s5 + $0x38] sm:$0xff]  ;;  %v1445_v30 = vld [vmem:[%s4187_s5 + $0x50] sm:$0xff] }
 0x129   : > { %v942_v33 = vadd.f32 %v932_v32, %v836_v27  ;;  %v934_v34 = vpop.f32.mrb[18].mxu0  ;;  %v3213_v2 = vpack.c.bf16 %v1442_v26, %v1441_v25  ;;  %v1443_v27 = vld [vmem:[%s4187_s5 + $0x40] sm:$0xff]  ;;  %v1557_v26 = vld [vmem:[%s4188_s6 + $0x90] sm:$0xff] }
 0x12a   : > { %v935_v35 = vpop.f32.mrb[19].mxu0  ;;  %v3216_v29 = vpack.c.bf16 %v1444_v28, %v1443_v27  ;;  %v1448_v34 = vld [vmem:[%s4187_s5 + $0x68] sm:$0xff]  ;;  %v1559_v28 = vld [vmem:[%s4188_s6 + $0xa0] sm:$0xff] }
 0x137   : > { %v1027_v36 = vpop.f32.mrb[20].mxu0 }
 0x138   : > { %v1038_v37 = vadd.f32 %v1027_v36, %v941_v31  ;;  %v1029_v38 = vpop.f32.mrb[21].mxu0  ;;  %v1446_v31 = vld [vmem:[%s4187_s5 + $0x58] sm:$0xff]  ;;  %v1449_v36 = vld [vmem:[%s4187_s5 + $0x70] sm:$0xff] }
 0x139   : > { %v1039_v39 = vadd.f32 %v1029_v38, %v942_v33  ;;  %v1031_v40 = vpop.f32.mrb[22].mxu0  ;;  %v3219_v32 = vpack.c.bf16 %v1446_v31, %v1445_v30  ;;  %v1447_v33 = vld [vmem:[%s4187_s5 + $0x60] sm:$0xff] }
 0x13a   : > { %v1032_v41 = vpop.f32.mrb[23].mxu0  ;;  %v3222_v35 = vpack.c.bf16 %v1448_v34, %v1447_v33  ;;  %v1452_v40 = vld [vmem:[%s4187_s5 + $0x88] sm:$0xff]  ;;  %v3380_v31 = vld [vmem:[%s4189_s7] sm:$0xff]   ;;  %v3384_v34 = vld [vmem:[%s4189_s7 + $0x34] sm:$0xff]  }
 0x13b   : > { %3048 = vmatpush3.bf16.msra.mxu0 %v3380_v31  ;;  %v3381_v33 = vld [vmem:[%s4189_s7 + $0x8] sm:$0xff]  }
 0x13c   : > { %3049 = vmatprep.subr.bf16.mxu0 %v3427_v15 }
 0x13f   : > { %3050 = vmatpush3.bf16.msra.mxu0 %v3381_v33  ;;  %v2369_v33 = vld [vmem:[%s4194_s12 + $0x18] sm:$0xff] }
 0x140   : > { %3051 = vmatprep.subr.bf16.mxu0 %v3427_v15 }
 0x147   : > { %v1127_v44 = vpop.f32.mrb[24].mxu0 }
 0x148   : > { %v1138_v45 = vadd.f32 %v1127_v44, %v1038_v37  ;;  %v1129_v46 = vpop.f32.mrb[25].mxu0  ;;  %v1450_v37 = vld [vmem:[%s4187_s5 + $0x78] sm:$0xff]  ;;  %v3231_v44 = vpack.c.bf16 %v1454_v43, %v1453_v42  ;;  %v3390_v42 = vld [vmem:[%s4189_s7 + $0x4c] sm:$0xff]   ;;  %v3392_v43 = vld [vmem:[%s4189_s7 + $0x54] ss:$0 sps:$4 sm:$0xff]  }
 0x149   : > { %v1139_v47 = vadd.f32 %v1129_v46, %v1039_v39  ;;  %v1131_v48 = vpop.f32.mrb[26].mxu0  ;;  %v3225_v38 = vpack.c.bf16 %v1450_v37, %v1449_v36  ;;  %v1451_v39 = vld [vmem:[%s4187_s5 + $0x80] sm:$0xff]  ;;  %v1456_v46 = vld [vmem:[%s4187_s5 + $0xa8] sm:$0xff]  ;;  %v3385_v37 = vld [vmem:[%s4189_s7 + $0x18] sm:$0xff]  }
 0x14a   : > { %v1132_v49 = vpop.f32.mrb[27].mxu0  ;;  %v3228_v41 = vpack.c.bf16 %v1452_v40, %v1451_v39  ;;  %v3386_v36 = vld [vmem:[%s4189_s7 + $0x3c] sm:$0xff]   ;;  %v3388_v39 = vld [vmem:[%s4189_s7 + $0x44] sm:$0xff]  }
 0x14b   : > { %v3389_v40 = vld [vmem:[%s4189_s7 + $0x28] ss:$0 sps:$4 sm:$0xff]  }
 0x14f   : > { %v1213_v54 = vpop.f32.mrb[0].mxu0 }
 0x150   : > { %v1215_v56 = vpop.f32.mrb[1].mxu0  ;;  %v1248_v58 = vadd.f32 %v1241_v53, %v1213_v54 }
 0x151   : > { %v1217_v57 = vpop.f32.mrb[2].mxu0  ;;  %v1249_v61 = vadd.f32 %v1245_v55, %v1215_v56 }
 0x152   : > { %v1250_v59 = vadd.f32 %v1241_v53, %v1217_v57  ;;  %v1219_v60 = vpop.f32.mrb[3].mxu0 }
 0x153   : > { %v1251_v62 = vadd.f32 %v1245_v55, %v1219_v60  ;;  %v1542_v60 = vld [vmem:[%s4188_s6 + $0x18] sm:$0xff] }
 0x154   : > { %v3197_v63 = vpack.c.bf16 %v1250_v59, %v1248_v58  ;;  %v1541_v59 = vld [vmem:[%s4188_s6 + $0x10] sm:$0xff] }
 0x155   : > { %v3195_v0 = vpack.c.bf16 %v1251_v62, %v1249_v61 }
 0x157   : > { %v1223_v1 = vpop.f32.mrb[28].mxu0  ;;  %3196 = vmatprep.subr.bf16.mxu1 %v3195_v0 }
 0x158   : > { %v1234_v3 = vadd.f32 %v1223_v1, %v1138_v45  ;;  %v1225_v4 = vpop.f32.mrb[29].mxu0  ;;  %3198 = vmatpush1.bf16.msra.mxu1 %v3197_v63  ;;  %v1455_v45 = vld [vmem:[%s4187_s5 + $0xa0] sm:$0xff]  ;;  %v3240_v1 = vpack.c.bf16 %v1542_v60, %v1541_v59  ;;  %v3393_v60 = vld [vmem:[%s4189_s7 + $0x8c] sm:$0xff]  }
 0x159   : > { %v1235_v5 = vadd.f32 %v1225_v4, %v1139_v47  ;;  %v1227_v6 = vpop.f32.mrb[30].mxu0  ;;  %v3234_v47 = vpack.c.bf16 %v1456_v46, %v1455_v45  ;;  %v1544_v4 = vld [vmem:[%s4188_s6 + $0x28] sm:$0xff] }
 0x15a   : > { %v1228_v7 = vpop.f32.mrb[31].mxu0  ;;  %v1252_v9 = vadd.f32 %v1241_v53, %v1234_v3  ;;  %v1540_v53 = vld [vmem:[%s4188_s6 + $0x8] sm:$0xff]  ;;  %v1543_v3 = vld [vmem:[%s4188_s6 + $0x20] sm:$0xff]  ;;  %v1545_v6 = vld [vmem:[%s4188_s6 + $0x30] sm:$0xff] }
 0x15b   : > { %v1253_v8 = vadd.f32 %v1245_v55, %v1235_v5  ;;  %v3237_v58 = vpack.c.bf16 %v1540_v53, %v1539_v52  ;;  %v3243_v5 = vpack.c.bf16 %v1544_v4, %v1543_v3  ;;  %v1546_v7 = vld [vmem:[%s4188_s6 + $0x38] sm:$0xff]  ;;  %v3396_v4 = vld [vmem:[%s4189_s7 + $0x60] sm:$0xff]  }
 0x15c   : > { %v3395_v3 = vld [vmem:[%s4189_s7 + $0x94] sm:$0xff]  }
 0x15d   : > { %2837 = vmatprep.subr.msk.mxu1 %vm602_vm0, %v1253_v8 }
 0x15e   : > { %2838 = vmatpush1.msk.msra.mxu1 %vm602_vm0, %v1252_v9 }
 0x15f   : > { %2839 = vmatmul.mubr.msk.f32.vlgmr.msra.gmra.mrb[0].mxu1 %vm1256_vm7, %v1254_v11  ;;  %3200 = vmatprep.subr.bf16.mxu1 %v3195_v0  ;;  %v1548_v11 = vld [vmem:[%s4188_s6 + $0x48] sm:$0xff] }
 0x160   : > { %3202 = vmatpush1.bf16.msra.mxu1 %v3197_v63  ;;  %1339 = vmatprep.mubr.f32.mxu1 %v3427_v15 }
 0x161   : > { %2841 = vmatprep.subr.msk.mxu1 %vm602_vm0, %v1253_v8  ;;  %v3246_v8 = vpack.c.bf16 %v1546_v7, %v1545_v6  ;;  %v3398_v6 = vld [vmem:[%s4189_s7 + $0x68] sm:$0xff]  }
 0x162   : > { %v3399_v7 = vld [vmem:[%s4189_s7 + $0xa4] sm:$0xff]  }
 0x163   : > { %2840 = vmatmul.mubr.msk.f32.gmra.mrb[2].mxu1 %vm1256_vm7, %v1255_v12 }
 0x164   : > { %2842 = vmatpush1.msk.msra.mxu1 %vm602_vm0, %v1252_v9  ;;  %1418 = vmatprep.mubr.f32.mxu1 %v3427_v15  ;;  %v1547_v9 = vld [vmem:[%s4188_s6 + $0x40] sm:$0xff] }
 0x165   : > { %3203 = vmatprep.subr.bf16.mxu1 %v3428_v18  ;;  %v3249_v12 = vpack.c.bf16 %v1548_v11, %v1547_v9  ;;  %v3401_v11 = vld [vmem:[%s4189_s7 + $0xac] ss:$0 sps:$4 sm:$0xff]  }
 0x167   : > { %2843 = vmatmul.mubr.msk.f32.vlgmr.msra.gmra.mrb[4].mxu1 %vm1256_vm7, %v1346_v16  ;;  %v3252_v16 = vpack.c.bf16 %v1550_v14, %v1549_v13 }
 0x168   : > { %1424 = vmatprep.mubr.f32.mxu1 %v3427_v15  ;;  %3205 = vmatpush1.bf16.msra.mxu1 %v3204_v17  ;;  %v1551_v17 = vld [vmem:[%s4188_s6 + $0x60] sm:$0xff] }
 0x169   : > { %3206 = vmatprep.subr.bf16.mxu1 %v3428_v18  ;;  %v3255_v10 = vpack.c.bf16 %v1552_v19, %v1551_v17  ;;  %v3402_v17 = vld [vmem:[%s4189_s7 + $0x78] sm:$0xff]   ;;  %v3403_v19 = vld [vmem:[%s4189_s7 + $0x80] ss:$0 sps:$4 sm:$0xff]  }
 0x16b   : > { %2844 = vmatmul.mubr.msk.f32.gmra.mrb[6].mxu1 %vm1256_vm7, %v1347_v20  ;;  %v1553_v20 = vld [vmem:[%s4188_s6 + $0x70] sm:$0xff] }
 0x16c   : > { %3208 = vmatpush1.bf16.msra.mxu1 %v3207_v21  ;;  %v1554_v21 = vld [vmem:[%s4188_s6 + $0x78] sm:$0xff] }
 0x16d   : > { %3209 = vmatprep.subr.bf16.mxu1 %v3428_v18  ;;  %v3258_v22 = vpack.c.bf16 %v1554_v21, %v1553_v20  ;;  %v1882_v20 = vsel %vm1708_vm9, %v3403_v19, 0  ;;  %v3404_v21 = vld [vmem:[%s4189_s7 + $0xb0] sm:$0xff]   ;;  %v2373_v19 = vld [vmem:[%s4194_s12 + $0x38] sm:$0xff] }
 0x170   : > { %3211 = vmatpush1.bf16.msra.mxu1 %v3210_v24  ;;  %v1556_v24 = vld [vmem:[%s4188_s6 + $0x88] sm:$0xff] }
 0x171   : > { %3212 = vmatprep.subr.bf16.mxu1 %v3428_v18  ;;  %v3261_v25 = vpack.c.bf16 %v1556_v24, %v1555_v23  ;;  %v3405_v23 = vld [vmem:[%s4189_s7 + $0xb8] sm:$0xff]   ;;  %v3406_v24 = vld [vmem:[%s4189_s7 + $0xc0] sm:$0xff]  }
 0x174   : > { %3214 = vmatpush1.bf16.msra.mxu1 %v3213_v2  ;;  %v1558_v2 = vld [vmem:[%s4188_s6 + $0x98] sm:$0xff] }
 0x175   : > { %3215 = vmatprep.subr.bf16.mxu1 %v3428_v18  ;;  %v3264_v27 = vpack.c.bf16 %v1558_v2, %v1557_v26  ;;  %v3408_v26 = vld [vmem:[%s4189_s7 + $0xd0] sm:$0xff]   ;;  %v3409_v2 = vld [vmem:[%s4189_s7 + $0xd8] ss:$0 sps:$4 sm:$0xff]  }
 0x178   : > { %3217 = vmatpush1.bf16.msra.mxu1 %v3216_v29  ;;  %v1560_v29 = vld [vmem:[%s4188_s6 + $0xa8] sm:$0xff] }
 0x179   : > { %3218 = vmatprep.subr.bf16.mxu1 %v3428_v18  ;;  %v3267_v30 = vpack.c.bf16 %v1560_v29, %v1559_v28  ;;  %v2366_v29 = vld [vmem:[%s4194_s12] sm:$0xff] }
 0x17c   : > { %3220 = vmatpush1.bf16.msra.mxu1 %v3219_v32  ;;  %v3382_v32 = vld [vmem:[%s4189_s7 + $0x2c] sm:$0xff]  }
 0x17d   : > { %3221 = vmatprep.subr.bf16.mxu1 %v3428_v18 }
 0x180   : > { %3223 = vmatpush1.bf16.msra.mxu1 %v3222_v35  ;;  %v3383_v35 = vld [vmem:[%s4189_s7 + $0x10] sm:$0xff]  }
 0x181   : > { %3224 = vmatprep.subr.bf16.mxu1 %v3428_v18  ;;  %3052 = vmatpush3.bf16.msra.mxu0 %v3383_v35  ;;  %v2370_v35 = vld [vmem:[%s4194_s12 + $0x20] sm:$0xff] }
 0x182   : > { %3053 = vmatprep.subr.bf16.mxu0 %v3427_v15 }
 0x184   : > { %3226 = vmatpush1.bf16.msra.mxu1 %v3225_v38  ;;  %v3387_v38 = vld [vmem:[%s4189_s7 + $0x20] sm:$0xff]  }
 0x185   : > { %3227 = vmatprep.subr.bf16.mxu1 %v3428_v18  ;;  %3054 = vmatpush3.bf16.msra.mxu0 %v3385_v37 }
 0x186   : > { %3055 = vmatprep.subr.bf16.mxu0 %v3427_v15 }
 0x188   : > { %3229 = vmatpush1.bf16.msra.mxu1 %v3228_v41  ;;  %v1788_v41 = vsel %vm1708_vm9, %v3389_v40, 0 }
 0x189   : > { %3230 = vmatprep.subr.bf16.mxu1 %v3428_v18  ;;  %3056 = vmatpush3.bf16.msra.mxu0 %v3387_v38 }
 0x18a   : > { %3057 = vmatprep.subr.bf16.mxu0 %v3427_v15 }
 0x18c   : > { %3232 = vmatpush1.bf16.msra.mxu1 %v3231_v44  ;;  %v1710_v44 = vsel %vm1708_vm9, %v3392_v43, 0 }
 0x18d   : > { %3233 = vmatprep.subr.bf16.mxu1 %v3428_v18  ;;  %3058 = vmatpush3.bf16.msra.mxu0 %v1788_v41 }
 0x18e   : > { %3079 = vmatprep.subr.bf16.mxu0 %v3427_v15 }
 0x190   : > { %3235 = vmatpush1.bf16.msra.mxu1 %v3234_v47 }
 0x191   : > { %3236 = vmatprep.subr.bf16.mxu1 %v3428_v18 }
 0x232   : > { %v1335_v48 = vpop.f32.mrb[0].mxu1 }
 0x233   : > { %v1337_v49 = vpop.f32.mrb[1].mxu1 }
 0x236   : > { %v1341_v50 = vpop.f32.mrb[2].mxu1 }
 0x237   : > { %v1343_v51 = vpop.f32.mrb[3].mxu1 }
 0x23a   : > { %v1420_v54 = vpop.f32.mrb[4].mxu1 }
 0x23b   : > { %v3813_v55 = vmax.f32 %v1335_v48, %v1420_v54  ;;  %v1422_v56 = vpop.f32.mrb[5].mxu1  ;;  %v3391_v54 = vld [vmem:[%s4189_s7 + $0x84] sm:$0xff]  }
 0x23c   : > { %v1432_v57 = vmax.f32 %v1337_v49, %v1422_v56 }
 0x23e   : > { %v1426_v61 = vpop.f32.mrb[6].mxu1  ;;  %2845 = vmatprep.mubr.msk.f32.mxu1 %vm1457_vm8, %v1432_v57 }
 0x23f   : > { %v1433_v62 = vmax.f32 %v1341_v50, %v1426_v61  ;;  %v1428_v63 = vpop.f32.mrb[7].mxu1  ;;  %1529 = vmatmul.mubr.f32.vlgmr.msra.gmra.mrb[8].mxu1 %v3813_v55 }
 0x240   : > { %v1434_v0 = vmax.f32 %v1343_v51, %v1428_v63  ;;  %3238 = vmatpush1.bf16.msra.mxu1 %v3237_v58 }
 0x241   : > { %3239 = vmatprep.subr.bf16.mxu1 %v3428_v18 }
 0x242   : > { %2846 = vmatprep.mubr.msk.f32.mxu1 %vm1457_vm8, %v1434_v0 }
 0x243   : > { %1534 = vmatmul.mubr.f32.gmra.mrb[10].mxu1 %v1433_v62 }
 0x244   : > { %3241 = vmatpush1.bf16.msra.mxu1 %v3240_v1  ;;  %2847 = vmatprep.mubr.msk.f32.mxu1 %vm1457_vm8, %v1432_v57 }
 0x245   : > { %3242 = vmatprep.subr.bf16.mxu1 %v3428_v18 }
 0x248   : > { %3244 = vmatpush1.bf16.msra.mxu1 %v3243_v5  ;;  %v3397_v5 = vld [vmem:[%s4189_s7 + $0x9c] sm:$0xff]  }
 0x249   : > { %3245 = vmatprep.subr.bf16.mxu1 %v3428_v18 }
 0x24c   : > { %3247 = vmatpush1.bf16.msra.mxu1 %v3246_v8 }
 0x24d   : > { %3248 = vmatprep.subr.bf16.mxu1 %v3428_v18 }
 0x250   : > { %3250 = vmatpush1.bf16.msra.mxu1 %v3249_v12  ;;  %v3400_v12 = vld [vmem:[%s4189_s7 + $0x70] sm:$0xff]  }
 0x251   : > { %3251 = vmatprep.subr.bf16.mxu1 %v3428_v18 }
 0x254   : > { %3253 = vmatpush1.bf16.msra.mxu1 %v3252_v16  ;;  %v1982_v16 = vsel %vm1708_vm9, %v3401_v11, 0  ;;  %v2285_v11 = vld [vmem:[%s4193_s11 + $0x28] sm:$0xff] }
 0x255   : > { %3254 = vmatprep.subr.bf16.mxu1 %v3428_v18 }
 0x258   : > { %3256 = vmatpush1.bf16.msra.mxu1 %v3255_v10 }
 0x259   : > { %3257 = vmatprep.subr.bf16.mxu1 %v3428_v18 }
 0x25c   : > { %3259 = vmatpush1.bf16.msra.mxu1 %v3258_v22 }
 0x25d   : > { %3260 = vmatprep.subr.bf16.mxu1 %v3428_v18 }
 0x260   : > { %3262 = vmatpush1.bf16.msra.mxu1 %v3261_v25  ;;  %v3407_v25 = vld [vmem:[%s4189_s7 + $0xc8] sm:$0xff]  }
 0x261   : > { %3263 = vmatprep.subr.bf16.mxu1 %v3428_v18 }
 0x264   : > { %3265 = vmatpush1.bf16.msra.mxu1 %v3264_v27  ;;  %v2075_v27 = vsel %vm1708_vm9, %v3409_v2, 0  ;;  %v3411_v2 = vld [vmem:[%s4195_s13 + $0x8] sm:$0x7f]  }
 0x265   : > { %3266 = vmatprep.subr.bf16.mxu1 %v3428_v18 }
 0x268   : > { %3268 = vmatpush1.bf16.msra.mxu1 %v3267_v30  ;;  %v2367_v30 = vld [vmem:[%s4194_s12 + $0x8] sm:$0xff] }
 0x269   : > { %3031 = vmatprep.subr.bf16.mxu1 %v3427_v15  ;;  %v3282_v31 = vpack.c.bf16 %v2367_v30, %v2366_v29 }
 0x26b   : > { %1626 = vmatmul.mubr.f32.vlgmr.msra.gmra.mrb[12].mxu1 %v3813_v55 }
 0x26c   : > { %2848 = vmatprep.mubr.msk.f32.mxu1 %vm1457_vm8, %v1434_v0  ;;  %3032 = vmatpush3.bf16.msra.mxu1 %v3382_v32  ;;  %v3394_v0 = vld [vmem:[%s4189_s7 + $0x58] sm:$0xff]   ;;  %v2368_v32 = vld [vmem:[%s4194_s12 + $0x10] sm:$0xff] }
 0x26d   : > { %3033 = vmatprep.subr.bf16.mxu1 %v3427_v15 }
 0x26f   : > { %1631 = vmatmul.mubr.f32.gmra.mrb[14].mxu1 %v1433_v62 }
 0x270   : > { %3034 = vmatpush3.bf16.msra.mxu1 %v3384_v34  ;;  %3043 = vmatprep.mubr.msk.bf16.mxu1 %vm3429_vm10, %v3427_v15  ;;  %v3285_v34 = vpack.c.bf16 %v2369_v33, %v2368_v32 }
 0x271   : > { %3035 = vmatprep.subr.bf16.mxu1 %v3427_v15 }
 0x274   : > { %3036 = vmatpush3.bf16.msra.mxu1 %v3386_v36  ;;  %v2371_v36 = vld [vmem:[%s4194_s12 + $0x28] sm:$0xff] }
 0x275   : > { %3037 = vmatprep.subr.bf16.mxu1 %v3427_v15  ;;  %v3288_v37 = vpack.c.bf16 %v2371_v36, %v2370_v35  ;;  %v3413_v36 = vld [vmem:[%s4195_s13 + $0x18] sm:$0x7f]  }
 0x278   : > { %3038 = vmatpush3.bf16.msra.mxu1 %v3388_v39 }
 0x279   : > { %3039 = vmatprep.subr.bf16.mxu1 %v3427_v15 }
 0x27c   : > { %3040 = vmatpush3.bf16.msra.mxu1 %v3390_v42 }
 0x27d   : > { %3041 = vmatprep.subr.bf16.mxu1 %v3427_v15 }
 0x280   : > { %3042 = vmatpush3.bf16.msra.mxu1 %v1710_v44 }
 0x281   : > { %3063 = vmatprep.subr.bf16.mxu1 %v3427_v15 }
 0x312   : > { %v1530_v45 = vpop.f32.mrb[8].mxu1 }
 0x313   : > { %v1532_v46 = vpop.f32.mrb[9].mxu1 }
 0x316   : > { %v1535_v47 = vpop.f32.mrb[10].mxu1 }
 0x317   : > { %v1537_v48 = vpop.f32.mrb[11].mxu1 }
 0x33e   : > { %v1627_v49 = vpop.f32.mrb[12].mxu1 }
 0x33f   : > { %v1636_v50 = vmax.f32 %v1530_v45, %v1627_v49  ;;  %v1629_v51 = vpop.f32.mrb[13].mxu1 }
 0x341   : > { %v1638_v52 = vmax.f32 %v1636_v50, 0.0 }
 0x342   : > { %v1632_v53 = vpop.f32.mrb[14].mxu1 }
 0x343   : > { %v1640_v55 = vpack.c.bf16 %v1638_v52, %v1638_v52  ;;  %v1637_v56 = vmax.f32 %v1535_v47, %v1632_v53  ;;  %v1634_v57 = vpop.f32.mrb[15].mxu1 }
 0x345   : > { %v1667_v58 = vshll.u32 %v1640_v55, 16  ;;  %v1639_v59 = vmax.f32 %v1637_v56, 0.0  ;;  %3060 = vmatmul.mubr.msk.bf16.vlgmr.msra.gmra.mrb[32].mxu0 %vm1704_vm11, %v1640_v55  ;;  %v1665_v61 = vshrl.u32 %v1640_v55, 16 }
 0x346   : > { %3080 = vmatpush3.bf16.msra.mxu0 %v3391_v54  ;;  %3091 = vmatprep.mubr.msk.bf16.mxu0 %vm3429_vm10, %v3427_v15 }
 0x347   : > { %v1669_v62 = vrot.slane %v1667_v58, 1  ;;  %v3955_v63 = vpack.c.bf16 %v1639_v59, %v1638_v52  ;;  %3081 = vmatprep.subr.bf16.mxu0 %v3427_v15  ;;  %v2928_v58 = vld [vmem:[%s4190_s8] ss:$0 sm:$0xff] }
 0x349   : > { %v1670_v1 = vor.u32 %v1669_v62, %v1665_v61  ;;  %v1938_v8 = vshrl.u32 %v3955_v63, 16  ;;  %v1941_v9 = vshll.u32 %v3955_v63, 16  ;;  %v1844_v22 = vrot.slane %v3955_v63, 1 }
 0x34a   : > { %3082 = vmatpush3.bf16.msra.mxu0 %v3393_v60  ;;  %v2037_v28 = vrot.slane %v3955_v63, 2 }
 0x34b   : > { %3044 = vmatmul.mubr.msk.bf16.vlgmr.msra.gmra.mrb[16].mxu1 %vm1704_vm11, %v1670_v1  ;;  %3083 = vmatprep.subr.bf16.mxu0 %v3427_v15  ;;  %v1940_v13 = vrot.slane %v1938_v8, 1  ;;  %v1943_v14 = vrot.slane %v1941_v9, 2  ;;  %v2280_v1 = vld [vmem:[%s4193_s11] sm:$0xff] }
 0x34c   : > { %3064 = vmatpush3.bf16.msra.mxu1 %v3394_v0  ;;  %3075 = vmatprep.mubr.msk.bf16.mxu1 %vm3429_vm10, %v3427_v15  ;;  %v2126_v0 = vld [vmem:[%s4191_s9] sm:$0x7] }
 0x34d   : > { %3065 = vmatprep.subr.bf16.mxu1 %v3427_v15  ;;  %v1944_v10 = vor.u32 %v1943_v14, %v1940_v13  ;;  %v2284_v9 = vld [vmem:[%s4193_s11 + $0x20] sm:$0xff]  ;;  %v2286_v13 = vld [vmem:[%s4193_s11 + $0x30] sm:$0xff]  ;;  %v2287_v14 = vld [vmem:[%s4193_s11 + $0x38] sm:$0xff] }
 0x34e   : > { %3084 = vmatpush3.bf16.msra.mxu0 %v3395_v3  ;;  %v2281_v3 = vld [vmem:[%s4193_s11 + $0x8] sm:$0xff] }
 0x34f   : > { %3085 = vmatprep.subr.bf16.mxu0 %v3427_v15 }
 0x350   : > { %3066 = vmatpush3.bf16.msra.mxu1 %v3396_v4  ;;  %v2205_v4 = vld [vmem:[%s4192_s10] sm:$0x7] }
 0x351   : > { %3067 = vmatprep.subr.bf16.mxu1 %v3427_v15 }
 0x352   : > { %3086 = vmatpush3.bf16.msra.mxu0 %v3397_v5  ;;  %v3270_v5 = vpack.c.bf16 %v2281_v3, %v2280_v1 }
 0x353   : > { %3087 = vmatprep.subr.bf16.mxu0 %v3427_v15 }
 0x354   : > { %3068 = vmatpush3.bf16.msra.mxu1 %v3398_v6  ;;  %v2282_v6 = vld [vmem:[%s4193_s11 + $0x10] sm:$0xff] }
 0x355   : > { %3069 = vmatprep.subr.bf16.mxu1 %v3427_v15 }
 0x356   : > { %3088 = vmatpush3.bf16.msra.mxu0 %v3399_v7  ;;  %v2283_v7 = vld [vmem:[%s4193_s11 + $0x18] sm:$0xff] }
 0x357   : > { %3089 = vmatprep.subr.bf16.mxu0 %v3427_v15  ;;  %v3273_v8 = vpack.c.bf16 %v2283_v7, %v2282_v6 }
 0x358   : > { %3070 = vmatpush3.bf16.msra.mxu1 %v3400_v12  ;;  %v3276_v12 = vpack.c.bf16 %v2285_v11, %v2284_v9 }
 0x359   : > { %3071 = vmatprep.subr.bf16.mxu1 %v3427_v15 }
 0x35a   : > { %3090 = vmatpush3.bf16.msra.mxu0 %v1982_v16  ;;  %v2372_v16 = vld [vmem:[%s4194_s12 + $0x30] sm:$0xff] }
 0x35b   : > { %3111 = vmatprep.subr.mxu0 %v3427_v15 }
 0x35c   : > { %3072 = vmatpush3.bf16.msra.mxu1 %v3402_v17  ;;  %v3279_v17 = vpack.c.bf16 %v2287_v14, %v2286_v13 }
 0x35d   : > { %3092 = vmatmul.mubr.msk.bf16.vlgmr.msra.gmra.mrb[36].mxu0 %vm1704_vm11, %v1944_v10  ;;  %3073 = vmatprep.subr.bf16.mxu1 %v3427_v15  ;;  %v3291_v10 = vpack.c.bf16 %v2373_v19, %v2372_v16 }
 0x35e   : > { %3113 = vmatprep.mubr.msk.f32.mxu0 %vm3429_vm10, %v3427_v15 }
 0x360   : > { %3074 = vmatpush3.bf16.msra.mxu1 %v1882_v20  ;;  %v2374_v20 = vld [vmem:[%s4194_s12 + $0x40] sm:$0x3f] }
 0x361   : > { %3095 = vmatprep.subr.bf16.mxu1 %v3427_v15 }
 0x363   : > { %3076 = vmatmul.mubr.msk.bf16.vlgmr.msra.gmra.mrb[20].mxu1 %vm1704_vm11, %v1844_v22 }
 0x364   : > { %3096 = vmatpush3.bf16.msra.mxu1 %v3404_v21  ;;  %3107 = vmatprep.mubr.msk.bf16.mxu1 %vm3429_vm10, %v3427_v15 }
 0x365   : > { %3097 = vmatprep.subr.bf16.mxu1 %v3427_v15 }
 0x368   : > { %3098 = vmatpush3.bf16.msra.mxu1 %v3405_v23 }
 0x369   : > { %3099 = vmatprep.subr.bf16.mxu1 %v3427_v15 }
 0x36c   : > { %3100 = vmatpush3.bf16.msra.mxu1 %v3406_v24 }
 0x36d   : > { %3101 = vmatprep.subr.bf16.mxu1 %v3427_v15 }
 0x370   : > { %3102 = vmatpush3.bf16.msra.mxu1 %v3407_v25 }
 0x371   : > { %3103 = vmatprep.subr.bf16.mxu1 %v3427_v15 }
 0x374   : > { %3104 = vmatpush3.bf16.msra.mxu1 %v3408_v26  ;;  %v3410_v26 = vld [vmem:[%s4195_s13] sm:$0xff]  }
 0x375   : > { %3105 = vmatprep.subr.bf16.mxu1 %v3427_v15 }
 0x378   : > { %3106 = vmatpush3.bf16.msra.mxu1 %v2075_v27  ;;  %v2472_v27 = vsel %vm746_vm3, %v3411_v2, 0 }
 0x379   : > { %3281 = vmatprep.subr.bf16.mxu1 %v3428_v18 }
 0x37b   : > { %3108 = vmatmul.mubr.msk.bf16.vlgmr.msra.gmra.mrb[24].mxu1 %vm1704_vm11, %v2037_v28 }
 0x37c   : > { %3160 = vmatprep.mubr.msk.f32.mxu1 %vm3429_vm10, %v3427_v15  ;;  %3283 = vmatpush3.bf16.msra.mxu1 %v3282_v31 }
 0x37d   : > { %3284 = vmatprep.subr.bf16.mxu1 %v3428_v18 }
 0x380   : > { %3286 = vmatpush3.bf16.msra.mxu1 %v3285_v34  ;;  %v3412_v34 = vld [vmem:[%s4195_s13 + $0x10] sm:$0xff]  }
 0x381   : > { %3287 = vmatprep.subr.bf16.mxu1 %v3428_v18 }
 0x384   : > { %3289 = vmatpush3.bf16.msra.mxu1 %v3288_v37  ;;  %v2537_v37 = vsel %vm746_vm3, %v3413_v36, 0 }
 0x385   : > { %3290 = vmatprep.subr.bf16.mxu1 %v3428_v18 }
 0x388   : > { %3292 = vmatpush3.bf16.msra.mxu1 %v3291_v10 }
 0x389   : > { %3158 = vmatprep.subr.mxu1 %v3427_v15 }
 0x38c   : > { %3159 = vmatpush3.msk.msra.mxu1 %vm602_vm0, %v2374_v20 }
 0x38d   : > { %3187 = vmatprep.subr.bf16.mxu1 %v3427_v15 }
 0x418   : > { %v1824_v38 = vpop.f32.mrb[32].mxu0 }
 0x419   : > { %v3061_v39 = vpop.f32.mrb[33].mxu0 }
 0x41a   : > { %v1827_v40 = vpop.f32.mrb[34].mxu0 }
 0x41b   : > { %v3062_v41 = vpop.f32.mrb[35].mxu0  ;;  %v3415_v40 = vld [vmem:[%s4195_s13 + $0x28] sm:$0x7f]  }
 0x41c   : > { %v2602_v41 = vsel %vm746_vm3, %v3415_v40, 0 }
 0x41e   : > { %v1746_v42 = vpop.f32.mrb[16].mxu1 }
 0x41f   : > { %v1825_v43 = vadd.f32 %v1824_v38, %v1746_v42  ;;  %v3045_v44 = vpop.f32.mrb[17].mxu1  ;;  %v3414_v38 = vld [vmem:[%s4195_s13 + $0x20] sm:$0xff]  }
 0x420   : > { %v1749_v45 = vpop.f32.mrb[18].mxu1  ;;  %v3417_v44 = vld [vmem:[%s4197_s15 + $0x8] sm:$0xff]  }
 0x421   : > { %v3046_v46 = vpop.f32.mrb[19].mxu1  ;;  %v2450_v45 = vld [vmem:[%s4196_s14] sm:$0x1] }
 0x430   : > { %v2018_v47 = vpop.f32.mrb[36].mxu0 }
 0x431   : > { %v3093_v48 = vpop.f32.mrb[37].mxu0 }
 0x432   : > { %v2021_v49 = vpop.f32.mrb[38].mxu0 }
 0x433   : > { %v3094_v50 = vpop.f32.mrb[39].mxu0 }
 0x436   : > { %v1918_v51 = vpop.f32.mrb[20].mxu1 }
 0x437   : > { %v1924_v52 = vadd.f32 %v1918_v51, %v1825_v43  ;;  %v3077_v53 = vpop.f32.mrb[21].mxu1  ;;  %v3416_v43 = vld [vmem:[%s4197_s15] sm:$0xff]  }
 0x438   : > { %v1921_v54 = vpop.f32.mrb[22].mxu1 }
 0x439   : > { %v3078_v55 = vpop.f32.mrb[23].mxu1  ;;  %v2024_v56 = vadd.f32 %v2018_v47, %v1924_v52 }
 0x44e   : > { %v2111_v57 = vpop.f32.mrb[24].mxu1 }
 0x44f   : > { %v2117_v59 = vadd.f32 %v2111_v57, %v2024_v56  ;;  %v3109_v60 = vpop.f32.mrb[25].mxu1 }
 0x450   : > { %v2114_v61 = vpop.f32.mrb[26].mxu1 }
 0x451   : > { %v2125_v62 = vadd.f32 %v2928_v58, %v2117_v59  ;;  %v3110_v63 = vpop.f32.mrb[27].mxu1 }
 0x453   : > { %3112 = vmatpush3.msk.msra.mxu0 %vm746_vm3, %v2125_v62 }
 0x454   : > { %3114 = vmatmul.mubr.msk.f32.vlgmr.msra.gmra.mrb[40].mxu0 %vm2127_vm12, %v2126_v0  ;;  %3116 = vmatprep.subr.mxu0 %v3427_v15 }
 0x455   : > { %3117 = vmatpush3.msk.msra.mxu0 %vm746_vm3, %v2125_v62  ;;  %3118 = vmatprep.mubr.msk.f32.mxu0 %vm3429_vm10, %v3427_v15 }
 0x456   : > { %3269 = vmatprep.subr.bf16.mxu0 %v3428_v18 }
 0x458   : > { %3119 = vmatmul.mubr.msk.f32.vlgmr.msra.gmra.mrb[42].mxu0 %vm2127_vm12, %v2205_v4 }
 0x459   : > { %3271 = vmatpush3.bf16.msra.mxu0 %v3270_v5  ;;  %3139 = vmatprep.mubr.msk.f32.mxu0 %vm3429_vm10, %v3427_v15 }
 0x45a   : > { %3272 = vmatprep.subr.bf16.mxu0 %v3428_v18 }
 0x45d   : > { %3274 = vmatpush3.bf16.msra.mxu0 %v3273_v8 }
 0x45e   : > { %3275 = vmatprep.subr.bf16.mxu0 %v3428_v18 }
 0x461   : > { %3277 = vmatpush3.bf16.msra.mxu0 %v3276_v12 }
 0x462   : > { %3278 = vmatprep.subr.bf16.mxu0 %v3428_v18  ;;  %v2288_v18 = vld [vmem:[%s4193_s11 + $0x40] sm:$0x3f] }
 0x465   : > { %3280 = vmatpush3.bf16.msra.mxu0 %v3279_v17 }
 0x466   : > { %3137 = vmatprep.subr.mxu0 %v3427_v15 }
 0x469   : > { %3138 = vmatpush3.msk.msra.mxu0 %vm602_vm0, %v2288_v18  ;;  %vm2708_vm0 = vcmask 57344  }
 0x46a   : > { %3163 = vmatprep.subr.bf16.mxu0 %v3427_v15 }
 0x527   : > { %v2201_v21 = vpop.f32.mrb[40].mxu0 }
 0x528   : > { %v3115_v22 = vpop.f32.mrb[41].mxu0 }
 0x52b   : > { %v2275_v23 = vpop.f32.mrb[42].mxu0 }
 0x52c   : > { %v2279_v24 = vmax.f32 %v2201_v21, %v2275_v23  ;;  %v3120_v25 = vpop.f32.mrb[43].mxu0 }
 0x52e   : > { %3140 = vmatmul.mubr.msk.f32.vlgmr.msra.gmra.mrb[44].mxu0 %vm2289_vm13, %v2279_v24  ;;  %3161 = vmatmul.mubr.msk.f32.vlgmr.msra.gmra.mrb[28].mxu1 %vm2289_vm13, %v2279_v24 }
 0x52f   : > { %3167 = vmatprep.mubr.msk.bf16.mxu0 %vm3429_vm10, %v3427_v15  ;;  %3191 = vmatprep.mubr.msk.bf16.mxu1 %vm3429_vm10, %v3427_v15 }
 0x530   : > { %3164 = vmatpush3.bf16.msra.mxu0 %v3410_v26  ;;  %3188 = vmatpush3.bf16.msra.mxu1 %v3416_v43 }
 0x531   : > { %3165 = vmatprep.subr.bf16.mxu0 %v3427_v15  ;;  %3189 = vmatprep.subr.bf16.mxu1 %v3427_v15 }
 0x534   : > { %3166 = vmatpush3.bf16.msra.mxu0 %v2472_v27  ;;  %3190 = vmatpush3.bf16.msra.mxu1 %v3417_v44 }
 0x535   : > { %3171 = vmatprep.subr.bf16.mxu0 %v3427_v15 }
 0x601   : > { %v2362_v28 = vpop.f32.mrb[44].mxu0  ;;  %v2444_v29 = vpop.f32.mrb[28].mxu1 }
 0x602   : > { %v2448_v30 = vmax.f32 %v2362_v28, %v2444_v29  ;;  %v3141_v31 = vpop.f32.mrb[45].mxu0  ;;  %v3162_v32 = vpop.f32.mrb[29].mxu1 }
 0x604   : > { %v2449_v33 = vmax.f32 %v2448_v30, 0.0 }
 0x606   : > { %v2451_v35 = vpack.c.bf16 %v2449_v33, %v2449_v33 }
 0x608   : > { %3168 = vmatmul.mubr.msk.bf16.vlgmr.msra.gmra.mrb[48].mxu0 %vm2467_vm14, %v2451_v35  ;;  %v2520_v39 = vshrl.u32 %v2451_v35, 16  ;;  %v2586_v42 = vrot.slane %v2451_v35, 1 }
 0x609   : > { %3172 = vmatpush3.bf16.msra.mxu0 %v3412_v34  ;;  %3175 = vmatprep.mubr.msk.bf16.mxu0 %vm3429_vm10, %v3427_v15 }
 0x60a   : > { %3173 = vmatprep.subr.bf16.mxu0 %v3427_v15 }
 0x60d   : > { %3174 = vmatpush3.bf16.msra.mxu0 %v2537_v37 }
 0x60e   : > { %3179 = vmatprep.subr.bf16.mxu0 %v3427_v15 }
 0x614   : > { %3176 = vmatmul.mubr.msk.bf16.vlgmr.msra.gmra.mrb[48].mxu0 %vm2467_vm14, %v2520_v39 }
 0x615   : > { %3180 = vmatpush3.bf16.msra.mxu0 %v3414_v38  ;;  %3183 = vmatprep.mubr.msk.bf16.mxu0 %vm3429_vm10, %v3427_v15 }
 0x616   : > { %3181 = vmatprep.subr.bf16.mxu0 %v3427_v15  ;;  %v2651_v15 = vld [vmem:[%s4198_s16] sm:$0x1] }
 0x619   : > { %3182 = vmatpush3.bf16.msra.mxu0 %v2602_v41 }
 0x620   : > { %3184 = vmatmul.mubr.msk.bf16.vlgmr.msra.gmra.mrb[48].mxu0 %vm2467_vm14, %v2586_v42 }
 0x6f3   : > { %v2638_v46 = vpop.f32.mrb[48].mxu0 }
 0x6f4   : > { %v3293_v47 = vadd.f32 %v2638_v46, %v2450_v45  ;;  %v3185_v48 = vpop.f32.mrb[49].mxu0 }
 0x6f5   : > { %v2641_v49 = vpop.f32.mrb[50].mxu0 }
 0x6f6   : > { %v2645_v50 = vmax.f32 %v3293_v47, 0.0  ;;  %v3186_v51 = vpop.f32.mrb[51].mxu0 }
 0x6f8   : > { %v2646_v52 = vpack.c.bf16 %v2645_v50, %v2645_v50 }
 0x6fa   : > { %3192 = vmatmul.mubr.msk.bf16.vlgmr.msra.gmra.mrb[32].mxu1 %vm2664_vm15, %v2646_v52 }
 0x7cd   : > { %v2702_v53 = vpop.f32.mrb[32].mxu1 }
 0x7ce   : > { %v2703_v54 = vadd.f32 %v2702_v53, %v2651_v15  ;;  %v3193_v55 = vpop.f32.mrb[33].mxu1 }
 0x7cf   : > { %v2705_v56 = vpop.f32.mrb[34].mxu1 }
 0x7d0   : > { %2709 = vst.msk [vmem:[%s544_s20] sm:$0x1] %vm2708_vm0, %v2703_v54  ;;  %v3194_v57 = vpop.f32.mrb[35].mxu1 }
 0x7d1 PF: > { %s27_s24 = sadd.s32 1, %s3424_s24  }
 0x7d2   : > { %p24_p4 = scmp.ge.s32.totalorder %s27_s24, 4  }
 0x7d4   :  { %26 = sbr.rel (!%p24_p4) target bundleno = 3 (0x3), region = 130 }

// kernel: forward.5
= control target key start
LH: loop header
LB: loop body
LE: loop exit
PB: predicated region body
PF: predicated region fallthrough
CT: control target
= control target key end

     0   :  { %s4960_s0 = inlined_call_operand.vmem [shape: f32[2,28,28], index: 0, kind: input, shape index: {}]   ;;  %s4961_s1 = inlined_call_operand.vmem [shape: bf16[5,28,240], index: 1, kind: input, shape index: {}]   ;;  %s4962_s2 = inlined_call_operand.vmem [shape: f32[1,240], index: 2, kind: input, shape index: {}]   ;;  %s4963_s3 = inlined_call_operand.vmem [shape: f32[12,24], index: 3, kind: input, shape index: {}]   ;;  %s4964_s4 = inlined_call_operand.vmem [shape: f32[12,24], index: 4, kind: input, shape index: {}]   ;;  %s4965_s5 = inlined_call_operand.vmem [shape: f32[240,120], index: 5, kind: input, shape index: {}]   ;;  %s4966_s6 = inlined_call_operand.vmem [shape: f32[240,120], index: 6, kind: input, shape index: {}]   ;;  %s4967_s7 = inlined_call_operand.vmem [shape: bf16[5,120,160], index: 7, kind: input, shape index: {}]   ;;  %s4968_s8 = inlined_call_operand.vmem [shape: f32[1,160], index: 8, kind: input, shape index: {}]   ;;  %s4969_s9 = inlined_call_operand.vmem [shape: f32[4,8], index: 9, kind: input, shape index: {}]   ;;  %s4970_s10 = inlined_call_operand.vmem [shape: f32[4,8], index: 10, kind: input, shape index: {}]   ;;  %s4971_s11 = inlined_call_operand.vmem [shape: f32[160,80], index: 11, kind: input, shape index: {}]   ;;  %s4972_s12 = inlined_call_operand.vmem [shape: f32[160,80], index: 12, kind: input, shape index: {}]   ;;  %s4973_s13 = inlined_call_operand.vmem [shape: bf16[4,80,50], index: 13, kind: input, shape index: {}]   ;;  %s4974_s14 = inlined_call_operand.vmem [shape: f32[1,50], index: 14, kind: input, shape index: {}]   ;;  %s4975_s15 = inlined_call_operand.vmem [shape: bf16[50,128], index: 15, kind: input, shape index: {}]   ;;  %s4976_s16 = inlined_call_operand.vmem [shape: f32[1,128], index: 16, kind: input, shape index: {}]   ;;  %s4977_s17 = inlined_call_operand.hbm [shape: f32[2,1,128], index: 17, kind: output, shape index: {}]  }
   0x1   :  { %4985 = sst [smem:[#allocation11_spill]] %s4960_s0 }
   0x2   :  { %4986 = sst [smem:[#allocation12_spill]] %s4961_s1 }
   0x3   :  { %22 = vsyncpa [#allocation3], 0 }
   0x4   :  { %24 = vsyncpa [#allocation3 + $0x1], 0  ;;  %s3975_s24 = smov 0   ;;  %s3977_s25 = smov 0  }
   0x5   :  { %s3979_s26 = smov 0   ;;  %s3981_s27 = smov 0  }
   0x6 LB: > { %4987 = sst [smem:[#allocation5_spill]] %s3866_s24  ;;  %s3996_s28 = sadd.s32 4294967295, %s3878_s27   ;;  %s3878_s27 = sphi %s3981_s27, %s5000_s27   ;;  %s3874_s26 = sphi %s3979_s26, %s5002_s26   ;;  %s3870_s25 = sphi %s3977_s25, %s5004_s25   ;;  %s3866_s24 = sphi %s3975_s24, %s5003_s24  }
   0x7   : > { %4988 = sst [smem:[#allocation6_spill]] %s3874_s26  ;;  %s3037_s29 = sadd.s32 4294967294, %s3878_s27  }
   0x8   : > { %4989 = sst [smem:[#allocation7_spill]] %s3878_s27  ;;  %s4000_s0 = sadd.s32 1, %s3878_s27  }
   0x9   : > { %4990 = sst [smem:[#allocation8_spill]] %s4000_s0  ;;  %s399_s30 = sadd.s32 1, %s3874_s26 }
   0xa   : > { %s396_s18 = ssub.s32 %s3878_s27, %s4000_s0  ;;  %p409_p0 = scmp.ne.s32.totalorder %s3874_s26, %s3870_s25 }
   0xb   : > { %p397_p1 = scmp.eq.s32.totalorder %s396_s18, 0  ;;  %p410_p2 = scmp.eq.s32.totalorder %s3996_s28, 1 }
   0xc   : > { %p415_p3 = scmp.ne.s32.totalorder %s3870_s25, %s3866_s24  ;;  %p416_p4 = scmp.eq.s32.totalorder %s3037_s29, 1 }
   0xd   : > { %s4011_s19 = scalar_select %p397_p1, %s3874_s26, %s399_s30  }
   0xe   : > { %p4013_p5 = por %p410_p2, %p409_p0  ;;  %p4017_p6 = por %p416_p4, %p415_p3 }
   0xf   : > { %4991 = sst [smem:[#allocation9_spill]] %s4011_s19  ;;  %p3040_p7 = scmp.ge.s32.totalorder %s3878_s27, 1 }
  0x10   : > { %s4993_s20 = scalar_select %p4017_p6, 1, 0 }
  0x11   : > { %p490_p8 = scmp.lt.s32.totalorder %s3878_s27, 3 }
  0x12   : > { %4994 = sst [smem:[#allocation10_spill]] %s4993_s20 }
  0x13   : > { %p491_p9 = pnand %p3040_p7, %p490_p8 }
  0x14   : > { %s4995_s23 = sld [smem:[#allocation12_spill]] (!%p491_p9)  ;;  %vm604_vm0 = vcmask (!%p491_p9), 1045504   ;;  %v3880_v2 = vmov (!%p491_p9), 0   ;;  %p541_p10 = scmp.lt.s32.totalorder (!%p491_p9), %s3996_s28, 1  ;;  %vm563_vm1 = vsmask.f32 (!%p491_p9), 7424 }
  0x15   : > { %494 = sbr.rel (%p491_p9) target bundleno = 2308 (0x904), region = 88  ;;  %643 = vmatprep.mubr.bf16.mxu0 (!%p491_p9), %v3880_v2  ;;  %s4996_s27 = sld [smem:[#allocation11_spill]] (!%p491_p9)  ;;  %vm597_vm2 = vcmask (!%p491_p9), 228352   ;;  %vm749_vm3 = vcmask (!%p491_p9), 1046528   ;;  %vm845_vm4 = vsmask.f32 (!%p491_p9), 6400 }
  0x16   : > { %v3881_v55 = vmov (!%p491_p9), 0.0   ;;  %v1341_v56 = vld [vmem:[%s4966_s6] sm:$0xff] (!%p491_p9)  ;;  %v3882_v57 = vmov (!%p491_p9), 0.0|0.0   ;;  %v1342_v58 = vld [vmem:[%s4966_s6 + $0x8] sm:$0xff] (!%p491_p9)  ;;  %v1343_v60 = vld [vmem:[%s4966_s6 + $0x10] sm:$0xff] (!%p491_p9)  ;;  %vm1056_vm5 = vcmask (!%p491_p9), 195584  }
  0x17   : > { %1127 = vmatprep.mubr.f32.mxu1 (!%p491_p9), %v3881_v55  ;;  %v3470_v59 = vpack.c.bf16 (!%p491_p9), %v1342_v58, %v1341_v56  ;;  %v1344_v61 = vld [vmem:[%s4966_s6 + $0x18] sm:$0xff] (!%p491_p9)  ;;  %v1345_v63 = vld [vmem:[%s4966_s6 + $0x20] sm:$0xff] (!%p491_p9)  ;;  %vm1259_vm6 = vcmask (!%p491_p9), 916480   ;;  %vm1569_vm7 = vcmask (!%p491_p9), 1043456   ;;  %vm1565_vm8 = vcmask (!%p491_p9), 982016   ;;  %s539_s29 = sand.u32 (!%p491_p9), 1, %s3870_s25  }
  0x18   : > { %v3473_v62 = vpack.c.bf16 (!%p491_p9), %v1344_v61, %v1343_v60  ;;  %v1036_v56 = vld [vmem:[%s4962_s2] sm:$0x3] (!%p491_p9)  ;;  %vm2192_vm9 = vcmask (!%p491_p9), 64512   ;;  %vm2364_vm10 = vcmask (!%p491_p9), 261120   ;;  %vm3883_vm11 = vmmov (!%p491_p9), 0   ;;  %s2970_s20 = scalar_lea.sflag (!%p491_p9), [#allocation3], %s539_s29 }
  0x19   : > { %vm2572_vm12 = vcmask (!%p491_p9), 654336   ;;  %vm2912_vm13 = vcmask (!%p491_p9), 1040384   ;;  %vm2908_vm14 = vcmask (!%p491_p9), 408576  }
  0x1a   : > { %v3643_v0 = vld [vmem:[%s4995_s23 + $0x24] ss:$8 sps:$4 sm:$0xff] (!%p491_p9)   ;;  %v3645_v1 = vld [vmem:[%s4995_s23 + $0x20] ss:$8 sps:$4 sm:$0xff] (!%p491_p9)  }
  0x1b   : > { %611 = vmatprep.subr.bf16.mxu0 (!%p491_p9), %v3643_v0  ;;  %v3646_v3 = vld [vmem:[%s4995_s23 + $0x34] ss:$8 sps:$4 sm:$0x3f] (!%p491_p9)   ;;  %v3648_v4 = vld [vmem:[%s4995_s23 + $0x30] ss:$8 sps:$4 sm:$0x3f] (!%p491_p9)  }
  0x1c   : > { %612 = vmatpush1.bf16.msra.mxu0 %v3645_v1  ;;  %s542_s21 = scalar_select %p541_p10, %s3996_s28, 1  ;;  %v606_v5 = vsel %vm604_vm0, %v3648_v4, 0  ;;  %v3651_v6 = vld [vmem:[%s4995_s23 + $0x4] ss:$8 sps:$4 sm:$0xff]   ;;  %v3649_v18 = vld [vmem:[%s4995_s23] ss:$8 sps:$4 sm:$0xff]  }
  0x1d   : > { %3051 = vmatprep.subr.msk.bf16.mxu0 %vm604_vm0, %v3646_v3  ;;  %v3652_v20 = vld [vmem:[%s4995_s23 + $0x14] ss:$8 sps:$4 sm:$0x3f]   ;;  %v3654_v21 = vld [vmem:[%s4995_s23 + $0x10] ss:$8 sps:$4 sm:$0x3f]  }
  0x1e   : > { %s3318_s30 = sshll.u32 %s542_s21, 5  ;;  %v3657_v26 = vld [vmem:[%s4995_s23 + $0x44] ss:$8 sps:$4 sm:$0xff]   ;;  %v686_v28 = vsel %vm604_vm0, %v3654_v21, 0  ;;  %v3655_v30 = vld [vmem:[%s4995_s23 + $0x40] ss:$8 sps:$4 sm:$0xff]  }
  0x1f   : > { %s545_s19 = scalar_lea.vmem %s4996_s27, %s3318_s30  ;;  %v3658_v31 = vld [vmem:[%s4995_s23 + $0x54] ss:$8 sps:$4 sm:$0x3f]   ;;  %v3660_v32 = vld [vmem:[%s4995_s23 + $0x50] ss:$8 sps:$4 sm:$0x3f]  }
  0x20   : > { %614 = vmatpush1.bf16.msra.mxu0 %v606_v5  ;;  %v547_v7 = vld [vmem:[%s545_s19] sm:$0xff]  ;;  %v548_v8 = vld [vmem:[%s545_s19 + $0x8] sm:$0xff]  ;;  %v549_v9 = vld [vmem:[%s545_s19 + $0x10] sm:$0xff]  ;;  %v778_v34 = vsel %vm604_vm0, %v3660_v32, 0  ;;  %s3315_s30 = sshll.u32 %s3996_s28, 4  ;;  %s3884_s28 = smov [#allocation2]  }
  0x21   : > { %v550_v10 = vld [vmem:[%s545_s19 + $0x18] sm:$0xf]  ;;  %v551_v11 = vpack.c.bf16 %v548_v8, %v547_v7  ;;  %691 = vmatprep.subr.bf16.mxu0 %v3651_v6  ;;  %v3663_v33 = vld [vmem:[%s4995_s23 + $0x64] ss:$8 sps:$4 sm:$0xff]   ;;  %v552_v36 = vpack.c.bf16 %v549_v9, %v549_v9  ;;  %v3661_v44 = vld [vmem:[%s4995_s23 + $0x60] ss:$8 sps:$4 sm:$0xff]   ;;  %s4918_s0 = scalar_lea.hbm %s4977_s17, %s3315_s30 }
  0x22   : > { %v4046_v12 = vpack.c.bf16 %v550_v10, %v549_v9  ;;  %v3666_v35 = vld [vmem:[%s4995_s23 + $0x70] ss:$8 sps:$4 sm:$0x3f]   ;;  %v3664_v45 = vld [vmem:[%s4995_s23 + $0x74] ss:$8 sps:$4 sm:$0x3f]  }
  0x23   : > { %v565_v13 = vshrl.u32 %v551_v11, 16  ;;  %v567_v14 = vshll.u32 %v551_v11, 16  ;;  %v946_v22 = vrot.slane %v551_v11, 2  ;;  %v750_v37 = vrot.slane %v551_v11, 1  ;;  %v3669_v47 = vld [vmem:[%s4995_s23 + $0x84] ss:$8 sps:$4 sm:$0xff]  }
  0x24   : > { %v572_v15 = vshll.u32 %v4046_v12, 16  ;;  %v947_v24 = vrot.slane %v4046_v12, 2  ;;  %v576_v25 = vshrl.u32 %v4046_v12, 16  ;;  %v751_v38 = vrot.slane %v4046_v12, 1  ;;  %v3667_v51 = vld [vmem:[%s4995_s23 + $0x80] ss:$8 sps:$4 sm:$0xff]  }
  0x25   : > { %v569_v16 = vrot.slane %v567_v14, 1  ;;  %v846_v39 = vrot.slane %v565_v13, 1  ;;  %v847_v40 = vrot.slane %v567_v14, 2  ;;  %v878_v43 = vsel %vm604_vm0, %v3666_v35, 0  ;;  %v1346_v0 = vld [vmem:[%s4966_s6 + $0x28] sm:$0xff]  ;;  %v1347_v3 = vld [vmem:[%s4966_s6 + $0x30] sm:$0xff] }
  0x26   : > { %v574_v17 = vrot.slane %v572_v15, 1  ;;  %v948_v27 = vsel %vm604_vm0, %v946_v22, %v947_v24  ;;  %v850_v41 = vrot.slane %v572_v15, 2  ;;  %v849_v42 = vrot.slane %v576_v25, 1  ;;  %v3670_v52 = vld [vmem:[%s4995_s23 + $0x94] ss:$8 sps:$4 sm:$0x3f]  }
  0x27   : > { %v570_v19 = vor.u32 %v569_v16, %v565_v13  ;;  %v752_v46 = vsel %vm749_vm3, %v750_v37, %v751_v38  ;;  %v848_v48 = vor.u32 %v847_v40, %v846_v39  ;;  %v3672_v53 = vld [vmem:[%s4995_s23 + $0x90] ss:$8 sps:$4 sm:$0x3f]   ;;  %v3476_v1 = vpack.c.bf16 %v1346_v0, %v1345_v63  ;;  %v1349_v6 = vld [vmem:[%s4966_s6 + $0x40] sm:$0xff]  ;;  %v1350_v7 = vld [vmem:[%s4966_s6 + $0x48] sm:$0xff]  ;;  %s540_s19 = scalar_lea.vmem [#allocation2], %s539_s29 }
  0x28   : > { %v578_v29 = vor.u32 %v576_v25, %v574_v17  ;;  %v851_v49 = vor.u32 %v850_v41, %v849_v42  ;;  %v974_v54 = vsel %vm604_vm0, %v3672_v53, 0  ;;  %v1348_v4 = vld [vmem:[%s4966_s6 + $0x38] sm:$0xff]  ;;  %v3482_v8 = vpack.c.bf16 %v1350_v7, %v1349_v6  ;;  %v1351_v9 = vld [vmem:[%s4966_s6 + $0x50] sm:$0xff]  ;;  %v1353_v12 = vld [vmem:[%s4966_s6 + $0x60] sm:$0xff]  ;;  %s2982_s26 = sshll.u32 %s540_s19, 4  ;;  %s3820_s21 = sshll.u32 %s3884_s28, 4  ;;  %s4920_s26 = int_to_ptr.vmem [resolvable:$true] %s2982_s26  ;;  %s3821_s21 = int_to_ptr.vmem [resolvable:$false] %s3820_s21 }
  0x29   : > { %v575_v23 = vsel %vm563_vm1, %v570_v19, %v574_v17  ;;  %v3479_v5 = vpack.c.bf16 %v1348_v4, %v1347_v3  ;;  %v1352_v10 = vld [vmem:[%s4966_s6 + $0x58] sm:$0xff]  ;;  %v1354_v13 = vld [vmem:[%s4966_s6 + $0x68] sm:$0xff]  ;;  %v1355_v15 = vld [vmem:[%s4966_s6 + $0x70] sm:$0xff]  ;;  %s3816_s18 = scalar_lea.vmem %s4920_s26, 16  ;;  %s3822_s22 = scalar_lea.vmem %s3821_s21, 32 }
  0x2a   : > { %3052 = vmatmul.mubr.msk.bf16.vlgmr.msra.gmra.mrb[0].mxu0 %vm597_vm2, %v575_v23  ;;  %v852_v50 = vsel %vm845_vm4, %v848_v48, %v851_v49  ;;  %v3488_v14 = vpack.c.bf16 %v1354_v13, %v1353_v12  ;;  %v1356_v16 = vld [vmem:[%s4966_s6 + $0x78] sm:$0xff]  ;;  %v1358_v19 = vld [vmem:[%s4966_s6 + $0x88] sm:$0xff]  ;;  %v1359_v21 = vld [vmem:[%s4966_s6 + $0x90] sm:$0xff]  ;;  %p3817_p11 = scmp.ne.s32.totalorder %s4920_s26, %s3816_s18  ;;  %p3823_p0 = scmp.lt.s32.totalorder %s4920_s26, %s3821_s21 }
  0x2b   : > { %653 = vmatprep.mubr.bf16.mxu0 %v3880_v2  ;;  %692 = vmatpush1.bf16.msra.mxu0 %v3649_v18  ;;  %v3491_v17 = vpack.c.bf16 %v1356_v16, %v1355_v15  ;;  %v1357_v18 = vld [vmem:[%s4966_s6 + $0x80] sm:$0xff]  ;;  %v1360_v22 = vld [vmem:[%s4966_s6 + $0x98] sm:$0xff]  ;;  %v1362_v25 = vld [vmem:[%s4966_s6 + $0xa8] sm:$0xff]  ;;  %p3824_p1 = scmp.lt.s32.totalorder %s3822_s22, %s3816_s18 }
  0x2c   : > { %3058 = vmatprep.subr.msk.bf16.mxu0 %vm604_vm0, %v3652_v20  ;;  %v3494_v20 = vpack.c.bf16 %v1358_v19, %v1357_v18  ;;  %v3497_v23 = vpack.c.bf16 %v1360_v22, %v1359_v21  ;;  %v1054_v16 = vld [vmem:[%s4963_s3] sm:$0xff]  ;;  %v1230_v19 = vld [vmem:[%s4965_s5 + $0x8] sm:$0xff]  ;;  %v1231_v22 = vld [vmem:[%s4965_s5 + $0x10] sm:$0xff]  ;;  %p3818_p12 = pnand %p3817_p11, %p4013_p5 }
  0x2d   : > { %v1229_v18 = vld [vmem:[%s4965_s5] sm:$0xff]  ;;  %p3825_p2 = por %p3824_p1, %p3823_p0 }
  0x2e   : > { %v3425_v21 = vpack.c.bf16 %v1230_v19, %v1229_v18  ;;  %p3819_p13 = pneg %p3818_p12 }
  0x2f   : > { %694 = vmatpush1.bf16.msra.mxu0 %v686_v28  ;;  %v1364_v28 = vld [vmem:[%s4966_s6 + $0xb8] sm:$0xff] }
  0x30   : > { %783 = vmatprep.subr.bf16.mxu0 %v3657_v26  ;;  %p3826_p3 = pnand %p3825_p2, %p3819_p13 }
  0x32   : > { %3053 = vmatmul.mubr.msk.bf16.gmra.mrb[4].mxu0 %vm597_vm2, %v578_v29 }
  0x33   : > { %723 = vmatprep.mubr.bf16.mxu0 %v3880_v2 }
  0x3a   : > { %3059 = vmatmul.mubr.msk.bf16.vlgmr.msra.gmra.mrb[0].mxu0 %vm597_vm2, %v551_v11  ;;  %v3485_v11 = vpack.c.bf16 %v1352_v10, %v1351_v9 }
  0x3b   : > { %733 = vmatprep.mubr.bf16.mxu0 %v3880_v2  ;;  %784 = vmatpush1.bf16.msra.mxu0 %v3655_v30 }
  0x3c   : > { %3069 = vmatprep.subr.msk.bf16.mxu0 %vm604_vm0, %v3658_v31 }
  0x3f   : > { %786 = vmatpush1.bf16.msra.mxu0 %v778_v34 }
  0x40   : > { %883 = vmatprep.subr.bf16.mxu0 %v3663_v33 }
  0x42   : > { %3060 = vmatmul.mubr.msk.bf16.gmra.mrb[8].mxu0 %vm597_vm2, %v552_v36 }
  0x43   : > { %815 = vmatprep.mubr.bf16.mxu0 %v3880_v2 }
  0x4a   : > { %3070 = vmatmul.mubr.msk.bf16.vlgmr.msra.gmra.mrb[0].mxu0 %vm597_vm2, %v752_v46  ;;  %v1038_v46 = vlaneseq }
  0x4b   : > { %825 = vmatprep.mubr.bf16.mxu0 %v3880_v2  ;;  %884 = vmatpush1.bf16.msra.mxu0 %v3661_v44 }
  0x4c   : > { %3080 = vmatprep.subr.msk.bf16.mxu0 %vm604_vm0, %v3664_v45 }
  0x4f   : > { %886 = vmatpush1.bf16.msra.mxu0 %v878_v43 }
  0x50   : > { %979 = vmatprep.subr.bf16.mxu0 %v3669_v47  ;;  %v4215_v47 = vshrl.u32 %v1038_v46, 7 }
  0x52   : > { %3071 = vmatmul.mubr.msk.bf16.gmra.mrb[12].mxu0 %vm597_vm2, %v751_v38  ;;  %v1044_v58 = vsub.s32 1, %v4215_v47 }
  0x53   : > { %915 = vmatprep.mubr.bf16.mxu0 %v3880_v2 }
  0x54   : > { %v1045_v61 = vrot.slane %v1036_v56, %v1044_v58 }
  0x5a   : > { %3081 = vmatmul.mubr.msk.bf16.vlgmr.msra.gmra.mrb[0].mxu0 %vm597_vm2, %v852_v50 }
  0x5b   : > { %925 = vmatprep.mubr.bf16.mxu0 %v3880_v2  ;;  %980 = vmatpush1.bf16.msra.mxu0 %v3667_v51 }
  0x5c   : > { %3091 = vmatprep.subr.msk.bf16.mxu0 %vm604_vm0, %v3670_v52 }
  0x5f   : > { %982 = vmatpush1.bf16.msra.mxu0 %v974_v54  ;;  %v1040_v54 = vsub.s32 0, %v4215_v47 }
  0x60   : > { %3469 = vmatprep.subr.bf16.mxu0 %v3882_v57 }
  0x62   : > { %3082 = vmatmul.mubr.msk.bf16.gmra.mrb[16].mxu0 %vm597_vm2, %v851_v49 }
  0x63   : > { %1011 = vmatprep.mubr.bf16.mxu0 %v3880_v2 }
  0x6a   : > { %3092 = vmatmul.mubr.msk.bf16.vlgmr.msra.gmra.mrb[0].mxu0 %vm597_vm2, %v948_v27  ;;  %v1363_v27 = vld [vmem:[%s4966_s6 + $0xb0] sm:$0xff] }
  0x6b   : > { %1021 = vmatprep.mubr.bf16.mxu0 %v3880_v2  ;;  %3471 = vmatpush1.bf16.msra.mxu0 %v3470_v59  ;;  %v3503_v30 = vpack.c.bf16 %v1364_v28, %v1363_v27  ;;  %v1041_v59 = vrot.slane %v1036_v56, %v1040_v54  ;;  %v1234_v27 = vld [vmem:[%s4965_s5 + $0x28] sm:$0xff]  ;;  %v1251_v56 = vld [vmem:[%s4965_s5 + $0xb0] sm:$0xff] }
  0x6c   : > { %3472 = vmatprep.subr.bf16.mxu0 %v3882_v57 }
  0x6f   : > { %3474 = vmatpush1.bf16.msra.mxu0 %v3473_v62 }
  0x70   : > { %3475 = vmatprep.subr.bf16.mxu0 %v3882_v57 }
  0x72   : > { %3093 = vmatmul.mubr.msk.bf16.gmra.mrb[20].mxu0 %vm597_vm2, %v947_v24  ;;  %v1361_v24 = vld [vmem:[%s4966_s6 + $0xa0] sm:$0xff] }
  0x73   : > { %3477 = vmatpush1.bf16.msra.mxu0 %v3476_v1  ;;  %v3500_v26 = vpack.c.bf16 %v1362_v25, %v1361_v24  ;;  %v1141_v24 = vld [vmem:[%s4964_s4 + $0x8] sm:$0xf] }
  0x74   : > { %3478 = vmatprep.subr.bf16.mxu0 %v3882_v57 }
  0x77   : > { %3480 = vmatpush1.bf16.msra.mxu0 %v3479_v5 }
  0x78   : > { %3481 = vmatprep.subr.bf16.mxu0 %v3882_v57 }
  0x7b   : > { %3483 = vmatpush1.bf16.msra.mxu0 %v3482_v8 }
  0x7c   : > { %3484 = vmatprep.subr.bf16.mxu0 %v3882_v57 }
  0x7f   : > { %3486 = vmatpush1.bf16.msra.mxu0 %v3485_v11 }
  0x80   : > { %3487 = vmatprep.subr.bf16.mxu0 %v3882_v57 }
  0x83   : > { %3489 = vmatpush1.bf16.msra.mxu0 %v3488_v14 }
  0x84   : > { %3490 = vmatprep.subr.bf16.mxu0 %v3882_v57 }
  0x87   : > { %3492 = vmatpush1.bf16.msra.mxu0 %v3491_v17  ;;  %v1055_v17 = vld [vmem:[%s4963_s3 + $0x8] sm:$0xf] }
  0x88   : > { %3493 = vmatprep.subr.bf16.mxu0 %v3882_v57 }
  0x8b   : > { %3495 = vmatpush1.bf16.msra.mxu0 %v3494_v20  ;;  %v1140_v20 = vld [vmem:[%s4964_s4] sm:$0xff] }
  0x8c   : > { %3496 = vmatprep.subr.bf16.mxu0 %v3882_v57 }
  0x8f   : > { %3498 = vmatpush1.bf16.msra.mxu0 %v3497_v23  ;;  %v1232_v23 = vld [vmem:[%s4965_s5 + $0x18] sm:$0xff] }
  0x90   : > { %3499 = vmatprep.subr.bf16.mxu0 %v3882_v57  ;;  %v3428_v25 = vpack.c.bf16 %v1232_v23, %v1231_v22 }
  0x93   : > { %3501 = vmatpush1.bf16.msra.mxu0 %v3500_v26  ;;  %v1233_v26 = vld [vmem:[%s4965_s5 + $0x20] sm:$0xff] }
  0x94   : > { %3502 = vmatprep.subr.bf16.mxu0 %v3882_v57  ;;  %v3431_v28 = vpack.c.bf16 %v1234_v27, %v1233_v26  ;;  %v3673_v26 = vld [vmem:[%s4967_s7 + $0xf0] ss:$8 sps:$4 sm:$0xff]  }
  0x95   : > { %v3676_v27 = vld [vmem:[%s4967_s7 + $0x78] ss:$8 sps:$4 sm:$0xff]  }
  0x97   : > { %3504 = vmatpush1.bf16.msra.mxu0 %v3503_v30  ;;  %v1236_v30 = vld [vmem:[%s4965_s5 + $0x38] sm:$0xff] }
  0x98   : > { %3505 = vmatprep.subr.bf16.mxu0 %v3882_v57 }
 0x105   : > { %v655_v29 = vpop.f32.mrb[4].mxu0 }
 0x106   : > { %v657_v31 = vpop.f32.mrb[5].mxu0 }
 0x107   : > { %v659_v32 = vpop.f32.mrb[6].mxu0 }
 0x108   : > { %v660_v33 = vpop.f32.mrb[7].mxu0  ;;  %v1237_v32 = vld [vmem:[%s4965_s5 + $0x40] sm:$0xff] }
 0x109   : > { %v1238_v33 = vld [vmem:[%s4965_s5 + $0x48] sm:$0xff] }
 0x115   : > { %v735_v34 = vpop.f32.mrb[8].mxu0 }
 0x116   : > { %v736_v35 = vadd.f32 %v735_v34, %v655_v29  ;;  %v737_v36 = vpop.f32.mrb[9].mxu0  ;;  %v1235_v29 = vld [vmem:[%s4965_s5 + $0x30] sm:$0xff]  ;;  %v3437_v34 = vpack.c.bf16 %v1238_v33, %v1237_v32 }
 0x117   : > { %v738_v37 = vadd.f32 %v737_v36, %v657_v31  ;;  %v739_v38 = vpop.f32.mrb[10].mxu0  ;;  %v3434_v31 = vpack.c.bf16 %v1236_v30, %v1235_v29  ;;  %v1240_v36 = vld [vmem:[%s4965_s5 + $0x58] sm:$0xff]  ;;  %v3684_v29 = vld [vmem:[%s4967_s7 + $0x8c] ss:$8 sps:$4 sm:$0xff]  }
 0x118   : > { %v740_v39 = vpop.f32.mrb[11].mxu0  ;;  %v1241_v38 = vld [vmem:[%s4965_s5 + $0x60] sm:$0xff] }
 0x119   : > { %v1242_v39 = vld [vmem:[%s4965_s5 + $0x68] sm:$0xff] }
 0x125   : > { %v827_v40 = vpop.f32.mrb[12].mxu0 }
 0x126   : > { %v838_v41 = vadd.f32 %v827_v40, %v736_v35  ;;  %v829_v42 = vpop.f32.mrb[13].mxu0  ;;  %v1239_v35 = vld [vmem:[%s4965_s5 + $0x50] sm:$0xff]  ;;  %v3443_v40 = vpack.c.bf16 %v1242_v39, %v1241_v38  ;;  %v3688_v39 = vld [vmem:[%s4967_s7 + $0x98] ss:$8 sps:$4 sm:$0xff]  }
 0x127   : > { %v839_v43 = vadd.f32 %v829_v42, %v738_v37  ;;  %v831_v44 = vpop.f32.mrb[14].mxu0  ;;  %v3440_v37 = vpack.c.bf16 %v1240_v36, %v1239_v35  ;;  %v1244_v42 = vld [vmem:[%s4965_s5 + $0x78] sm:$0xff]  ;;  %v3682_v35 = vld [vmem:[%s4967_s7 + $0x88] ss:$8 sps:$4 sm:$0xff]  }
 0x128   : > { %v832_v45 = vpop.f32.mrb[15].mxu0  ;;  %v1245_v44 = vld [vmem:[%s4965_s5 + $0x80] sm:$0xff]  ;;  %v3687_v36 = vld [vmem:[%s4967_s7 + $0x114] ss:$8 sps:$4 sm:$0xff]   ;;  %v3685_v38 = vld [vmem:[%s4967_s7 + $0x110] ss:$8 sps:$4 sm:$0xff]  }
 0x129   : > { %v1246_v45 = vld [vmem:[%s4965_s5 + $0x88] sm:$0xff] }
 0x12a   : > { %v3449_v46 = vpack.c.bf16 %v1246_v45, %v1245_v44  ;;  %v3699_v44 = vld [vmem:[%s4967_s7 + $0x134] ss:$8 sps:$4 sm:$0xff]   ;;  %v3697_v45 = vld [vmem:[%s4967_s7 + $0x130] ss:$8 sps:$4 sm:$0xff]  }
 0x135   : > { %v927_v48 = vpop.f32.mrb[16].mxu0 }
 0x136   : > { %v938_v49 = vadd.f32 %v927_v48, %v838_v41  ;;  %v929_v50 = vpop.f32.mrb[17].mxu0  ;;  %v1243_v41 = vld [vmem:[%s4965_s5 + $0x70] sm:$0xff] }
 0x137   : > { %v939_v51 = vadd.f32 %v929_v50, %v839_v43  ;;  %v931_v52 = vpop.f32.mrb[18].mxu0  ;;  %v3446_v43 = vpack.c.bf16 %v1244_v42, %v1243_v41  ;;  %v1247_v48 = vld [vmem:[%s4965_s5 + $0x90] sm:$0xff]  ;;  %v3691_v42 = vld [vmem:[%s4967_s7 + $0x120] ss:$8 sps:$4 sm:$0xff]  }
 0x138   : > { %v932_v53 = vpop.f32.mrb[19].mxu0  ;;  %v1250_v52 = vld [vmem:[%s4965_s5 + $0xa8] sm:$0xff] }
 0x139   : > { %v3696_v41 = vld [vmem:[%s4967_s7 + $0xac] ss:$8 sps:$4 sm:$0xff]  }
 0x13d   : > { %v1013_v60 = vpop.f32.mrb[0].mxu0 }
 0x13e   : > { %v1015_v62 = vpop.f32.mrb[1].mxu0  ;;  %v1048_v0 = vadd.f32 %v1041_v59, %v1013_v60 }
 0x13f   : > { %v1017_v63 = vpop.f32.mrb[2].mxu0  ;;  %v1049_v4 = vadd.f32 %v1045_v61, %v1015_v62  ;;  %v1254_v62 = vld [vmem:[%s4965_s5 + $0xc8] sm:$0xff] }
 0x140   : > { %v1050_v1 = vadd.f32 %v1041_v59, %v1017_v63  ;;  %v1019_v3 = vpop.f32.mrb[3].mxu0  ;;  %v1365_v63 = vld [vmem:[%s4966_s6 + $0xc0] sm:$0xff] }
 0x141   : > { %v1051_v5 = vadd.f32 %v1045_v61, %v1019_v3 }
 0x142   : > { %v3418_v6 = vpack.c.bf16 %v1050_v1, %v1048_v0  ;;  %v1366_v1 = vld [vmem:[%s4966_s6 + $0xc8] sm:$0xff] }
 0x143   : > { %v3416_v7 = vpack.c.bf16 %v1051_v5, %v1049_v4  ;;  %v3506_v3 = vpack.c.bf16 %v1366_v1, %v1365_v63  ;;  %v1255_v4 = vld [vmem:[%s4965_s5 + $0xd0] sm:$0xff]  ;;  %v1256_v5 = vld [vmem:[%s4965_s5 + $0xd8] sm:$0xff]  ;;  %v3116_v1 = vld [vmem:[%s4967_s7 + $0xe8] sm:$0xff] }
 0x144   : > { %v3712_v63 = vld [vmem:[%s4967_s7 + $0xd8] ss:$8 sps:$4 sm:$0xff]  }
 0x145   : > { %v1023_v8 = vpop.f32.mrb[20].mxu0  ;;  %3417 = vmatprep.subr.bf16.mxu1 %v3416_v7  ;;  %3507 = vmatpush1.bf16.msra.mxu0 %v3506_v3  ;;  %v3132_v3 = vcombine.high %v3116_v1, %v3116_v1 }
 0x146   : > { %v1034_v9 = vadd.f32 %v1023_v8, %v938_v49  ;;  %v1025_v10 = vpop.f32.mrb[21].mxu0  ;;  %3419 = vmatpush1.bf16.msra.mxu1 %v3418_v6  ;;  %v1248_v49 = vld [vmem:[%s4965_s5 + $0x98] sm:$0xff]  ;;  %3508 = vmatprep.subr.bf16.mxu0 %v3882_v57 }
 0x147   : > { %v1035_v11 = vadd.f32 %v1025_v10, %v939_v51  ;;  %v1027_v12 = vpop.f32.mrb[22].mxu0  ;;  %v3452_v50 = vpack.c.bf16 %v1248_v49, %v1247_v48  ;;  %v1249_v51 = vld [vmem:[%s4965_s5 + $0xa0] sm:$0xff]  ;;  %v1368_v8 = vld [vmem:[%s4966_s6 + $0xd8] sm:$0xff] }
 0x148   : > { %v1028_v13 = vpop.f32.mrb[23].mxu0  ;;  %v1052_v15 = vadd.f32 %v1041_v59, %v1034_v9  ;;  %v3455_v53 = vpack.c.bf16 %v1250_v52, %v1249_v51  ;;  %v1252_v59 = vld [vmem:[%s4965_s5 + $0xb8] sm:$0xff]  ;;  %v1257_v10 = vld [vmem:[%s4965_s5 + $0xe0] sm:$0xff]  ;;  %v3708_v51 = vld [vmem:[%s4967_s7 + $0xcc] ss:$8 sps:$4 sm:$0xff]  }
 0x149   : > { %v1053_v14 = vadd.f32 %v1045_v61, %v1035_v11  ;;  %v3458_v60 = vpack.c.bf16 %v1252_v59, %v1251_v56  ;;  %v1253_v61 = vld [vmem:[%s4965_s5 + $0xc0] sm:$0xff]  ;;  %v1258_v11 = vld [vmem:[%s4965_s5 + $0xe8] sm:$0xff]  ;;  %v3711_v52 = vld [vmem:[%s4967_s7 + $0x154] ss:$8 sps:$4 sm:$0xff]  }
 0x14a   : > { %v3461_v0 = vpack.c.bf16 %v1254_v62, %v1253_v61  ;;  %v1369_v12 = vld [vmem:[%s4966_s6 + $0xe0] sm:$0xff]  ;;  %v3467_v13 = vpack.c.bf16 %v1258_v11, %v1257_v10  ;;  %v3709_v56 = vld [vmem:[%s4967_s7 + $0x150] ss:$8 sps:$4 sm:$0xff]  }
 0x14b   : > { %1067 = vmatprep.subr.mxu1 %v1053_v14  ;;  %v3705_v48 = vld [vmem:[%s4967_s7 + $0x144] ss:$8 sps:$4 sm:$0xff]   ;;  %v3700_v49 = vld [vmem:[%s4967_s7 + $0xb8] ss:$8 sps:$4 sm:$0xff]  }
 0x14c   : > { %1068 = vmatpush1.msra.mxu1 %v1052_v15  ;;  %v3167_v59 = vld [vmem:[%s4967_s7 + $0x160] sm:$0xff] }
 0x14d   : > { %3094 = vmatmul.mubr.msk.f32.vlgmr.msra.gmra.mrb[0].mxu1 %vm1056_vm5, %v1054_v16  ;;  %3421 = vmatprep.subr.bf16.mxu1 %v3416_v7  ;;  %v3464_v7 = vpack.c.bf16 %v1256_v5, %v1255_v4  ;;  %v3675_v16 = vld [vmem:[%s4967_s7 + $0xf4] ss:$8 sps:$4 sm:$0xff]   ;;  %v3183_v61 = vcombine.high %v3167_v59, %v3167_v59  ;;  %v3182_v62 = vcombine.low %v3167_v59, %v3167_v59  ;;  %v3720_v4 = vld [vmem:[%s4967_s7 + $0x1e4] ss:$8 sps:$4 sm:$0xff]  }
 0x14e   : > { %3423 = vmatpush1.bf16.msra.mxu1 %v3418_v6  ;;  %1133 = vmatprep.mubr.f32.mxu1 %v3881_v55  ;;  %v1367_v6 = vld [vmem:[%s4966_s6 + $0xd0] sm:$0xff]  ;;  %v3131_v5 = vcombine.low %v3116_v1, %v3116_v1  ;;  %v3760_v59 = vld [vmem:[%s4967_s7 + $0x64] ss:$8 sps:$4 sm:$0xff]  }
 0x14f   : > { %1152 = vmatprep.subr.mxu1 %v1053_v14  ;;  %v3509_v9 = vpack.c.bf16 %v1368_v8, %v1367_v6  ;;  %v1370_v14 = vld [vmem:[%s4966_s6 + $0xe8] sm:$0xff] }
 0x150   : > { %v1571_v6 = vsel %vm1569_vm7, %v3131_v5, 0 }
 0x151   : > { %3095 = vmatmul.mubr.msk.f32.gmra.mrb[2].mxu1 %vm1056_vm5, %v1055_v17  ;;  %3510 = vmatpush1.bf16.msra.mxu0 %v3509_v9  ;;  %v3678_v17 = vld [vmem:[%s4967_s7 + $0x7c] ss:$8 sps:$4 sm:$0xff]  }
 0x152   : > { %1153 = vmatpush1.msra.mxu1 %v1052_v15  ;;  %1212 = vmatprep.mubr.f32.mxu1 %v3881_v55  ;;  %v3512_v15 = vpack.c.bf16 %v1370_v14, %v1369_v12 }
 0x153   : > { %3424 = vmatprep.subr.bf16.mxu1 %v3882_v57  ;;  %3511 = vmatprep.subr.bf16.mxu0 %v3882_v57 }
 0x155   : > { %3096 = vmatmul.mubr.msk.f32.vlgmr.msra.gmra.mrb[4].mxu1 %vm1056_vm5, %v1140_v20  ;;  %3513 = vmatpush1.bf16.msra.mxu0 %v3512_v15 }
 0x156   : > { %1218 = vmatprep.mubr.f32.mxu1 %v3881_v55  ;;  %3426 = vmatpush1.bf16.msra.mxu1 %v3425_v21 }
 0x157   : > { %3427 = vmatprep.subr.bf16.mxu1 %v3882_v57  ;;  %1844 = vmatprep.subr.bf16.mxu0 %v3675_v16 }
 0x159   : > { %3097 = vmatmul.mubr.msk.f32.gmra.mrb[6].mxu1 %vm1056_vm5, %v1141_v24 }
 0x15a   : > { %3429 = vmatpush1.bf16.msra.mxu1 %v3428_v25 }
 0x15b   : > { %3430 = vmatprep.subr.bf16.mxu1 %v3882_v57 }
 0x15e   : > { %3432 = vmatpush1.bf16.msra.mxu1 %v3431_v28  ;;  %v3681_v28 = vld [vmem:[%s4967_s7 + $0x104] ss:$8 sps:$4 sm:$0xff]  }
 0x15f   : > { %3433 = vmatprep.subr.bf16.mxu1 %v3882_v57 }
 0x162   : > { %3435 = vmatpush1.bf16.msra.mxu1 %v3434_v31 }
 0x163   : > { %3436 = vmatprep.subr.bf16.mxu1 %v3882_v57 }
 0x166   : > { %3438 = vmatpush1.bf16.msra.mxu1 %v3437_v34  ;;  %v3679_v34 = vld [vmem:[%s4967_s7 + $0x100] ss:$8 sps:$4 sm:$0xff]  }
 0x167   : > { %3439 = vmatprep.subr.bf16.mxu1 %v3882_v57 }
 0x16a   : > { %3441 = vmatpush1.bf16.msra.mxu1 %v3440_v37  ;;  %v3690_v37 = vld [vmem:[%s4967_s7 + $0x9c] ss:$8 sps:$4 sm:$0xff]  }
 0x16b   : > { %3442 = vmatprep.subr.bf16.mxu1 %v3882_v57 }
 0x16e   : > { %3444 = vmatpush1.bf16.msra.mxu1 %v3443_v40  ;;  %v3693_v40 = vld [vmem:[%s4967_s7 + $0x124] ss:$8 sps:$4 sm:$0xff]  }
 0x16f   : > { %3445 = vmatprep.subr.bf16.mxu1 %v3882_v57 }
 0x172   : > { %3447 = vmatpush1.bf16.msra.mxu1 %v3446_v43  ;;  %v3694_v43 = vld [vmem:[%s4967_s7 + $0xa8] ss:$8 sps:$4 sm:$0xff]  }
 0x173   : > { %3448 = vmatprep.subr.bf16.mxu1 %v3882_v57 }
 0x176   : > { %3450 = vmatpush1.bf16.msra.mxu1 %v3449_v46  ;;  %v3702_v46 = vld [vmem:[%s4967_s7 + $0xbc] ss:$8 sps:$4 sm:$0xff]  }
 0x177   : > { %3451 = vmatprep.subr.bf16.mxu1 %v3882_v57 }
 0x17a   : > { %3453 = vmatpush1.bf16.msra.mxu1 %v3452_v50  ;;  %v3703_v50 = vld [vmem:[%s4967_s7 + $0x140] ss:$8 sps:$4 sm:$0xff]  }
 0x17b   : > { %3454 = vmatprep.subr.bf16.mxu1 %v3882_v57 }
 0x17e   : > { %3456 = vmatpush1.bf16.msra.mxu1 %v3455_v53  ;;  %v3706_v53 = vld [vmem:[%s4967_s7 + $0xc8] ss:$8 sps:$4 sm:$0xff]  }
 0x17f   : > { %3457 = vmatprep.subr.bf16.mxu1 %v3882_v57 }
 0x182   : > { %3459 = vmatpush1.bf16.msra.mxu1 %v3458_v60  ;;  %v3714_v60 = vld [vmem:[%s4967_s7 + $0xdc] ss:$8 sps:$4 sm:$0xff]  }
 0x183   : > { %3460 = vmatprep.subr.bf16.mxu1 %v3882_v57 }
 0x186   : > { %3462 = vmatpush1.bf16.msra.mxu1 %v3461_v0  ;;  %v1839_v0 = vsel %vm1569_vm7, %v3182_v62, 0  ;;  %v1465_v62 = vld [vmem:[%s4967_s7 + $0x70] sm:$0xff] }
 0x187   : > { %3463 = vmatprep.subr.bf16.mxu1 %v3882_v57  ;;  %v3150_v1 = vcombine.high %v1465_v62, %v1465_v62 }
 0x18a   : > { %3465 = vmatpush1.bf16.msra.mxu1 %v3464_v7  ;;  %v3724_v7 = vld [vmem:[%s4967_s7 + $0x4] ss:$8 sps:$4 sm:$0xff]  }
 0x18b   : > { %3466 = vmatprep.subr.bf16.mxu1 %v3882_v57 }
 0x18e   : > { %3468 = vmatpush1.bf16.msra.mxu1 %v3467_v13 }
 0x18f   : > { %1576 = vmatprep.subr.bf16.mxu1 %v3678_v17 }
 0x220   : > { %v1129_v18 = vpop.f32.mrb[0].mxu1 }
 0x221   : > { %v1131_v19 = vpop.f32.mrb[1].mxu1 }
 0x224   : > { %v1135_v20 = vpop.f32.mrb[2].mxu1 }
 0x225   : > { %v1137_v21 = vpop.f32.mrb[3].mxu1 }
 0x228   : > { %v1214_v22 = vpop.f32.mrb[4].mxu1 }
 0x229   : > { %v1225_v23 = vmax.f32 %v1129_v18, %v1214_v22  ;;  %v1216_v24 = vpop.f32.mrb[5].mxu1 }
 0x22a   : > { %v1226_v25 = vmax.f32 %v1131_v19, %v1216_v24 }
 0x22c   : > { %v1220_v30 = vpop.f32.mrb[6].mxu1  ;;  %3098 = vmatprep.mubr.msk.f32.mxu1 %vm1259_vm6, %v1226_v25  ;;  %3100 = vmatprep.mubr.msk.f32.mxu0 %vm1259_vm6, %v1226_v25  ;;  %v3727_v25 = vld [vmem:[%s4967_s7 + $0x1f4] ss:$8 sps:$4 sm:$0xff]  }
 0x22d   : > { %v1227_v31 = vmax.f32 %v1135_v20, %v1220_v30  ;;  %v1222_v32 = vpop.f32.mrb[7].mxu1  ;;  %1331 = vmatmul.mubr.f32.vlgmr.msra.gmra.mrb[8].mxu1 %v1225_v23  ;;  %1436 = vmatmul.mubr.f32.vlgmr.msra.gmra.mrb[24].mxu0 %v1225_v23  ;;  %v3725_v30 = vld [vmem:[%s4967_s7 + $0x1f0] ss:$8 sps:$4 sm:$0xff]  }
 0x22e   : > { %v1228_v33 = vmax.f32 %v1137_v21, %v1222_v32  ;;  %1845 = vmatpush1.bf16.msra.mxu0 %v3673_v26  ;;  %1577 = vmatpush1.bf16.msra.mxu1 %v3676_v27  ;;  %v3718_v21 = vld [vmem:[%s4967_s7 + $0x1e0] ss:$8 sps:$4 sm:$0xff]   ;;  %v3730_v32 = vld [vmem:[%s4967_s7 + $0x14] ss:$8 sps:$4 sm:$0xff]  }
 0x22f   : > { %1846 = vmatprep.subr.bf16.mxu0 %v3681_v28  ;;  %1578 = vmatprep.subr.bf16.mxu1 %v3684_v29  ;;  %v3722_v29 = vld [vmem:[%s4967_s7] ss:$8 sps:$4 sm:$0xff]  }
 0x230   : > { %3099 = vmatprep.mubr.msk.f32.mxu1 %vm1259_vm6, %v1228_v33  ;;  %3101 = vmatprep.mubr.msk.f32.mxu0 %vm1259_vm6, %v1228_v33  ;;  %v3733_v33 = vld [vmem:[%s4967_s7 + $0x204] ss:$8 sps:$4 sm:$0xff]  }
 0x231   : > { %1336 = vmatmul.mubr.f32.gmra.mrb[10].mxu1 %v1227_v31  ;;  %1441 = vmatmul.mubr.f32.gmra.mrb[26].mxu0 %v1227_v31 }
 0x232   : > { %1847 = vmatpush1.bf16.msra.mxu0 %v3679_v34  ;;  %1579 = vmatpush1.bf16.msra.mxu1 %v3682_v35  ;;  %v3728_v35 = vld [vmem:[%s4967_s7 + $0x10] ss:$8 sps:$4 sm:$0xff]  }
 0x233   : > { %1848 = vmatprep.subr.bf16.mxu0 %v3687_v36  ;;  %1580 = vmatprep.subr.bf16.mxu1 %v3690_v37  ;;  %v3731_v36 = vld [vmem:[%s4967_s7 + $0x200] ss:$8 sps:$4 sm:$0xff]   ;;  %v3736_v37 = vld [vmem:[%s4967_s7 + $0x24] ss:$8 sps:$4 sm:$0xff]  }
 0x234   : > { %1876 = vmatprep.mubr.bf16.mxu0 %v3880_v2  ;;  %1608 = vmatprep.mubr.bf16.mxu1 %v3880_v2 }
 0x236   : > { %1849 = vmatpush1.bf16.msra.mxu0 %v3685_v38  ;;  %1581 = vmatpush1.bf16.msra.mxu1 %v3688_v39  ;;  %v3739_v38 = vld [vmem:[%s4967_s7 + $0x214] ss:$8 sps:$4 sm:$0xff]   ;;  %v3734_v39 = vld [vmem:[%s4967_s7 + $0x20] ss:$8 sps:$4 sm:$0xff]  }
 0x237   : > { %1850 = vmatprep.subr.bf16.mxu0 %v3693_v40  ;;  %1582 = vmatprep.subr.bf16.mxu1 %v3696_v41  ;;  %v3737_v40 = vld [vmem:[%s4967_s7 + $0x210] ss:$8 sps:$4 sm:$0xff]   ;;  %v3742_v41 = vld [vmem:[%s4967_s7 + $0x34] ss:$8 sps:$4 sm:$0xff]  }
 0x23a   : > { %1851 = vmatpush1.bf16.msra.mxu0 %v3691_v42  ;;  %1583 = vmatpush1.bf16.msra.mxu1 %v3694_v43  ;;  %v3745_v42 = vld [vmem:[%s4967_s7 + $0x224] ss:$8 sps:$4 sm:$0xff]   ;;  %v3740_v43 = vld [vmem:[%s4967_s7 + $0x30] ss:$8 sps:$4 sm:$0xff]  }
 0x23b   : > { %1852 = vmatprep.subr.bf16.mxu0 %v3699_v44  ;;  %1584 = vmatprep.subr.bf16.mxu1 %v3702_v46  ;;  %v3743_v44 = vld [vmem:[%s4967_s7 + $0x220] ss:$8 sps:$4 sm:$0xff]   ;;  %v3751_v46 = vld [vmem:[%s4967_s7 + $0x234] ss:$8 sps:$4 sm:$0xff]  }
 0x23e   : > { %1853 = vmatpush1.bf16.msra.mxu0 %v3697_v45  ;;  %1585 = vmatpush1.bf16.msra.mxu1 %v3700_v49  ;;  %v3748_v45 = vld [vmem:[%s4967_s7 + $0x44] ss:$8 sps:$4 sm:$0xff]   ;;  %v3749_v49 = vld [vmem:[%s4967_s7 + $0x230] ss:$8 sps:$4 sm:$0xff]  }
 0x23f   : > { %1854 = vmatprep.subr.bf16.mxu0 %v3705_v48  ;;  %1586 = vmatprep.subr.bf16.mxu1 %v3708_v51  ;;  %v3746_v48 = vld [vmem:[%s4967_s7 + $0x40] ss:$8 sps:$4 sm:$0xff]   ;;  %v3757_v51 = vld [vmem:[%s4967_s7 + $0x244] ss:$8 sps:$4 sm:$0xff]  }
 0x242   : > { %1855 = vmatpush1.bf16.msra.mxu0 %v3703_v50  ;;  %1587 = vmatpush1.bf16.msra.mxu1 %v3706_v53  ;;  %v3754_v50 = vld [vmem:[%s4967_s7 + $0x54] ss:$8 sps:$4 sm:$0xff]   ;;  %v3752_v53 = vld [vmem:[%s4967_s7 + $0x50] ss:$8 sps:$4 sm:$0xff]  }
 0x243   : > { %1856 = vmatprep.subr.bf16.mxu0 %v3711_v52  ;;  %1588 = vmatprep.subr.bf16.mxu1 %v3714_v60  ;;  %v3233_v52 = vld [vmem:[%s4967_s7 + $0x250] sm:$0xff] }
 0x244   : > { %v3249_v60 = vcombine.high %v3233_v52, %v3233_v52 }
 0x246   : > { %1857 = vmatpush1.bf16.msra.mxu0 %v3709_v56  ;;  %1589 = vmatpush1.bf16.msra.mxu1 %v3712_v63  ;;  %v3755_v56 = vld [vmem:[%s4967_s7 + $0x240] ss:$8 sps:$4 sm:$0xff]  }
 0x247   : > { %3184 = vmatprep.subr.msk.bf16.mxu0 %vm1569_vm7, %v3183_v61  ;;  %3133 = vmatprep.subr.msk.bf16.mxu1 %vm1569_vm7, %v3132_v3  ;;  %v3248_v61 = vcombine.low %v3233_v52, %v3233_v52  ;;  %v3758_v63 = vld [vmem:[%s4967_s7 + $0x60] ss:$8 sps:$4 sm:$0xff]   ;;  %v3149_v3 = vcombine.low %v1465_v62, %v1465_v62 }
 0x248   : > { %v2438_v62 = vld [vmem:[%s4972_s12] sm:$0xff] }
 0x249   : > { %v1696_v5 = vsel %vm1569_vm7, %v3149_v3, 0 }
 0x24a   : > { %1859 = vmatpush1.bf16.msra.mxu0 %v1839_v0  ;;  %1591 = vmatpush1.bf16.msra.mxu1 %v1571_v6  ;;  %v2129_v0 = vsel %vm1569_vm7, %v3248_v61, 0  ;;  %v3767_v6 = vld [vmem:[%s4967_s7 + $0x16c] ss:$8 sps:$4 sm:$0xff]  }
 0x24b   : > { %2134 = vmatprep.subr.bf16.mxu0 %v3720_v4  ;;  %1701 = vmatprep.subr.bf16.mxu1 %v3724_v7  ;;  %v3765_v7 = vld [vmem:[%s4967_s7 + $0x168] ss:$8 sps:$4 sm:$0xff]  }
 0x24c   : > { %v2345_v61 = vld [vmem:[%s4971_s11 + $0x8] sm:$0xff] }
 0x300   : > { %v1332_v8 = vpop.f32.mrb[8].mxu1  ;;  %v1437_v9 = vpop.f32.mrb[24].mxu0 }
 0x301   : > { %v1446_v10 = vmax.f32 %v1332_v8, %v1437_v9  ;;  %v1334_v11 = vpop.f32.mrb[9].mxu1  ;;  %v1439_v12 = vpop.f32.mrb[25].mxu0  ;;  %v3770_v9 = vld [vmem:[%s4967_s7 + $0x17c] ss:$8 sps:$4 sm:$0xff]  }
 0x302   : > { %v3773_v11 = vld [vmem:[%s4967_s7 + $0x18c] ss:$8 sps:$4 sm:$0xff]   ;;  %v3771_v12 = vld [vmem:[%s4967_s7 + $0x188] ss:$8 sps:$4 sm:$0xff]  }
 0x303   : > { %v4476_v18 = vmax.f32 %v1446_v10, 0.0  ;;  %v3768_v10 = vld [vmem:[%s4967_s7 + $0x178] ss:$8 sps:$4 sm:$0xff]  }
 0x304   : > { %v1337_v13 = vpop.f32.mrb[10].mxu1  ;;  %v1442_v14 = vpop.f32.mrb[26].mxu0 }
 0x305   : > { %v1447_v15 = vmax.f32 %v1337_v13, %v1442_v14  ;;  %v1339_v16 = vpop.f32.mrb[11].mxu1  ;;  %v1444_v17 = vpop.f32.mrb[27].mxu0  ;;  %v1450_v8 = vpack.c.bf16 %v4476_v18, %v4476_v18  ;;  %v3776_v13 = vld [vmem:[%s4967_s7 + $0x19c] ss:$8 sps:$4 sm:$0xff]   ;;  %v3779_v14 = vld [vmem:[%s4967_s7 + $0x1ac] ss:$8 sps:$4 sm:$0xff]  }
 0x306   : > { %v3782_v16 = vld [vmem:[%s4967_s7 + $0x1bc] ss:$8 sps:$4 sm:$0xff]   ;;  %v3780_v17 = vld [vmem:[%s4967_s7 + $0x1b8] ss:$8 sps:$4 sm:$0xff]  }
 0x307   : > { %v1449_v19 = vmax.f32 %v1447_v15, 0.0  ;;  %v3777_v15 = vld [vmem:[%s4967_s7 + $0x1a8] ss:$8 sps:$4 sm:$0xff]  }
 0x309   : > { %v4479_v20 = vpack.c.bf16 %v1449_v19, %v4476_v18  ;;  %v3785_v18 = vld [vmem:[%s4967_s7 + $0x1cc] ss:$8 sps:$4 sm:$0xff]   ;;  %v3200_v19 = vld [vmem:[%s4967_s7 + $0x1d8] sm:$0xff] }
 0x30b   : > { %v1484_v22 = vshrl.u32 %v4479_v20, 16  ;;  %v1486_v23 = vshll.u32 %v4479_v20, 16  ;;  %v1759_v24 = vrot.slane %v4479_v20, 1  ;;  %v2049_v4 = vrot.slane %v4479_v20, 2  ;;  %v3783_v20 = vld [vmem:[%s4967_s7 + $0x1c8] ss:$8 sps:$4 sm:$0xff]  }
 0x30d   : > { %v1488_v26 = vrot.slane %v1486_v23, 1  ;;  %v4490_v27 = vrot.slane %v1484_v22, 1  ;;  %v4492_v28 = vrot.slane %v1486_v23, 2  ;;  %3185 = vmatmul.mubr.msk.bf16.vlgmr.msra.gmra.mrb[28].mxu0 %vm1565_vm8, %v1759_v24 }
 0x30e   : > { %2135 = vmatpush1.bf16.msra.mxu0 %v3718_v21  ;;  %2166 = vmatprep.mubr.bf16.mxu0 %v3880_v2  ;;  %v3216_v21 = vcombine.high %v3200_v19, %v3200_v19 }
 0x30f   : > { %v1489_v31 = vor.u32 %v1488_v26, %v1484_v22  ;;  %2136 = vmatprep.subr.bf16.mxu0 %v3727_v25  ;;  %v1905_v34 = vor.u32 %v4492_v28, %v4490_v27  ;;  %v3215_v22 = vcombine.low %v3200_v19, %v3200_v19 }
 0x311   : > { %3134 = vmatmul.mubr.msk.bf16.vlgmr.msra.gmra.mrb[12].mxu1 %vm1565_vm8, %v1489_v31  ;;  %v1985_v23 = vsel %vm1569_vm7, %v3215_v22, 0  ;;  %v2353_v22 = vld [vmem:[%s4971_s11 + $0x48] sm:$0xff] }
 0x312   : > { %1702 = vmatpush1.bf16.msra.mxu1 %v3722_v29  ;;  %2137 = vmatpush1.bf16.msra.mxu0 %v3725_v30 }
 0x313   : > { %1703 = vmatprep.subr.bf16.mxu1 %v3730_v32  ;;  %2138 = vmatprep.subr.bf16.mxu0 %v3733_v33 }
 0x314   : > { %1733 = vmatprep.mubr.bf16.mxu1 %v3880_v2 }
 0x316   : > { %1704 = vmatpush1.bf16.msra.mxu1 %v3728_v35  ;;  %2139 = vmatpush1.bf16.msra.mxu0 %v3731_v36 }
 0x317   : > { %1705 = vmatprep.subr.bf16.mxu1 %v3736_v37  ;;  %2140 = vmatprep.subr.bf16.mxu0 %v3739_v38 }
 0x31a   : > { %1706 = vmatpush1.bf16.msra.mxu1 %v3734_v39  ;;  %2141 = vmatpush1.bf16.msra.mxu0 %v3737_v40 }
 0x31b   : > { %1707 = vmatprep.subr.bf16.mxu1 %v3742_v41  ;;  %2142 = vmatprep.subr.bf16.mxu0 %v3745_v42 }
 0x31e   : > { %1708 = vmatpush1.bf16.msra.mxu1 %v3740_v43  ;;  %2143 = vmatpush1.bf16.msra.mxu0 %v3743_v44  ;;  %v2177_v44 = vld [vmem:[%s4968_s8] sm:$0x3] }
 0x31f   : > { %1709 = vmatprep.subr.bf16.mxu1 %v3748_v45  ;;  %2144 = vmatprep.subr.bf16.mxu0 %v3751_v46 }
 0x322   : > { %1710 = vmatpush1.bf16.msra.mxu1 %v3746_v48  ;;  %2145 = vmatpush1.bf16.msra.mxu0 %v3749_v49 }
 0x323   : > { %1711 = vmatprep.subr.bf16.mxu1 %v3754_v50  ;;  %2146 = vmatprep.subr.bf16.mxu0 %v3757_v51  ;;  %v2186_v51 = vrot.slane %v2177_v44, %v1044_v58  ;;  %v2439_v58 = vld [vmem:[%s4972_s12 + $0x8] sm:$0xff] }
 0x324   : > { %v3545_v3 = vpack.c.bf16 %v2439_v58, %v2438_v62 }
 0x326   : > { %1712 = vmatpush1.bf16.msra.mxu1 %v3752_v53  ;;  %2147 = vmatpush1.bf16.msra.mxu0 %v3755_v56  ;;  %v2182_v53 = vrot.slane %v2177_v44, %v1040_v54 }
 0x327   : > { %1713 = vmatprep.subr.bf16.mxu1 %v3760_v59  ;;  %3250 = vmatprep.subr.msk.bf16.mxu0 %vm1569_vm7, %v3249_v60  ;;  %v2344_v60 = vld [vmem:[%s4971_s11] sm:$0xff] }
 0x32a   : > { %1714 = vmatpush1.bf16.msra.mxu1 %v3758_v63  ;;  %2149 = vmatpush1.bf16.msra.mxu0 %v2129_v0  ;;  %v2191_v63 = vld [vmem:[%s4969_s9] sm:$0xf] }
 0x32b   : > { %3151 = vmatprep.subr.msk.bf16.mxu1 %vm1569_vm7, %v3150_v1  ;;  %v2267_v0 = vld [vmem:[%s4970_s10] sm:$0xf]  ;;  %v3515_v1 = vpack.c.bf16 %v2345_v61, %v2344_v60  ;;  %v2457_v60 = vld [vmem:[%s4972_s12 + $0x98] sm:$0xff] }
 0x32d   : > { %3251 = vmatmul.mubr.msk.bf16.vlgmr.msra.gmra.mrb[32].mxu0 %vm1565_vm8, %v2049_v4  ;;  %v2346_v4 = vld [vmem:[%s4971_s11 + $0x10] sm:$0xff] }
 0x32e   : > { %1716 = vmatpush1.bf16.msra.mxu1 %v1696_v5  ;;  %2260 = vmatprep.mubr.f32.mxu0 %v3881_v55  ;;  %v2347_v5 = vld [vmem:[%s4971_s11 + $0x18] sm:$0xff] }
 0x32f   : > { %1990 = vmatprep.subr.bf16.mxu1 %v3767_v6  ;;  %v2440_v6 = vld [vmem:[%s4972_s12 + $0x10] sm:$0xff] }
 0x331   : > { %3152 = vmatmul.mubr.msk.bf16.vlgmr.msra.gmra.mrb[16].mxu1 %vm1565_vm8, %v1450_v8  ;;  %v3518_v8 = vpack.c.bf16 %v2347_v5, %v2346_v4  ;;  %v3791_v4 = vld [vmem:[%s4973_s13 + $0x8] sm:$0xff]   ;;  %v3792_v5 = vld [vmem:[%s4973_s13 + $0x38] sm:$0xff]  }
 0x332   : > { %1991 = vmatpush1.bf16.msra.mxu1 %v3765_v7  ;;  %2022 = vmatprep.mubr.bf16.mxu1 %v3880_v2  ;;  %v3774_v2 = vld [vmem:[%s4967_s7 + $0x198] ss:$8 sps:$4 sm:$0xff]  }
 0x333   : > { %1992 = vmatprep.subr.bf16.mxu1 %v3770_v9  ;;  %v2441_v7 = vld [vmem:[%s4972_s12 + $0x18] sm:$0xff] }
 0x334   : > { %v3548_v9 = vpack.c.bf16 %v2441_v7, %v2440_v6  ;;  %v3793_v6 = vld [vmem:[%s4973_s13 + $0x10] sm:$0xff]   ;;  %v3795_v7 = vld [vmem:[%s4973_s13 + $0x18] sm:$0xff]  }
 0x336   : > { %1993 = vmatpush1.bf16.msra.mxu1 %v3768_v10  ;;  %v2348_v10 = vld [vmem:[%s4971_s11 + $0x20] sm:$0xff] }
 0x337   : > { %1994 = vmatprep.subr.bf16.mxu1 %v3773_v11  ;;  %v2349_v11 = vld [vmem:[%s4971_s11 + $0x28] sm:$0xff] }
 0x33a   : > { %1995 = vmatpush1.bf16.msra.mxu1 %v3771_v12  ;;  %v2442_v12 = vld [vmem:[%s4972_s12 + $0x20] sm:$0xff] }
 0x33b   : > { %1996 = vmatprep.subr.bf16.mxu1 %v3776_v13  ;;  %v2443_v13 = vld [vmem:[%s4972_s12 + $0x28] sm:$0xff] }
 0x33e   : > { %1997 = vmatpush1.bf16.msra.mxu1 %v3774_v2  ;;  %v3521_v2 = vpack.c.bf16 %v2349_v11, %v2348_v10  ;;  %v3796_v10 = vld [vmem:[%s4973_s13 + $0x48] sm:$0xff]  }
 0x33f   : > { %1998 = vmatprep.subr.bf16.mxu1 %v3779_v14  ;;  %v3551_v14 = vpack.c.bf16 %v2443_v13, %v2442_v12 }
 0x342   : > { %1999 = vmatpush1.bf16.msra.mxu1 %v3777_v15  ;;  %v2350_v15 = vld [vmem:[%s4971_s11 + $0x30] sm:$0xff] }
 0x343   : > { %2000 = vmatprep.subr.bf16.mxu1 %v3782_v16  ;;  %v2351_v16 = vld [vmem:[%s4971_s11 + $0x38] sm:$0xff] }
 0x344   : > { %v3524_v19 = vpack.c.bf16 %v2351_v16, %v2350_v15 }
 0x346   : > { %2001 = vmatpush1.bf16.msra.mxu1 %v3780_v17  ;;  %v2444_v17 = vld [vmem:[%s4972_s12 + $0x30] sm:$0xff] }
 0x347   : > { %2002 = vmatprep.subr.bf16.mxu1 %v3785_v18  ;;  %v2445_v18 = vld [vmem:[%s4972_s12 + $0x38] sm:$0xff] }
 0x34a   : > { %2003 = vmatpush1.bf16.msra.mxu1 %v3783_v20  ;;  %v3554_v20 = vpack.c.bf16 %v2445_v18, %v2444_v17  ;;  %v3798_v17 = vld [vmem:[%s4973_s13 + $0x50] sm:$0xff]  }
 0x34b   : > { %3217 = vmatprep.subr.msk.bf16.mxu1 %vm1569_vm7, %v3216_v21  ;;  %v2352_v21 = vld [vmem:[%s4971_s11 + $0x40] sm:$0xff] }
 0x34e   : > { %2005 = vmatpush1.bf16.msra.mxu1 %v1985_v23  ;;  %v2446_v23 = vld [vmem:[%s4972_s12 + $0x40] sm:$0xff] }
 0x351   : > { %3218 = vmatmul.mubr.msk.bf16.vlgmr.msra.gmra.mrb[20].mxu1 %vm1565_vm8, %v1905_v34 }
 0x352   : > { %2335 = vmatprep.mubr.f32.mxu1 %v3881_v55 }
 0x3e0   : > { %v1878_v24 = vpop.f32.mrb[28].mxu0 }
 0x3e1   : > { %v1880_v25 = vpop.f32.mrb[29].mxu0 }
 0x3e2   : > { %v1882_v26 = vpop.f32.mrb[30].mxu0 }
 0x3e3   : > { %v1883_v29 = vpop.f32.mrb[31].mxu0 }
 0x3e4   : > { %v1610_v30 = vpop.f32.mrb[12].mxu1  ;;  %v2354_v29 = vld [vmem:[%s4971_s11 + $0x50] sm:$0xff] }
 0x3e5   : > { %v1612_v31 = vpop.f32.mrb[13].mxu1 }
 0x3e6   : > { %v1614_v32 = vpop.f32.mrb[14].mxu1 }
 0x3e7   : > { %v1615_v33 = vpop.f32.mrb[15].mxu1  ;;  %v2449_v32 = vld [vmem:[%s4972_s12 + $0x58] sm:$0xff] }
 0x400   : > { %v2168_v35 = vpop.f32.mrb[32].mxu0 }
 0x401   : > { %v2170_v36 = vpop.f32.mrb[33].mxu0 }
 0x402   : > { %v2172_v37 = vpop.f32.mrb[34].mxu0 }
 0x403   : > { %v2173_v38 = vpop.f32.mrb[35].mxu0  ;;  %v2357_v37 = vld [vmem:[%s4971_s11 + $0x68] sm:$0xff] }
 0x404   : > { %v1735_v39 = vpop.f32.mrb[16].mxu1  ;;  %v2450_v38 = vld [vmem:[%s4972_s12 + $0x60] sm:$0xff] }
 0x405   : > { %v1736_v40 = vadd.f32 %v1735_v39, %v1610_v30  ;;  %v1737_v41 = vpop.f32.mrb[17].mxu1  ;;  %v2355_v30 = vld [vmem:[%s4971_s11 + $0x58] sm:$0xff]  ;;  %v2451_v39 = vld [vmem:[%s4972_s12 + $0x68] sm:$0xff] }
 0x406   : > { %v1738_v27 = vadd.f32 %v1737_v41, %v1612_v31  ;;  %v1739_v28 = vpop.f32.mrb[18].mxu1  ;;  %v2448_v31 = vld [vmem:[%s4972_s12 + $0x50] sm:$0xff]  ;;  %v3530_v33 = vpack.c.bf16 %v2355_v30, %v2354_v29  ;;  %v3563_v41 = vpack.c.bf16 %v2451_v39, %v2450_v38  ;;  %v3807_v30 = vld [vmem:[%s4973_s13 + $0x98] sm:$0xff]  }
 0x407   : > { %v1740_v34 = vpop.f32.mrb[19].mxu1  ;;  %v1885_v42 = vadd.f32 %v1878_v24, %v1736_v40  ;;  %v2447_v24 = vld [vmem:[%s4972_s12 + $0x48] sm:$0xff]  ;;  %v2359_v28 = vld [vmem:[%s4971_s11 + $0x78] sm:$0xff]  ;;  %v3806_v29 = vld [vmem:[%s4973_s13 + $0x90] sm:$0xff]  }
 0x408   : > { %v1886_v43 = vadd.f32 %v1880_v25, %v1738_v27  ;;  %v3527_v25 = vpack.c.bf16 %v2353_v22, %v2352_v21  ;;  %v3557_v26 = vpack.c.bf16 %v2447_v24, %v2446_v23  ;;  %v2358_v27 = vld [vmem:[%s4971_s11 + $0x70] sm:$0xff]  ;;  %v3801_v21 = vld [vmem:[%s4973_s13 + $0x68] sm:$0xff]   ;;  %v3803_v23 = vld [vmem:[%s4973_s13 + $0x78] sm:$0xff]  }
 0x409   : > { %v2452_v34 = vld [vmem:[%s4972_s12 + $0x70] sm:$0xff] }
 0x40a   : > { %v3802_v22 = vld [vmem:[%s4973_s13 + $0x70] sm:$0xff]  }
 0x424   : > { %v2024_v45 = vpop.f32.mrb[20].mxu1 }
 0x425   : > { %v2031_v46 = vadd.f32 %v2024_v45, %v1885_v42  ;;  %v2026_v48 = vpop.f32.mrb[21].mxu1  ;;  %v2453_v42 = vld [vmem:[%s4972_s12 + $0x78] sm:$0xff]  ;;  %v2360_v45 = vld [vmem:[%s4971_s11 + $0x80] sm:$0xff] }
 0x426   : > { %v2032_v49 = vadd.f32 %v2026_v48, %v1886_v43  ;;  %v2028_v50 = vpop.f32.mrb[22].mxu1  ;;  %v3536_v43 = vpack.c.bf16 %v2359_v28, %v2358_v27  ;;  %v3566_v44 = vpack.c.bf16 %v2453_v42, %v2452_v34  ;;  %v2454_v48 = vld [vmem:[%s4972_s12 + $0x80] sm:$0xff] }
 0x427   : > { %v2175_v52 = vadd.f32 %v2168_v35, %v2031_v46  ;;  %v2029_v56 = vpop.f32.mrb[23].mxu1  ;;  %v3560_v35 = vpack.c.bf16 %v2449_v32, %v2448_v31  ;;  %v2361_v46 = vld [vmem:[%s4971_s11 + $0x88] sm:$0xff]  ;;  %v3808_v32 = vld [vmem:[%s4975_s15] sm:$0xff]  }
 0x428   : > { %v2176_v59 = vadd.f32 %v2170_v36, %v2032_v49  ;;  %v2356_v36 = vld [vmem:[%s4971_s11 + $0x60] sm:$0xff]  ;;  %v2455_v49 = vld [vmem:[%s4972_s12 + $0x88] sm:$0xff]  ;;  %v3539_v50 = vpack.c.bf16 %v2361_v46, %v2360_v45  ;;  %v2456_v56 = vld [vmem:[%s4972_s12 + $0x90] sm:$0xff] }
 0x429   : > { %v2189_v54 = vadd.f32 %v2182_v53, %v2175_v52  ;;  %v3533_v40 = vpack.c.bf16 %v2357_v37, %v2356_v36  ;;  %v2362_v52 = vld [vmem:[%s4971_s11 + $0x90] sm:$0xff]  ;;  %v2363_v53 = vld [vmem:[%s4971_s11 + $0x98] sm:$0xff]  ;;  %v3572_v61 = vpack.c.bf16 %v2457_v60, %v2456_v56  ;;  %v2530_v27 = vld [vmem:[%s4974_s14] sm:$0x1] }
 0x42a   : > { %v2190_v47 = vadd.f32 %v2186_v51, %v2176_v59  ;;  %v3569_v51 = vpack.c.bf16 %v2455_v49, %v2454_v48  ;;  %v3542_v59 = vpack.c.bf16 %v2363_v53, %v2362_v52  ;;  %v3811_v36 = vld [vmem:[%s4975_s15 + $0x18] ss:$0 sps:$4 sm:$0x11]   ;;  %v2886_v48 = vld [vmem:[%s4976_s16] sm:$0x1] }
 0x42b   : > { %v2914_v37 = vsel %vm2912_vm13, %v3811_v36, 0 }
 0x42c   : > { %2196 = vmatprep.subr.mxu0 %v2190_v47  ;;  %2271 = vmatprep.subr.mxu1 %v2190_v47 }
 0x42d   : > { %2197 = vmatpush1.msra.mxu0 %v2189_v54  ;;  %2272 = vmatpush1.msra.mxu1 %v2189_v54 }
 0x42e   : > { %3252 = vmatmul.mubr.msk.f32.vlgmr.msra.gmra.mrb[36].mxu0 %vm2192_vm9, %v2191_v63  ;;  %3253 = vmatmul.mubr.msk.f32.vlgmr.msra.gmra.mrb[24].mxu1 %vm2192_vm9, %v2267_v0  ;;  %v3788_v0 = vld [vmem:[%s4973_s13 + $0x28] sm:$0xff]  }
 0x42f   : > { %3514 = vmatprep.subr.bf16.mxu1 %v3882_v57  ;;  %3544 = vmatprep.subr.bf16.mxu0 %v3882_v57 }
 0x430   : > { %3516 = vmatpush1.bf16.msra.mxu1 %v3515_v1  ;;  %3546 = vmatpush1.bf16.msra.mxu0 %v3545_v3  ;;  %v3789_v1 = vld [vmem:[%s4973_s13] sm:$0xff]   ;;  %v3790_v3 = vld [vmem:[%s4973_s13 + $0x30] sm:$0xff]  }
 0x431   : > { %3517 = vmatprep.subr.bf16.mxu1 %v3882_v57  ;;  %3547 = vmatprep.subr.bf16.mxu0 %v3882_v57 }
 0x434   : > { %3519 = vmatpush1.bf16.msra.mxu1 %v3518_v8  ;;  %3549 = vmatpush1.bf16.msra.mxu0 %v3548_v9  ;;  %v3794_v8 = vld [vmem:[%s4973_s13 + $0x40] sm:$0xff]  }
 0x435   : > { %3520 = vmatprep.subr.bf16.mxu1 %v3882_v57  ;;  %3550 = vmatprep.subr.bf16.mxu0 %v3882_v57  ;;  %v3797_v9 = vld [vmem:[%s4973_s13 + $0x20] sm:$0xff]  }
 0x438   : > { %3522 = vmatpush1.bf16.msra.mxu1 %v3521_v2  ;;  %3552 = vmatpush1.bf16.msra.mxu0 %v3551_v14 }
 0x439   : > { %3523 = vmatprep.subr.bf16.mxu1 %v3882_v57  ;;  %3553 = vmatprep.subr.bf16.mxu0 %v3882_v57 }
 0x43c   : > { %3525 = vmatpush1.bf16.msra.mxu1 %v3524_v19  ;;  %3555 = vmatpush1.bf16.msra.mxu0 %v3554_v20  ;;  %v3799_v19 = vld [vmem:[%s4973_s13 + $0x58] sm:$0xff]   ;;  %v3800_v20 = vld [vmem:[%s4973_s13 + $0x60] sm:$0xff]  }
 0x43d   : > { %3526 = vmatprep.subr.bf16.mxu1 %v3882_v57  ;;  %3556 = vmatprep.subr.bf16.mxu0 %v3882_v57 }
 0x440   : > { %3528 = vmatpush1.bf16.msra.mxu1 %v3527_v25  ;;  %3558 = vmatpush1.bf16.msra.mxu0 %v3557_v26  ;;  %v3804_v25 = vld [vmem:[%s4973_s13 + $0x80] sm:$0xff]   ;;  %v3805_v26 = vld [vmem:[%s4973_s13 + $0x88] sm:$0xff]  }
 0x441   : > { %3529 = vmatprep.subr.bf16.mxu1 %v3882_v57  ;;  %3559 = vmatprep.subr.bf16.mxu0 %v3882_v57 }
 0x444   : > { %3531 = vmatpush1.bf16.msra.mxu1 %v3530_v33  ;;  %3561 = vmatpush1.bf16.msra.mxu0 %v3560_v35  ;;  %v3809_v33 = vld [vmem:[%s4975_s15 + $0x8] sm:$0xff]   ;;  %v3810_v35 = vld [vmem:[%s4975_s15 + $0x10] sm:$0xff]  }
 0x445   : > { %3532 = vmatprep.subr.bf16.mxu1 %v3882_v57  ;;  %3562 = vmatprep.subr.bf16.mxu0 %v3882_v57 }
 0x448   : > { %3534 = vmatpush1.bf16.msra.mxu1 %v3533_v40  ;;  %3564 = vmatpush1.bf16.msra.mxu0 %v3563_v41 }
 0x449   : > { %3535 = vmatprep.subr.bf16.mxu1 %v3882_v57  ;;  %3565 = vmatprep.subr.bf16.mxu0 %v3882_v57 }
 0x44c   : > { %3537 = vmatpush1.bf16.msra.mxu1 %v3536_v43  ;;  %3567 = vmatpush1.bf16.msra.mxu0 %v3566_v44 }
 0x44d   : > { %3538 = vmatprep.subr.bf16.mxu1 %v3882_v57  ;;  %3568 = vmatprep.subr.bf16.mxu0 %v3882_v57 }
 0x450   : > { %3540 = vmatpush1.bf16.msra.mxu1 %v3539_v50  ;;  %3570 = vmatpush1.bf16.msra.mxu0 %v3569_v51 }
 0x451   : > { %3541 = vmatprep.subr.bf16.mxu1 %v3882_v57  ;;  %3571 = vmatprep.subr.bf16.mxu0 %v3882_v57 }
 0x454   : > { %3543 = vmatpush1.bf16.msra.mxu1 %v3542_v59  ;;  %3573 = vmatpush1.bf16.msra.mxu0 %v3572_v61 }
 0x455   : > { %3362 = vmatprep.subr.bf16.mxu1 %v3881_v55  ;;  %3348 = vmatprep.subr.bf16.mxu0 %v3881_v55 }
 0x501   : > { %v2262_v57 = vpop.f32.mrb[36].mxu0  ;;  %v2337_v62 = vpop.f32.mrb[24].mxu1 }
 0x502   : > { %v2342_v58 = vmax.f32 %v2262_v57, %v2337_v62  ;;  %v2264_v47 = vpop.f32.mrb[37].mxu0  ;;  %v2339_v54 = vpop.f32.mrb[25].mxu1 }
 0x503   : > { %v2343_v63 = vmax.f32 %v2264_v47, %v2339_v54 }
 0x505   : > { %3254 = vmatprep.mubr.msk.f32.mxu1 %vm2364_vm10, %v2343_v63  ;;  %3255 = vmatprep.mubr.msk.f32.mxu0 %vm2364_vm10, %v2343_v63 }
 0x506   : > { %2433 = vmatmul.mubr.f32.vlgmr.msra.gmra.mrb[26].mxu1 %v2342_v58  ;;  %2523 = vmatmul.mubr.f32.vlgmr.msra.gmra.mrb[38].mxu0 %v2342_v58 }
 0x507   : > { %3363 = vmatpush3.bf16.msra.mxu1 %v3788_v0  ;;  %3349 = vmatpush3.bf16.msra.mxu0 %v3789_v1 }
 0x508   : > { %3364 = vmatprep.subr.bf16.mxu1 %v3881_v55  ;;  %3350 = vmatprep.subr.bf16.mxu0 %v3881_v55 }
 0x509   : > { %3358 = vmatprep.mubr.msk.bf16.mxu0 %vm3883_vm11, %v3881_v55  ;;  %3372 = vmatprep.mubr.msk.bf16.mxu1 %vm3883_vm11, %v3881_v55 }
 0x50b   : > { %3365 = vmatpush3.bf16.msra.mxu1 %v3790_v3  ;;  %3351 = vmatpush3.bf16.msra.mxu0 %v3791_v4 }
 0x50c   : > { %3366 = vmatprep.subr.bf16.mxu1 %v3881_v55  ;;  %3352 = vmatprep.subr.bf16.mxu0 %v3881_v55 }
 0x50f   : > { %3367 = vmatpush3.bf16.msra.mxu1 %v3792_v5  ;;  %3353 = vmatpush3.bf16.msra.mxu0 %v3793_v6 }
 0x510   : > { %3368 = vmatprep.subr.bf16.mxu1 %v3881_v55  ;;  %3354 = vmatprep.subr.bf16.mxu0 %v3881_v55 }
 0x513   : > { %3355 = vmatpush3.bf16.msra.mxu0 %v3795_v7  ;;  %3369 = vmatpush3.bf16.msra.mxu1 %v3794_v8 }
 0x514   : > { %3356 = vmatprep.subr.bf16.mxu0 %v3881_v55  ;;  %3370 = vmatprep.subr.bf16.mxu1 %v3881_v55 }
 0x517   : > { %3357 = vmatpush3.bf16.msra.mxu0 %v3797_v9  ;;  %3371 = vmatpush3.bf16.msra.mxu1 %v3796_v10 }
 0x518   : > { %3404 = vmatprep.subr.bf16.mxu0 %v3881_v55  ;;  %3376 = vmatprep.subr.bf16.mxu1 %v3881_v55 }
 0x5d9   : > { %v2434_v11 = vpop.f32.mrb[26].mxu1  ;;  %v2524_v12 = vpop.f32.mrb[38].mxu0 }
 0x5da   : > { %v2528_v13 = vmax.f32 %v2434_v11, %v2524_v12  ;;  %v2436_v2 = vpop.f32.mrb[27].mxu1  ;;  %v2526_v14 = vpop.f32.mrb[39].mxu0 }
 0x5dc   : > { %v2529_v15 = vmax.f32 %v2528_v13, 0.0 }
 0x5de   : > { %v2531_v16 = vpack.c.bf16 %v2529_v15, %v2529_v15 }
 0x5e0   : > { %v2628_v18 = vshrl.u32 %v2531_v16, 16  ;;  %3359 = vmatmul.mubr.msk.bf16.vlgmr.msra.gmra.mrb[40].mxu0 %vm2572_vm12, %v2531_v16  ;;  %v2716_v24 = vrot.slane %v2531_v16, 1 }
 0x5e1   : > { %3412 = vmatprep.mubr.msk.bf16.mxu0 %vm3883_vm11, %v3881_v55  ;;  %3405 = vmatpush3.bf16.msra.mxu0 %v3808_v32 }
 0x5e2   : > { %3373 = vmatmul.mubr.msk.bf16.vlgmr.msra.gmra.mrb[28].mxu1 %vm2572_vm12, %v2628_v18  ;;  %v2802_v31 = vrot.slane %v2628_v18, 1  ;;  %3406 = vmatprep.subr.bf16.mxu0 %v3881_v55 }
 0x5e3   : > { %3377 = vmatpush3.bf16.msra.mxu1 %v3798_v17  ;;  %3386 = vmatprep.mubr.msk.bf16.mxu1 %vm3883_vm11, %v3881_v55 }
 0x5e4   : > { %3378 = vmatprep.subr.bf16.mxu1 %v3881_v55 }
 0x5e5   : > { %3407 = vmatpush3.bf16.msra.mxu0 %v3809_v33 }
 0x5e6   : > { %3408 = vmatprep.subr.bf16.mxu0 %v3881_v55 }
 0x5e7   : > { %3379 = vmatpush3.bf16.msra.mxu1 %v3799_v19 }
 0x5e8   : > { %3380 = vmatprep.subr.bf16.mxu1 %v3881_v55 }
 0x5e9   : > { %3409 = vmatpush3.bf16.msra.mxu0 %v3810_v35 }
 0x5ea   : > { %3410 = vmatprep.subr.bf16.mxu0 %v3881_v55 }
 0x5eb   : > { %3381 = vmatpush3.bf16.msra.mxu1 %v3800_v20 }
 0x5ec   : > { %3382 = vmatprep.subr.bf16.mxu1 %v3881_v55 }
 0x5ed   : > { %3411 = vmatpush3.bf16.msra.mxu0 %v2914_v37 }
 0x5ef   : > { %3383 = vmatpush3.bf16.msra.mxu1 %v3801_v21 }
 0x5f0   : > { %3384 = vmatprep.subr.bf16.mxu1 %v3881_v55 }
 0x5f3   : > { %3385 = vmatpush3.bf16.msra.mxu1 %v3802_v22 }
 0x5f4   : > { %3390 = vmatprep.subr.bf16.mxu1 %v3881_v55 }
 0x5f6   : > { %3387 = vmatmul.mubr.msk.bf16.vlgmr.msra.gmra.mrb[28].mxu1 %vm2572_vm12, %v2716_v24 }
 0x5f7   : > { %3391 = vmatpush3.bf16.msra.mxu1 %v3803_v23  ;;  %3400 = vmatprep.mubr.msk.bf16.mxu1 %vm3883_vm11, %v3881_v55 }
 0x5f8   : > { %3392 = vmatprep.subr.bf16.mxu1 %v3881_v55 }
 0x5fb   : > { %3393 = vmatpush3.bf16.msra.mxu1 %v3804_v25 }
 0x5fc   : > { %3394 = vmatprep.subr.bf16.mxu1 %v3881_v55 }
 0x5ff   : > { %3395 = vmatpush3.bf16.msra.mxu1 %v3805_v26 }
 0x600   : > { %3396 = vmatprep.subr.bf16.mxu1 %v3881_v55 }
 0x603   : > { %3397 = vmatpush3.bf16.msra.mxu1 %v3806_v29 }
 0x604   : > { %3398 = vmatprep.subr.bf16.mxu1 %v3881_v55 }
 0x607   : > { %3399 = vmatpush3.bf16.msra.mxu1 %v3807_v30 }
 0x60a   : > { %3401 = vmatmul.mubr.msk.bf16.vlgmr.msra.gmra.mrb[28].mxu1 %vm2572_vm12, %v2802_v31 }
 0x6b3   : > { %v2610_v38 = vpop.f32.mrb[40].mxu0 }
 0x6b4   : > { %v3360_v39 = vpop.f32.mrb[41].mxu0  ;;  %v2616_v28 = vadd.f32 %v2610_v38, %v2530_v27 }
 0x6b5   : > { %v2613_v40 = vpop.f32.mrb[42].mxu0 }
 0x6b6   : > { %v3361_v41 = vpop.f32.mrb[43].mxu0 }
 0x6dd   : > { %v2870_v34 = vpop.f32.mrb[28].mxu1 }
 0x6de   : > { %v3575_v42 = vadd.f32 %v2870_v34, %v2616_v28  ;;  %v3402_v55 = vpop.f32.mrb[29].mxu1 }
 0x6df   : > { %v2873_v43 = vpop.f32.mrb[30].mxu1 }
 0x6e0   : > { %v2877_v44 = vmax.f32 %v3575_v42, 0.0  ;;  %v3403_v45 = vpop.f32.mrb[31].mxu1 }
 0x6e2   : > { %v2878_v46 = vpack.c.bf16 %v2877_v44, %v2877_v44 }
 0x6e4   : > { %3413 = vmatmul.mubr.msk.bf16.vlgmr.msra.gmra.mrb[44].mxu0 %vm2908_vm14, %v2878_v46 }
 0x7b7   : > { %v2950_v49 = vpop.f32.mrb[44].mxu0 }
 0x7b8   : > { %v2951_v50 = vadd.f32 %v2950_v49, %v2886_v48  ;;  %v3414_v51 = vpop.f32.mrb[45].mxu0 }
 0x7b9   : > { %v2953_v52 = vpop.f32.mrb[46].mxu0 }
 0x7ba   : > { %v3415_v53 = vpop.f32.mrb[47].mxu0  ;;  %v2956_v56 = vsel %vm2912_vm13, %v2951_v50, -inf }
 0x7bb   : > { %2957 = vmax.xlane.f32.xlu0 %v2956_v56 }
 0x848   : > { %v2958_v59 = vpop.xlane.xlu0 %2957 }
 0x849   : > { %v2959_v60 = vsub.f32 %v2951_v50, %v2958_v59 }
 0x84b   : > { %v2960_v61 = vmul.f32 1.442695, %v2959_v60 }
 0x84d   : > { %3812 = vpow2.f32 %v2960_v61 }
 0x857   : > { %v3813_v57 = vpop.eup %3812 }
 0x858   : > { %v2962_v62 = vsel %vm2912_vm13, %v3813_v57, 0.0 }
 0x859   : > { %2963 = vadd.xlane.f32.xlu0 %v2962_v62 }
 0x8e6   : > { %v2964_v58 = vpop.xlane.xlu0 %2963 }
 0x8e7   : > { %3814 = vlog2.f32 %v2964_v58 }
 0x8f1   : > { %v3815_v47 = vpop.eup %3814 }
 0x8f2   : > { %v2966_v54 = vmul.f32 0.6931472, %v3815_v47 }
 0x8f4   : > { %v2967_v63 = vsub.f32 %v2959_v60, %v2966_v54 }
 0x8f6   : > { %2968 = vst [vmem:[%s540_s19] sm:$0x1] %v2967_v63 }
 0x8f7   : > { %3829 = shalt.err (!%p3826_p3)
}
 0x8f8   : > { %s3830_s29 = scalar_lea.hbm %s4918_s0, 16  ;;  %s3834_s24 = scalar_lea.hbm %s4977_s17, 32 }
 0x8f9   : > { %p3831_p4 = scmp.ne.s32.totalorder %s4918_s0, %s3830_s29  ;;  %p3835_p9 = scmp.lt.u32.totalorder %s4918_s0, %s4977_s17 }
 0x8fa   : > { %p3836_p10 = scmp.lt.u32.totalorder %s3834_s24, %s3830_s29  ;;  %p3838_p12 = scmp.lt.u32.totalorder %s3830_s29, %s4918_s0 }
 0x8fb   : > { %p3832_p7 = pnand %p3831_p4, %p4013_p5 }
 0x8fc   : > { %p3837_p11 = por %p3836_p10, %p3835_p9 }
 0x8fd   : > { %p3833_p8 = pneg %p3832_p7 }
 0x8fe   : > { %p3839_p13 = por %p3838_p12, %p3837_p11 }
 0x900   : > { %p3840_p0 = pnand %p3839_p13, %p3833_p8 }
 0x902   : > { %3843 = shalt.err (!%p3840_p0)
}
 0x903   : > { %3600 = dma.vmem_to_hbm [thread:$0]  (%p4013_p5), %s4920_s26, 16, %s4918_s0, %s2970_s20  }
 0x904 PF: > { %s4997_s18 = sld [smem:[#allocation7_spill]]  ;;  %s4998_s21 = sld [smem:[#allocation5_spill]] }
 0x90a   : > { %p3606_p1 = scmp.ge.s32.totalorder %s4997_s18, 2  ;;  %s2994_s30 = sand.u32 1, %s4998_s21  }
 0x90b   : > { %s2995_s19 = scalar_lea.sflag [#allocation3], %s2994_s30 }
 0x90c   : > { %p3603_p2 = pnand %p3606_p1, %p4017_p6 }
 0x90e   : > { %3861 = dma.done.wait (!%p3603_p2), %s2995_s19, 16  }
 0x90f   : > { %3863 = vsyncadd (!%p3603_p2), %s2995_s19, 4294967280  ;;  %s5000_s27 = sld [smem:[#allocation8_spill]]  ;;  %s5001_s29 = sld [smem:[#allocation6_spill]] }
 0x910   : > { %s5002_s26 = sld [smem:[#allocation9_spill]]  ;;  %s5003_s24 = smov %s3870_s25 }
 0x915   : > { %p27_p3 = scmp.ge.s32.totalorder %s5000_s27, 4   ;;  %s5004_s25 = smov %s5001_s29 }
 0x917   :  { %29 = sbr.rel (!%p27_p3) target bundleno = 6 (0x6), region = 134 }
 0x91e   :  { %2999 = vsyncpa [#allocation3], 1 }
 0x91f   :  { %3001 = vsyncpa [#allocation3 + $0x1], 1 }

</bundles_post_ra>
